<compile_context>
chip_gen: v6e
topology: v6e:2x2x1
jax: 0.10.0
libtpu: 0.0.40
codegen_flags: <defaults>
</compile_context>

<pallas_src>
import functools

import jax
import jax.numpy as jnp
from jax import lax
from jax.experimental import pallas as pl
from jax.experimental.pallas import tpu as pltpu

# 9-bit colour bin split into 4-bit "hi" and 5-bit "lo" one-hots:
# 2^4 + 2^5 = 48 compares/pixel is the minimum for a two-factor split.
_N_HI = 16
_N_LO = 32


def _round_up(x, m):
    return ((x + m - 1) // m) * m


def _pick_vmem_limit():
    """Per-generation VMEM budget: ~3/4 of capacity, capped at 100 MiB.
    v7x (64 MiB/TC) -> 48 MiB; v5e/v6e (128 MiB) -> 96 MiB; same on fallback."""
    try:
        cap = int(pltpu.get_tpu_info().vmem_capacity_bytes)
        return int(min(max(cap * 3 // 4, 32 * 1024 * 1024), 100 * 1024 * 1024))
    except Exception:
        return 96 * 1024 * 1024


def _auto_hw_chunk(hw, t, vmem_limit):
    """Padding-aware chunk selection: prefer a single chunk when the bf16
    one-hot temporaries fit VMEM, otherwise minimize padded (wasted) work."""
    full = _round_up(hw, 128)
    # rough accumulation-phase VMEM bytes per (pixel * T):
    #   double-buffered int32 bins block + hi/lo int32 temps + bf16 one-hots
    per_px = t * (2 * 4 + 2 * 4 + (_N_HI + _N_LO) * 2)
    budget = vmem_limit // 2                       # headroom for finalize temps
    max_chunk = max(128, min(full, (budget // (per_px * 5 // 4)) // 128 * 128))
    if full <= max_chunk:
        return full
    best_c, best_key = 128, None
    for c in range(128, max_chunk + 1, 128):
        key = (_round_up(hw, c), -c)               # least waste, then fewest chunks
        if best_key is None or key < best_key:
            best_key, best_c = key, c
    return best_c


def _color_hist_kernel(bins_ref, *rest, lookup_window, has_fc):
    if has_fc:
        w_ref, b_ref, out_ref, hist_ref = rest
        LP = w_ref.shape[0]
    else:
        out_ref, hist_ref = rest
        LP = out_ref.shape[2]

    T, HWc = bins_ref.shape[1], bins_ref.shape[2]
    chunk = pl.program_id(1)
    n_chunks = pl.num_programs(1)

    @pl.when(chunk == 0)
    def _init():
        hist_ref[...] = jnp.zeros_like(hist_ref)

    # ---- per-chunk histogram accumulation (4+5 split, bf16 one-hots) --------
    bins = bins_ref[0]                       # [T, HWc] int32
    # HW padding uses -1: arithmetic >>5 keeps hi == -1 (matches no bucket), so
    # padded pixels contribute exactly zero regardless of lo (= -1 & 31 = 31).
    hi = bins >> 5                           # in [0, 16) for valid pixels
    lo = bins & (_N_LO - 1)                  # in [0, 32)
    h_iota = lax.broadcasted_iota(jnp.int32, (1, _N_HI, HWc), 1)
    l_iota = lax.broadcasted_iota(jnp.int32, (1, _N_LO, HWc), 1)
    hi_oh = (hi[:, None, :] == h_iota).astype(jnp.bfloat16)     # [T, 16, HWc]
    lo_oh = (lo[:, None, :] == l_iota).astype(jnp.bfloat16)     # [T, 32, HWc]
    # hist[t, h, l] += sum_p hi_oh[t,h,p] * lo_oh[t,l,p]   (bin = 32*h + l)
    # bf16 0/1 operands, f32 MXU accumulation -> per-chunk counts are exact.
    hist_ref[...] += jnp.einsum("thp,tlp->thl", hi_oh, lo_oh,
                                preferred_element_type=jnp.float32)

    # ---- finalize on the last chunk: sim, normalize, band, (fc + relu) ------
    @pl.when(chunk == n_chunks - 1)
    def _finalize():
        # sim[t, s] = <hist_t, hist_s> over all 512 bins, from exact integer
        # counts.  HIGHEST: counts can exceed 256 -> must not round to bf16.
        sim = jnp.zeros((T, T), jnp.float32)
        for h in range(_N_HI):
            Hh = hist_ref[:, h, :]                              # [T, 32]
            sim = sim + lax.dot_general(
                Hh, Hh, (((1,), (1,)), ((), ())),
                precision=lax.Precision.HIGHEST,
                preferred_element_type=jnp.float32)

        # F.normalize(p=2, dim=2, eps=1e-12) folded through the Gram matrix:
        # sim_norm[t,s] = <h_t,h_s> / (max(|h_t|,eps) * max(|h_s|,eps))
        r_iota = lax.broadcasted_iota(jnp.int32, (T, T), 0)
        c_iota = lax.broadcasted_iota(jnp.int32, (T, T), 1)
        diag = jnp.where(r_iota == c_iota, sim, 0.0)
        norm_r = jnp.maximum(jnp.sqrt(jnp.sum(diag, axis=1, keepdims=True)), 1e-12)
        norm_c = jnp.maximum(jnp.sqrt(jnp.sum(diag, axis=0, keepdims=True)), 1e-12)
        simn = sim / norm_r / norm_c                            # [T, T]

        # banded lookup, mask generated in-kernel (no [T,LP,T] HBM input):
        # band[t, l] = simn[t, t + l - r] for 0 <= t+l-r < T and l < L, else 0.
        r = (lookup_window - 1) // 2
        t_i = lax.broadcasted_iota(jnp.int32, (T, LP, T), 0)
        l_i = lax.broadcasted_iota(jnp.int32, (T, LP, T), 1)
        s_i = lax.broadcasted_iota(jnp.int32, (T, LP, T), 2)
        keep = (s_i == t_i + l_i - r) & (l_i < lookup_window)
        band = jnp.sum(jnp.where(keep, simn[:, None, :], 0.0), axis=-1)  # [T, LP]

        if has_fc:
            out = lax.dot_general(band, w_ref[...], (((1,), (0,)), ((), ())),
                                  precision=lax.Precision.HIGHEST,
                                  preferred_element_type=jnp.float32)
            out_ref[0] = jnp.maximum(out + b_ref[...], 0.0)     # [T, DP]
        else:
            out_ref[0] = band                                   # [T, LP]


def color_histograms_forward(frames, lookup_window=9, fc_weight=None,
                             fc_bias=None, hw_chunk=None):
    """frames: int array [B, T, H, W, 3], pixel values in [0, 256).
    fc_weight: [output_dim, lookup_window] (torch nn.Linear layout) or None.
    fc_bias:   [output_dim] or None.
    hw_chunk:  pixels per accumulation step (multiple of 128); None = auto.
    """
    assert lookup_window % 2 == 1, "`lookup_window` must be odd integer"
    B, T, H, W, C = frames.shape
    assert C == 3
    HW = H * W

    # ---- glue (plain JAX): 9-bit bin per pixel, lane-aligned HW padding -----
    f = frames.astype(jnp.int32)
    bins = ((f[..., 0] >> 5) << 6) + ((f[..., 1] >> 5) << 3) + (f[..., 2] >> 5)
    bins = bins.reshape(B, T, HW)

    vmem_limit = _pick_vmem_limit()
    if hw_chunk is None:
        hw_chunk = _auto_hw_chunk(HW, T, vmem_limit)
    else:
        hw_chunk = max(128, (int(hw_chunk) // 128) * 128)
        hw_chunk = min(hw_chunk, _round_up(HW, 128))
    hw_pad = _round_up(HW, hw_chunk)
    if hw_pad != HW:
        bins = jnp.pad(bins, ((0, 0), (0, 0), (0, hw_pad - HW)),
                       constant_values=-1)       # -1 sentinel: never binned
    n_chunks = hw_pad // hw_chunk

    L = lookup_window
    LP = _round_up(L, 128)                       # lane-dense band width

    has_fc = fc_weight is not None
    if has_fc:
        out_dim = int(fc_weight.shape[0])
        DP = _round_up(out_dim, 128)
        w_pad = jnp.zeros((LP, DP), jnp.float32)
        w_pad = w_pad.at[:L, :out_dim].set(jnp.asarray(fc_weight, jnp.float32).T)
        b_pad = jnp.zeros((1, DP), jnp.float32)
        b_pad = b_pad.at[0, :out_dim].set(jnp.asarray(fc_bias, jnp.float32))
    else:
        out_dim = L
        DP = LP

    kernel = functools.partial(_color_hist_kernel,
                               lookup_window=lookup_window, has_fc=has_fc)

    in_specs = [pl.BlockSpec((1, T, hw_chunk), lambda b, c: (b, 0, c))]
    args = [bins]
    if has_fc:
        in_specs += [pl.BlockSpec((LP, DP), lambda b, c: (0, 0)),
                     pl.BlockSpec((1, DP), lambda b, c: (0, 0))]
        args += [w_pad, b_pad]

    out = pl.pallas_call(
        kernel,
        out_shape=jax.ShapeDtypeStruct((B, T, DP), jnp.float32),
        grid=(B, n_chunks),
        in_specs=in_specs,
        out_specs=pl.BlockSpec((1, T, DP), lambda b, c: (b, 0, 0)),
        scratch_shapes=[pltpu.VMEM((T, _N_HI, _N_LO), jnp.float32)],
        compiler_params=pltpu.CompilerParams(
            dimension_semantics=("parallel", "arbitrary"),
            vmem_limit_bytes=vmem_limit),
    )(*args)

    return out[..., :out_dim]


def reference_forward(frames, lookup_window=9, fc_weight=None, fc_bias=None):
    """Plain-JAX mirror of the torch module (ground truth for verification)."""
    frames = frames.astype(jnp.int32)
    B, T, H, W, _ = frames.shape
    R, G, Bc = frames[..., 0], frames[..., 1], frames[..., 2]
    bins = ((R >> 5) << 6) + ((G >> 5) << 3) + (Bc >> 5)
    bins = bins.reshape(B * T, H * W)
    bins = bins + (jnp.arange(B * T, dtype=jnp.int32) << 9)[:, None]
    hist = jnp.zeros((B * T * 512,), jnp.int32).at[bins.reshape(-1)].add(1)
    hist = hist.reshape(B, T, 512).astype(jnp.float32)
    nrm = jnp.sqrt(jnp.sum(hist * hist, axis=2, keepdims=True))
    x = hist / jnp.maximum(nrm, 1e-12)
    sim = jnp.einsum("btd,bsd->bts", x, x, precision=lax.Precision.HIGHEST)
    r = (lookup_window - 1) // 2
    padded = jnp.pad(sim, ((0, 0), (0, 0), (r, r)))
    t_idx = jnp.arange(T)[:, None]
    l_idx = jnp.arange(lookup_window)[None, :]
    band = padded[:, t_idx, t_idx + l_idx]                       # [B, T, L]
    if fc_weight is not None:
        band = jnp.maximum(
            jnp.einsum("btl,dl->btd", band, fc_weight,
                       precision=lax.Precision.HIGHEST) + fc_bias, 0.0)
    return band


if __name__ == "__main__":
    key = jax.random.PRNGKey(0)
    k_frames, k_w, k_b = jax.random.split(key, 3)

    B, T, H, W = 2, 8, 16, 16
    lookup_window, output_dim = 9, 16

    frames = jax.random.randint(k_frames, (B, T, H, W, 3), 0, 256, dtype=jnp.int32)
    fc_weight = jax.random.normal(k_w, (output_dim, lookup_window), jnp.float32) * 0.1
    fc_bias = jax.random.normal(k_b, (output_dim,), jnp.float32) * 0.1

    # variant 1: output_dim=None in the torch module -> raw banded similarities
    # hw_chunk=128 forces 2 HW chunks (exercises init + chunked accumulation).
    sims = color_histograms_forward(frames, lookup_window, hw_chunk=128)
    jax.block_until_ready(sims)
    sims_ref = reference_forward(frames, lookup_window)
    assert sims.shape == (B, T, lookup_window)
    assert float(jnp.max(jnp.abs(sims - sims_ref))) < 1e-3

    # variant 2: fc(lookup_window -> output_dim) + relu, auto hw_chunk (single)
    out = color_histograms_forward(frames, lookup_window, fc_weight, fc_bias)
    jax.block_until_ready(out)
    out_ref = reference_forward(frames, lookup_window, fc_weight, fc_bias)
    assert out.shape == (B, T, output_dim)
    assert float(jnp.max(jnp.abs(out - out_ref))) < 2e-3

    print("KERNEL_OK")
</pallas_src>

<mosaic_0001>
module attributes {stable_mosaic.version = 11 : i64} {
  func.func @_color_hist_kernel(%arg0: i32, %arg1: i32, %arg2: memref<1x8x128xi32, #tpu.memory_space<vmem>>, %arg3: memref<1x8x128xf32, #tpu.memory_space<vmem>>, %arg4: memref<8x16x32xf32, #tpu.memory_space<vmem>>) attributes {dimension_semantics = [#tpu.dimension_semantics<parallel>, #tpu.dimension_semantics<arbitrary>], iteration_bounds = array<i64: 2, 2>, scalar_prefetch = 0 : i64, scratch_operands = 1 : i64, tpu.core_type = #tpu.core_type<tc>, window_params = [{transform_indices = @transform_0, window_bounds = array<i64: 1, 8, 128>}, {transform_indices = @transform_1, window_bounds = array<i64: 1, 8, 128>}]} {
    %c0_i32 = arith.constant 0 : i32
    %0 = arith.cmpi eq, %arg1, %c0_i32 : i32
    %1 = arith.extui %0 : i1 to i32
    %c0_i32_0 = arith.constant 0 : i32
    %2 = arith.cmpi ne, %1, %c0_i32_0 : i32
    scf.if %2 {
      %cst_10 = arith.constant 0.000000e+00 : f32
      %32 = vector.broadcast %cst_10 : f32 to vector<8x16x32xf32>
      %c0_11 = arith.constant 0 : index
      %c0_12 = arith.constant 0 : index
      %c0_13 = arith.constant 0 : index
      %33 = vector.load %arg4[%c0_11, %c0_12, %c0_13] : memref<8x16x32xf32, #tpu.memory_space<vmem>>, vector<8x16x32xf32>
      tpu.vector_store %arg4[%c0_11, %c0_12, %c0_13], %32 {strides = array<i32>} : memref<8x16x32xf32, #tpu.memory_space<vmem>>, vector<8x16x32xf32>,
    } else {
    }
    %c0 = arith.constant 0 : index
    %c0_1 = arith.constant 0 : index
    %c0_2 = arith.constant 0 : index
    %3 = vector.load %arg2[%c0, %c0_1, %c0_2] : memref<1x8x128xi32, #tpu.memory_space<vmem>>, vector<1x8x128xi32>
    %4 = vector.shape_cast %3 : vector<1x8x128xi32> to vector<8x128xi32>
    %c5_i32 = arith.constant 5 : i32
    %5 = vector.broadcast %c5_i32 : i32 to vector<8x128xi32>
    %6 = arith.shrsi %4, %5 : vector<8x128xi32>
    %c31_i32 = arith.constant 31 : i32
    %7 = vector.broadcast %c31_i32 : i32 to vector<8x128xi32>
    %8 = arith.andi %4, %7 : vector<8x128xi32>
    %9 = tpu.iota {dimensions = array<i32: 1>} : vector<1x16x128xi32>
    %10 = tpu.iota {dimensions = array<i32: 1>} : vector<1x32x128xi32>
    %11 = vector.shape_cast %6 : vector<8x128xi32> to vector<8x1x128xi32>
    %12 = vector.broadcast %11 : vector<8x1x128xi32> to vector<8x16x128xi32>
    %13 = vector.broadcast %9 : vector<1x16x128xi32> to vector<8x16x128xi32>
    %14 = arith.cmpi eq, %12, %13 : vector<8x16x128xi32>
    %15 = arith.extui %14 : vector<8x16x128xi1> to vector<8x16x128xi32>
    %16 = arith.sitofp %15 : vector<8x16x128xi32> to vector<8x16x128xf32>
    %17 = arith.truncf %16 : vector<8x16x128xf32> to vector<8x16x128xbf16>
    %18 = vector.shape_cast %8 : vector<8x128xi32> to vector<8x1x128xi32>
    %19 = vector.broadcast %18 : vector<8x1x128xi32> to vector<8x32x128xi32>
    %20 = vector.broadcast %10 : vector<1x32x128xi32> to vector<8x32x128xi32>
    %21 = arith.cmpi eq, %19, %20 : vector<8x32x128xi32>
    %22 = arith.extui %21 : vector<8x32x128xi1> to vector<8x32x128xi32>
    %23 = arith.sitofp %22 : vector<8x32x128xi32> to vector<8x32x128xf32>
    %24 = arith.truncf %23 : vector<8x32x128xf32> to vector<8x32x128xbf16>
    %c0_3 = arith.constant 0 : index
    %c0_4 = arith.constant 0 : index
    %c0_5 = arith.constant 0 : index
    %25 = vector.load %arg4[%c0_3, %c0_4, %c0_5] : memref<8x16x32xf32, #tpu.memory_space<vmem>>, vector<8x16x32xf32>
    "tpu.trace_start"() <{level = 10 : i32, message = "thp,tlp->thl"}> : () -> ()
    %cst = arith.constant dense<0.000000e+00> : vector<8x16x32xf32>
    %26 = tpu.matmul %17, %24, %cst {dimension_numbers = #tpu.dot_dimension_numbers<[2], [2], [1], [1], [0, 0, 0, 1, 1, 1], [0], [0]>} : vector<8x16x128xbf16>, vector<8x32x128xbf16>, vector<8x16x32xf32> -> vector<8x16x32xf32>
    "tpu.trace_stop"() : () -> ()
    %27 = arith.addf %25, %26 : vector<8x16x32xf32>
    %c0_6 = arith.constant 0 : index
    %c0_7 = arith.constant 0 : index
    %c0_8 = arith.constant 0 : index
    %28 = vector.load %arg4[%c0_6, %c0_7, %c0_8] : memref<8x16x32xf32, #tpu.memory_space<vmem>>, vector<8x16x32xf32>
    tpu.vector_store %arg4[%c0_6, %c0_7, %c0_8], %27 {strides = array<i32>} : memref<8x16x32xf32, #tpu.memory_space<vmem>>, vector<8x16x32xf32>,
    %c1_i32 = arith.constant 1 : i32
    %29 = arith.cmpi eq, %arg1, %c1_i32 : i32
    %30 = arith.extui %29 : i1 to i32
    %c0_i32_9 = arith.constant 0 : i32
    %31 = arith.cmpi ne, %30, %c0_i32_9 : i32
    scf.if %31 {
      %cst_10 = arith.constant 0.000000e+00 : f32
      %32 = vector.broadcast %cst_10 : f32 to vector<8x8xf32>
      %c0_11 = arith.constant 0 : index
      %c0_12 = arith.constant 0 : index
      %c0_13 = arith.constant 0 : index
      %33 = vector.load %arg4[%c0_11, %c0_12, %c0_13] : memref<8x16x32xf32, #tpu.memory_space<vmem>>, vector<8x1x32xf32>
      %34 = vector.shape_cast %33 : vector<8x1x32xf32> to vector<8x32xf32>
      %cst_14 = arith.constant dense<0.000000e+00> : vector<8x8xf32>
      %35 = tpu.matmul %34, %34, %cst_14 {dimension_numbers = #tpu.dot_dimension_numbers<[1], [1], [0], [0], [0, 0, 1, 0], [], []>, precision = #tpu.contract_precision<fp32>} : vector<8x32xf32>, vector<8x32xf32>, vector<8x8xf32> -> vector<8x8xf32>
      %36 = arith.addf %32, %35 : vector<8x8xf32>
      %c0_15 = arith.constant 0 : index
      %c1 = arith.constant 1 : index
      %c0_16 = arith.constant 0 : index
      %37 = vector.load %arg4[%c0_15, %c1, %c0_16] : memref<8x16x32xf32, #tpu.memory_space<vmem>>, vector<8x1x32xf32>
      %38 = vector.shape_cast %37 : vector<8x1x32xf32> to vector<8x32xf32>
      %cst_17 = arith.constant dense<0.000000e+00> : vector<8x8xf32>
      %39 = tpu.matmul %38, %38, %cst_17 {dimension_numbers = #tpu.dot_dimension_numbers<[1], [1], [0], [0], [0, 0, 1, 0], [], []>, precision = #tpu.contract_precision<fp32>} : vector<8x32xf32>, vector<8x32xf32>, vector<8x8xf32> -> vector<8x8xf32>
      %40 = arith.addf %36, %39 : vector<8x8xf32>
      %c0_18 = arith.constant 0 : index
      %c2 = arith.constant 2 : index
      %c0_19 = arith.constant 0 : index
      %41 = vector.load %arg4[%c0_18, %c2, %c0_19] : memref<8x16x32xf32, #tpu.memory_space<vmem>>, vector<8x1x32xf32>
      %42 = vector.shape_cast %41 : vector<8x1x32xf32> to vector<8x32xf32>
      %cst_20 = arith.constant dense<0.000000e+00> : vector<8x8xf32>
      %43 = tpu.matmul %42, %42, %cst_20 {dimension_numbers = #tpu.dot_dimension_numbers<[1], [1], [0], [0], [0, 0, 1, 0], [], []>, precision = #tpu.contract_precision<fp32>} : vector<8x32xf32>, vector<8x32xf32>, vector<8x8xf32> -> vector<8x8xf32>
      %44 = arith.addf %40, %43 : vector<8x8xf32>
      %c0_21 = arith.constant 0 : index
      %c3 = arith.constant 3 : index
      %c0_22 = arith.constant 0 : index
      %45 = vector.load %arg4[%c0_21, %c3, %c0_22] : memref<8x16x32xf32, #tpu.memory_space<vmem>>, vector<8x1x32xf32>
      %46 = vector.shape_cast %45 : vector<8x1x32xf32> to vector<8x32xf32>
      %cst_23 = arith.constant dense<0.000000e+00> : vector<8x8xf32>
      %47 = tpu.matmul %46, %46, %cst_23 {dimension_numbers = #tpu.dot_dimension_numbers<[1], [1], [0], [0], [0, 0, 1, 0], [], []>, precision = #tpu.contract_precision<fp32>} : vector<8x32xf32>, vector<8x32xf32>, vector<8x8xf32> -> vector<8x8xf32>
      %48 = arith.addf %44, %47 : vector<8x8xf32>
      %c0_24 = arith.constant 0 : index
      %c4 = arith.constant 4 : index
      %c0_25 = arith.constant 0 : index
      %49 = vector.load %arg4[%c0_24, %c4, %c0_25] : memref<8x16x32xf32, #tpu.memory_space<vmem>>, vector<8x1x32xf32>
      %50 = vector.shape_cast %49 : vector<8x1x32xf32> to vector<8x32xf32>
      %cst_26 = arith.constant dense<0.000000e+00> : vector<8x8xf32>
      %51 = tpu.matmul %50, %50, %cst_26 {dimension_numbers = #tpu.dot_dimension_numbers<[1], [1], [0], [0], [0, 0, 1, 0], [], []>, precision = #tpu.contract_precision<fp32>} : vector<8x32xf32>, vector<8x32xf32>, vector<8x8xf32> -> vector<8x8xf32>
      %52 = arith.addf %48, %51 : vector<8x8xf32>
      %c0_27 = arith.constant 0 : index
      %c5 = arith.constant 5 : index
      %c0_28 = arith.constant 0 : index
      %53 = vector.load %arg4[%c0_27, %c5, %c0_28] : memref<8x16x32xf32, #tpu.memory_space<vmem>>, vector<8x1x32xf32>
      %54 = vector.shape_cast %53 : vector<8x1x32xf32> to vector<8x32xf32>
      %cst_29 = arith.constant dense<0.000000e+00> : vector<8x8xf32>
      %55 = tpu.matmul %54, %54, %cst_29 {dimension_numbers = #tpu.dot_dimension_numbers<[1], [1], [0], [0], [0, 0, 1, 0], [], []>, precision = #tpu.contract_precision<fp32>} : vector<8x32xf32>, vector<8x32xf32>, vector<8x8xf32> -> vector<8x8xf32>
      %56 = arith.addf %52, %55 : vector<8x8xf32>
      %c0_30 = arith.constant 0 : index
      %c6 = arith.constant 6 : index
      %c0_31 = arith.constant 0 : index
      %57 = vector.load %arg4[%c0_30, %c6, %c0_31] : memref<8x16x32xf32, #tpu.memory_space<vmem>>, vector<8x1x32xf32>
      %58 = vector.shape_cast %57 : vector<8x1x32xf32> to vector<8x32xf32>
      %cst_32 = arith.constant dense<0.000000e+00> : vector<8x8xf32>
      %59 = tpu.matmul %58, %58, %cst_32 {dimension_numbers = #tpu.dot_dimension_numbers<[1], [1], [0], [0], [0, 0, 1, 0], [], []>, precision = #tpu.contract_precision<fp32>} : vector<8x32xf32>, vector<8x32xf32>, vector<8x8xf32> -> vector<8x8xf32>
      %60 = arith.addf %56, %59 : vector<8x8xf32>
      %c0_33 = arith.constant 0 : index
      %c7 = arith.constant 7 : index
      %c0_34 = arith.constant 0 : index
      %61 = vector.load %arg4[%c0_33, %c7, %c0_34] : memref<8x16x32xf32, #tpu.memory_space<vmem>>, vector<8x1x32xf32>
      %62 = vector.shape_cast %61 : vector<8x1x32xf32> to vector<8x32xf32>
      %cst_35 = arith.constant dense<0.000000e+00> : vector<8x8xf32>
      %63 = tpu.matmul %62, %62, %cst_35 {dimension_numbers = #tpu.dot_dimension_numbers<[1], [1], [0], [0], [0, 0, 1, 0], [], []>, precision = #tpu.contract_precision<fp32>} : vector<8x32xf32>, vector<8x32xf32>, vector<8x8xf32> -> vector<8x8xf32>
      %64 = arith.addf %60, %63 : vector<8x8xf32>
      %c0_36 = arith.constant 0 : index
      %c8 = arith.constant 8 : index
      %c0_37 = arith.constant 0 : index
      %65 = vector.load %arg4[%c0_36, %c8, %c0_37] : memref<8x16x32xf32, #tpu.memory_space<vmem>>, vector<8x1x32xf32>
      %66 = vector.shape_cast %65 : vector<8x1x32xf32> to vector<8x32xf32>
      %cst_38 = arith.constant dense<0.000000e+00> : vector<8x8xf32>
      %67 = tpu.matmul %66, %66, %cst_38 {dimension_numbers = #tpu.dot_dimension_numbers<[1], [1], [0], [0], [0, 0, 1, 0], [], []>, precision = #tpu.contract_precision<fp32>} : vector<8x32xf32>, vector<8x32xf32>, vector<8x8xf32> -> vector<8x8xf32>
      %68 = arith.addf %64, %67 : vector<8x8xf32>
      %c0_39 = arith.constant 0 : index
      %c9 = arith.constant 9 : index
      %c0_40 = arith.constant 0 : index
      %69 = vector.load %arg4[%c0_39, %c9, %c0_40] : memref<8x16x32xf32, #tpu.memory_space<vmem>>, vector<8x1x32xf32>
      %70 = vector.shape_cast %69 : vector<8x1x32xf32> to vector<8x32xf32>
      %cst_41 = arith.constant dense<0.000000e+00> : vector<8x8xf32>
      %71 = tpu.matmul %70, %70, %cst_41 {dimension_numbers = #tpu.dot_dimension_numbers<[1], [1], [0], [0], [0, 0, 1, 0], [], []>, precision = #tpu.contract_precision<fp32>} : vector<8x32xf32>, vector<8x32xf32>, vector<8x8xf32> -> vector<8x8xf32>
      %72 = arith.addf %68, %71 : vector<8x8xf32>
      %c0_42 = arith.constant 0 : index
      %c10 = arith.constant 10 : index
      %c0_43 = arith.constant 0 : index
      %73 = vector.load %arg4[%c0_42, %c10, %c0_43] : memref<8x16x32xf32, #tpu.memory_space<vmem>>, vector<8x1x32xf32>
      %74 = vector.shape_cast %73 : vector<8x1x32xf32> to vector<8x32xf32>
      %cst_44 = arith.constant dense<0.000000e+00> : vector<8x8xf32>
      %75 = tpu.matmul %74, %74, %cst_44 {dimension_numbers = #tpu.dot_dimension_numbers<[1], [1], [0], [0], [0, 0, 1, 0], [], []>, precision = #tpu.contract_precision<fp32>} : vector<8x32xf32>, vector<8x32xf32>, vector<8x8xf32> -> vector<8x8xf32>
      %76 = arith.addf %72, %75 : vector<8x8xf32>
      %c0_45 = arith.constant 0 : index
      %c11 = arith.constant 11 : index
      %c0_46 = arith.constant 0 : index
      %77 = vector.load %arg4[%c0_45, %c11, %c0_46] : memref<8x16x32xf32, #tpu.memory_space<vmem>>, vector<8x1x32xf32>
      %78 = vector.shape_cast %77 : vector<8x1x32xf32> to vector<8x32xf32>
      %cst_47 = arith.constant dense<0.000000e+00> : vector<8x8xf32>
      %79 = tpu.matmul %78, %78, %cst_47 {dimension_numbers = #tpu.dot_dimension_numbers<[1], [1], [0], [0], [0, 0, 1, 0], [], []>, precision = #tpu.contract_precision<fp32>} : vector<8x32xf32>, vector<8x32xf32>, vector<8x8xf32> -> vector<8x8xf32>
      %80 = arith.addf %76, %79 : vector<8x8xf32>
      %c0_48 = arith.constant 0 : index
      %c12 = arith.constant 12 : index
      %c0_49 = arith.constant 0 : index
      %81 = vector.load %arg4[%c0_48, %c12, %c0_49] : memref<8x16x32xf32, #tpu.memory_space<vmem>>, vector<8x1x32xf32>
      %82 = vector.shape_cast %81 : vector<8x1x32xf32> to vector<8x32xf32>
      %cst_50 = arith.constant dense<0.000000e+00> : vector<8x8xf32>
      %83 = tpu.matmul %82, %82, %cst_50 {dimension_numbers = #tpu.dot_dimension_numbers<[1], [1], [0], [0], [0, 0, 1, 0], [], []>, precision = #tpu.contract_precision<fp32>} : vector<8x32xf32>, vector<8x32xf32>, vector<8x8xf32> -> vector<8x8xf32>
      %84 = arith.addf %80, %83 : vector<8x8xf32>
      %c0_51 = arith.constant 0 : index
      %c13 = arith.constant 13 : index
      %c0_52 = arith.constant 0 : index
      %85 = vector.load %arg4[%c0_51, %c13, %c0_52] : memref<8x16x32xf32, #tpu.memory_space<vmem>>, vector<8x1x32xf32>
      %86 = vector.shape_cast %85 : vector<8x1x32xf32> to vector<8x32xf32>
      %cst_53 = arith.constant dense<0.000000e+00> : vector<8x8xf32>
      %87 = tpu.matmul %86, %86, %cst_53 {dimension_numbers = #tpu.dot_dimension_numbers<[1], [1], [0], [0], [0, 0, 1, 0], [], []>, precision = #tpu.contract_precision<fp32>} : vector<8x32xf32>, vector<8x32xf32>, vector<8x8xf32> -> vector<8x8xf32>
      %88 = arith.addf %84, %87 : vector<8x8xf32>
      %c0_54 = arith.constant 0 : index
      %c14 = arith.constant 14 : index
      %c0_55 = arith.constant 0 : index
      %89 = vector.load %arg4[%c0_54, %c14, %c0_55] : memref<8x16x32xf32, #tpu.memory_space<vmem>>, vector<8x1x32xf32>
      %90 = vector.shape_cast %89 : vector<8x1x32xf32> to vector<8x32xf32>
      %cst_56 = arith.constant dense<0.000000e+00> : vector<8x8xf32>
      %91 = tpu.matmul %90, %90, %cst_56 {dimension_numbers = #tpu.dot_dimension_numbers<[1], [1], [0], [0], [0, 0, 1, 0], [], []>, precision = #tpu.contract_precision<fp32>} : vector<8x32xf32>, vector<8x32xf32>, vector<8x8xf32> -> vector<8x8xf32>
      %92 = arith.addf %88, %91 : vector<8x8xf32>
      %c0_57 = arith.constant 0 : index
      %c15 = arith.constant 15 : index
      %c0_58 = arith.constant 0 : index
      %93 = vector.load %arg4[%c0_57, %c15, %c0_58] : memref<8x16x32xf32, #tpu.memory_space<vmem>>, vector<8x1x32xf32>
      %94 = vector.shape_cast %93 : vector<8x1x32xf32> to vector<8x32xf32>
      %cst_59 = arith.constant dense<0.000000e+00> : vector<8x8xf32>
      %95 = tpu.matmul %94, %94, %cst_59 {dimension_numbers = #tpu.dot_dimension_numbers<[1], [1], [0], [0], [0, 0, 1, 0], [], []>, precision = #tpu.contract_precision<fp32>} : vector<8x32xf32>, vector<8x32xf32>, vector<8x8xf32> -> vector<8x8xf32>
      %96 = arith.addf %92, %95 : vector<8x8xf32>
      %97 = tpu.iota {dimensions = array<i32: 0>} : vector<8x8xi32>
      %98 = tpu.iota {dimensions = array<i32: 1>} : vector<8x8xi32>
      %99 = arith.cmpi eq, %97, %98 : vector<8x8xi32>
      %cst_60 = arith.constant 0.000000e+00 : f32
      %100 = vector.broadcast %cst_60 : f32 to vector<8x8xf32>
      %101 = arith.select %99, %96, %100 : vector<8x8xi1>, vector<8x8xf32>
      %cst_61 = arith.constant dense<0.000000e+00> : vector<8xf32>
      %102 = vector.multi_reduction <add>, %101, %cst_61 [1] : vector<8x8xf32> to vector<8xf32>
      %103 = vector.shape_cast %102 : vector<8xf32> to vector<8x1xf32>
      %104 = math.sqrt %103 : vector<8x1xf32>
      %cst_62 = arith.constant 9.99999996E-13 : f32
      %105 = vector.broadcast %cst_62 : f32 to vector<8x1xf32>
      %106 = arith.maximumf %104, %105 : vector<8x1xf32>
      %cst_63 = arith.constant dense<0.000000e+00> : vector<8xf32>
      %107 = vector.multi_reduction <add>, %101, %cst_63 [0] : vector<8x8xf32> to vector<8xf32>
      %108 = vector.shape_cast %107 : vector<8xf32> to vector<1x8xf32>
      %109 = math.sqrt %108 : vector<1x8xf32>
      %cst_64 = arith.constant 9.99999996E-13 : f32
      %110 = vector.broadcast %cst_64 : f32 to vector<1x8xf32>
      %111 = arith.maximumf %109, %110 : vector<1x8xf32>
      %112 = vector.broadcast %106 : vector<8x1xf32> to vector<8x8xf32>
      %113 = arith.divf %96, %112 : vector<8x8xf32>
      %114 = vector.broadcast %111 : vector<1x8xf32> to vector<8x8xf32>
      %115 = arith.divf %113, %114 : vector<8x8xf32>
      %116 = tpu.iota {dimensions = array<i32: 0>} : vector<8x128x8xi32>
      %117 = tpu.iota {dimensions = array<i32: 1>} : vector<8x128x8xi32>
      %118 = tpu.iota {dimensions = array<i32: 2>} : vector<8x128x8xi32>
      %119 = arith.addi %116, %117 : vector<8x128x8xi32>
      %c4_i32 = arith.constant 4 : i32
      %120 = vector.broadcast %c4_i32 : i32 to vector<8x128x8xi32>
      %121 = arith.subi %119, %120 : vector<8x128x8xi32>
      %122 = arith.cmpi eq, %118, %121 : vector<8x128x8xi32>
      %c9_i32 = arith.constant 9 : i32
      %123 = vector.broadcast %c9_i32 : i32 to vector<8x128x8xi32>
      %124 = arith.cmpi slt, %117, %123 : vector<8x128x8xi32>
      %125 = arith.andi %122, %124 : vector<8x128x8xi1>
      %126 = vector.shape_cast %115 : vector<8x8xf32> to vector<8x1x8xf32>
      %cst_65 = arith.constant 0.000000e+00 : f32
      %127 = vector.shape_cast %126 : vector<8x1x8xf32> to vector<8x1x8xf32>
      %128 = vector.broadcast %127 : vector<8x1x8xf32> to vector<8x128x8xf32>
      %129 = vector.broadcast %cst_65 : f32 to vector<8x128x8xf32>
      %130 = arith.select %125, %128, %129 : vector<8x128x8xi1>, vector<8x128x8xf32>
      %cst_66 = arith.constant dense<0.000000e+00> : vector<8x128xf32>
      %131 = vector.multi_reduction <add>, %130, %cst_66 [2] : vector<8x128x8xf32> to vector<8x128xf32>
      %c0_67 = arith.constant 0 : index
      %c0_68 = arith.constant 0 : index
      %c0_69 = arith.constant 0 : index
      %132 = vector.load %arg3[%c0_67, %c0_68, %c0_69] : memref<1x8x128xf32, #tpu.memory_space<vmem>>, vector<1x8x128xf32>
      %133 = vector.shape_cast %132 : vector<1x8x128xf32> to vector<8x128xf32>
      %134 = vector.shape_cast %131 : vector<8x128xf32> to vector<1x8x128xf32>
      tpu.vector_store %arg3[%c0_67, %c0_68, %c0_69], %134 {strides = array<i32>} : memref<1x8x128xf32, #tpu.memory_space<vmem>>, vector<1x8x128xf32>,
    } else {
    }
    return
  }
  func.func @transform_0(%arg0: i32, %arg1: i32) -> (i32, i32, i32) {
    %c0_i32 = arith.constant 0 : i32
    %c0_i32_0 = arith.constant 0 : i32
    return %arg0, %c0_i32, %arg1 : i32, i32, i32
  }
  func.func @transform_1(%arg0: i32, %arg1: i32) -> (i32, i32, i32) {
    %c0_i32 = arith.constant 0 : i32
    %c0_i32_0 = arith.constant 0 : i32
    %c0_i32_1 = arith.constant 0 : i32
    return %arg0, %c0_i32, %c0_i32_0 : i32, i32, i32
  }
}

</mosaic_0001>

<bundles_post_ra>
// kernel: tpu_custom_call.1
= control target key start
LH: loop header
LB: loop body
LE: loop exit
PB: predicated region body
PF: predicated region fallthrough
CT: control target
= control target key end

     0   :  { %6 = vsyncpa [#allocation4], 0  ;;  %s14192_s0 = inlined_call_operand.hbm [shape: s32[2,8,256], index: 0, kind: input, shape index: {}]   ;;  %s14193_s1 = inlined_call_operand.hbm [shape: f32[2,8,128], index: 1, kind: output, shape index: {}]  }
   0x1   :  { %8 = vsyncpa [#allocation4 + $0x1], 0 }
   0x2   :  { %9 = vsyncpa [#allocation5], 0 }
   0x3   :  { %11 = vsyncpa [#allocation5 + $0x1], 0  ;;  %s11852_s6 = smov 0   ;;  %s11854_s7 = smov 0  }
   0x4   :  { %s11856_s8 = smov 0   ;;  %s11858_s9 = smov 0  }
   0x5   :  { %s11860_s10 = smov 0   ;;  %s11862_s11 = smov 0  }
   0x6   :  { %s11864_s12 = smov 0   ;;  %s11866_s13 = smov 0  }
   0x7   :  { %s11868_s14 = smov 0   ;;  %s11870_s15 = smov 0  }
   0x8   :  { %s11872_s16 = smov 0  }
   0x9 LB: > { %s10582_s17 = sadd.s32 4294967295, %s11831_s16   ;;  %s10583_s18 = sadd.s32 4294967294, %s11831_s16   ;;  %s11831_s16 = sphi %s11872_s16, %s17_s16   ;;  %s11827_s15 = sphi %s11870_s15, %s14624_s15   ;;  %s11823_s14 = sphi %s11868_s14, %s14623_s14   ;;  %s11819_s13 = sphi %s11866_s13, %s14622_s13   ;;  %s11815_s12 = sphi %s11864_s12, %s14621_s12   ;;  %s11811_s11 = sphi %s11862_s11, %s14620_s11   ;;  %s11807_s10 = sphi %s11860_s10, %s14619_s10   ;;  %s11803_s9 = sphi %s11858_s9, %s14618_s9   ;;  %s11799_s8 = sphi %s11856_s8, %s14617_s8   ;;  %s11795_s7 = sphi %s11854_s7, %s14616_s7   ;;  %s11791_s6 = sphi %s11852_s6, %s14615_s6  }
   0xa   : > { %s26_s19 = sadd.s32 1, %s11823_s14  ;;  %s29_s20 = sadd.s32 1, %s11827_s15 }
   0xb   : > { %p27_p0 = scmp.ge.s32.totalorder %s26_s19, 2  ;;  %s38_s21 = sadd.s32 1, %s11811_s11 }
   0xc   : > { %p45_p1 = scmp.ne.s32.totalorder %s11811_s11, %s11807_s10  ;;  %p46_p2 = scmp.eq.s32.totalorder %s11831_s16, 0 }
   0xd   : > { %s14626_s19 = smov (%p27_p0, %s26_s19), 0  ;;  %s14628_s20 = smov (!%p27_p0, %s29_s20), %s11827_s15 }
   0xe   : > { %s34_s22 = ssub.s32 %s11823_s14, %s14626_s19  ;;  %p11918_p3 = por %p46_p2, %p45_p1 }
   0xf   : > { %p31_p4 = scmp.ge.s32.totalorder %s14628_s20, 2  ;;  %p51_p5 = scmp.ne.s32.totalorder %s11807_s10, %s11803_s9 }
  0x10   : > { %p52_p6 = scmp.eq.s32.totalorder %s10582_s17, 0  ;;  %s64_s24 = sadd.s32 1, %s11799_s8 }
  0x11   : > { %s14630_s20 = smov (%p31_p4, %s14628_s20), 0  ;;  %p74_p8 = scmp.ne.s32.totalorder %s11799_s8, %s11795_s7 }
  0x12   : > { %14285 = sst [smem:[#allocation9_spill]] %s14630_s20  ;;  %p11926_p7 = por %p52_p6, %p51_p5 }
  0x13   : > { %s33_s26 = ssub.s32 %s11827_s15, %s14630_s20  ;;  %p75_p9 = scmp.eq.s32.totalorder %s10582_s17, 3 }
  0x14   : > { %s35_s27 = sor.u32 %s34_s22, %s33_s26  ;;  %p62_p10 = scmp.eq.s32.totalorder %s33_s26, 0 }
  0x15   : > { %p36_p11 = scmp.eq.s32.totalorder %s35_s27, 0  ;;  %p11934_p12 = por %p75_p9, %p74_p8 }
  0x16   : > { %s11939_s29 = scalar_select %p62_p10, %s11799_s8, %s64_s24  }
  0x17   : > { %s11942_s30 = scalar_select %p36_p11, %s11811_s11, %s38_s21  }
  0x18   : > { %p80_p13 = scmp.ne.s32.totalorder %s11795_s7, %s11791_s6  ;;  %p81_p0 = scmp.eq.s32.totalorder %s10583_s18, 3 }
  0x19   : > { %p11578_p1 = scmp.lt.s32.totalorder %s11831_s16, 4  ;;  %s101_s3 = sand.u32 1, %s11811_s11  }
  0x1a   : > { %p11947_p2 = por %p81_p0, %p80_p13  ;;  %s10586_s4 = sshll.u32 %s101_s3, 3 }
  0x1b   : > { %s10587_s5 = sshll.u32 %s11827_s15, 1  ;;  %s105_s17 = scalar_lea.vmem [#allocation3], %s10586_s4 }
  0x1c   : > { %s14288_s2 = scalar_select %p11947_p2, 1, 0 }
  0x1d   : > { %s110_s9 = sadd.s32 %s11823_s14, %s10587_s5  ;;  %s114_s22 = sshll.u32 %s105_s17, 4  ;;  %s115_s22 = int_to_ptr.vmem [resolvable:$true] %s114_s22 }
  0x1e   : > { %s10588_s26 = sshll.u32 %s110_s9, 7  ;;  %p11959_p4 = pnand %p11578_p1, %p11918_p3 }
  0x1f   : > { %s112_s21 = scalar_lea.hbm %s14192_s0, %s10588_s26  ;;  %p10589_p5 = scmp.ge.s32.totalorder %s11831_s16, 1 }
  0x20   : > { %p119_p6 = scmp.lt.s32.totalorder %s11831_s16, 5  ;;  %s102_s20 = scalar_lea.sflag [#allocation4], %s101_s3 }
  0x21   : > { %p11685_p8 = pneg %p11959_p4  ;;  %s11696_s5 = scalar_lea.vmem %s115_s22, 128 }
  0x22   : > { %p11697_p9 = scmp.ne.s32.totalorder %s115_s22, %s11696_s5  ;;  %s11833_s4 = smov [#allocation3]  }
  0x23   : > { %s11701_s9 = sshll.u32 %s11833_s4, 4  ;;  %s11702_s9 = int_to_ptr.vmem [resolvable:$false] %s11701_s9 }
  0x24   : > { %p11699_p10 = pnand %p11697_p9, %p11685_p8  ;;  %s11703_s17 = scalar_lea.vmem %s11702_s9, 256 }
  0x25   : > { %p11704_p13 = scmp.lt.s32.totalorder %s115_s22, %s11702_s9  ;;  %p11705_p0 = scmp.lt.s32.totalorder %s11703_s17, %s11696_s5 }
  0x26   : > { %p11700_p11 = pneg %p11699_p10 }
  0x27   : > { %p11706_p3 = por %p11705_p0, %p11704_p13 }
  0x29   : > { %p11707_p1 = pnand %p11706_p3, %p11700_p11 }
  0x2b   : > { %11710 = shalt.err (!%p11707_p1)
}
  0x2c   : > { %11573 = dma.hbm_to_vmem [thread:$0]  (!%p11959_p4), %s112_s21, 128, %s115_s22, %s102_s20  }
  0x2d   : > { %p120_p2 = pnand %p10589_p5, %p119_p6 }
  0x2e   : > { %s125_s23 = sand.u32 (!%p120_p2), 1, %s11807_s10  }
  0x2f   : > { %123 = sbr.rel (%p120_p2) target bundleno = 1178 (0x49a), region = 24  ;;  %s11974_s3 = sshll.u32 (!%p120_p2), %s125_s23, 3 }
  0x30   : > { %s126_s26 = scalar_lea.sflag (!%p120_p2), [#allocation4], %s125_s23  ;;  %s129_s24 = scalar_lea.vmem (!%p120_p2), [#allocation3], %s11974_s3 }
  0x34   : > { %11782 = dma.done.wait (%p11926_p7), %s126_s26, 128  }
  0x35   : > { %11784 = vsyncadd (%p11926_p7), %s126_s26, 4294967168  ;;  %s145_s20 = sand.u32 1, %s11795_s7   ;;  %p10592_p2 = scmp.ne.s32.totalorder %s11815_s12, 0 }
  0x36   : > { %s11984_s22 = sshll.u32 %s145_s20, 3 }
  0x37   : > { %s147_s27 = scalar_lea.vmem [#allocation6], %s11984_s22  ;;  %152 = sbr.rel (%p10592_p2) target bundleno = 69 (0x45), region = 32 }
  0x3c   : > { %vm153_vm0 = vcmask 261120   ;;  %v11834_v0 = vmov 0.0  }
  0x3d   : > { %154 = vst.msk [vmem:[#allocation2] sm:$0xff] %vm153_vm0, %v11834_v0  ;;  %155 = vst.msk [vmem:[#allocation2 + $0x8] sm:$0xff] %vm153_vm0, %v11834_v0 }
  0x3e   : > { %156 = vst.msk [vmem:[#allocation2 + $0x10] sm:$0xff] %vm153_vm0, %v11834_v0  ;;  %157 = vst.msk [vmem:[#allocation2 + $0x18] sm:$0xff] %vm153_vm0, %v11834_v0 }
  0x3f   : > { %158 = vst.msk [vmem:[#allocation2 + $0x20] sm:$0xff] %vm153_vm0, %v11834_v0  ;;  %159 = vst.msk [vmem:[#allocation2 + $0x28] sm:$0xff] %vm153_vm0, %v11834_v0 }
  0x40   : > { %160 = vst.msk [vmem:[#allocation2 + $0x30] sm:$0xff] %vm153_vm0, %v11834_v0  ;;  %161 = vst.msk [vmem:[#allocation2 + $0x38] sm:$0xff] %vm153_vm0, %v11834_v0 }
  0x41   : > { %162 = vst.msk [vmem:[#allocation2 + $0x40] sm:$0xff] %vm153_vm0, %v11834_v0  ;;  %163 = vst.msk [vmem:[#allocation2 + $0x48] sm:$0xff] %vm153_vm0, %v11834_v0 }
  0x42   : > { %164 = vst.msk [vmem:[#allocation2 + $0x50] sm:$0xff] %vm153_vm0, %v11834_v0  ;;  %165 = vst.msk [vmem:[#allocation2 + $0x58] sm:$0xff] %vm153_vm0, %v11834_v0 }
  0x43   : > { %166 = vst.msk [vmem:[#allocation2 + $0x60] sm:$0xff] %vm153_vm0, %v11834_v0  ;;  %167 = vst.msk [vmem:[#allocation2 + $0x68] sm:$0xff] %vm153_vm0, %v11834_v0 }
  0x44   : > { %168 = vst.msk [vmem:[#allocation2 + $0x70] sm:$0xff] %vm153_vm0, %v11834_v0  ;;  %169 = vst.msk [vmem:[#allocation2 + $0x78] sm:$0xff] %vm153_vm0, %v11834_v0 }
  0x45 PF: > { %v170_v1 = vld [vmem:[%s129_s24] sm:$0xff]  ;;  %v173_v2 = vlaneseq  ;;  %v11835_v3 = vmov 0.0   ;;  %v11836_v4 = vmov 1966171168   ;;  %vm11837_vm1 = vmmov 0   ;;  %v510_v62 = vld [vmem:[#allocation2 + $0x10] sm:$0xff] }
  0x46   : > { %11022 = vmatprep.subr.bf16.mxu0 %v11835_v3  ;;  %v180_v5 = vunpack.c.l.s4 %v11836_v4  ;;  %11030 = vmatprep.subr.bf16.mxu1 %v11835_v3  ;;  %v12013_v7 = vand.u32 31, %v170_v1  ;;  %v171_v10 = vshra.s32 %v170_v1, 5  ;;  %v11838_v24 = vmov 1.0|1.0   ;;  %v508_v60 = vld [vmem:[#allocation2] sm:$0xff]  ;;  %p10689_p7 = scmp.ne.s32.totalorder %s11815_s12, 1 }
  0x47   : > { %v12007_v6 = vshrl.u32 %v173_v2, 7  ;;  %11026 = vmatprep.mubr.msk.bf16.mxu0 %vm11837_vm1, %v11835_v3  ;;  %11034 = vmatprep.mubr.msk.bf16.mxu1 %vm11837_vm1, %v11835_v3 }
  0x48   : > { %v181_v8 = vunpack.c.0.s8 %v180_v5  ;;  %v178_v20 = vcombine.high %v171_v10, %v171_v10  ;;  %v315_v35 = vcombine.high %v12013_v7, %v12013_v7 }
  0x49   : > { %v12019_v11 = vsub.s32 0, %v12007_v6  ;;  %v12024_v13 = vadd.s32 16, %v12007_v6  ;;  %v12027_v14 = vadd.s32 24, %v12007_v6  ;;  %v12037_v22 = vadd.s32 8, %v12007_v6 }
  0x4a   : > { %v12016_v9 = vsub.s32 %v181_v8, %v12007_v6  ;;  %v511_v8 = vld [vmem:[#allocation2 + $0x18] sm:$0xff]  ;;  %v520_v49 = vld [vmem:[#allocation2 + $0x60] sm:$0xff] }
  0x4b   : > { %v522_v51 = vld [vmem:[#allocation2 + $0x70] sm:$0xff] }
  0x4c   : > { %v322_v12 = vrot.slane %v12013_v7, %v12016_v9  ;;  %v185_v17 = vrot.slane %v171_v10, %v12016_v9  ;;  %v192_v26 = vrot.slane %v178_v20, %v12016_v9  ;;  %v329_v41 = vrot.slane %v315_v35, %v12016_v9  ;;  %v518_v35 = vld [vmem:[#allocation2 + $0x50] sm:$0xff] }
  0x4e   : > { %v338_v15 = vrot.slane %v322_v12, %v12016_v9  ;;  %v330_v16 = vcombine.high %v322_v12, %v322_v12  ;;  %v193_v23 = vcombine.high %v185_v17, %v185_v17  ;;  %v12044_v25 = vrot.slane %v185_v17, %v12016_v9 }
  0x4f   : > { %v194_v31 = vcombine.high %v192_v26, %v192_v26  ;;  %v12062_v34 = vrot.slane %v192_v26, %v12016_v9  ;;  %v331_v44 = vcombine.high %v329_v41, %v329_v41  ;;  %v345_v45 = vrot.slane %v329_v41, %v12016_v9 }
  0x50   : > { %v367_v18 = vrot.slane %v338_v15, %v12019_v11  ;;  %v352_v19 = vrot.slane %v330_v16, %v12016_v9  ;;  %v360_v27 = vcombine.high %v338_v15, %v338_v15  ;;  %v12052_v28 = vrot.slane %v193_v23, %v12016_v9  ;;  %v512_v16 = vld [vmem:[#allocation2 + $0x20] sm:$0xff]  ;;  %v513_v23 = vld [vmem:[#allocation2 + $0x28] sm:$0xff] }
  0x51   : > { %v230_v30 = vrot.slane %v12044_v25, %v12019_v11  ;;  %v12072_v37 = vrot.slane %v194_v31, %v12016_v9  ;;  %v224_v38 = vcombine.high %v12062_v34, %v12062_v34  ;;  %v223_v43 = vcombine.high %v12044_v25, %v12044_v25 }
  0x52   : > { %vm398_vm2 = vcmp.eq.s32.totalorder %v367_v18, %v12024_v13  ;;  %vm399_vm3 = vcmp.eq.s32.totalorder %v367_v18, %v12027_v14  ;;  %v371_v21 = vrot.slane %v352_v19, %v12019_v11  ;;  %vm396_vm8 = vcmp.eq.s32.totalorder %v367_v18, %v12007_v6 }
  0x53   : > { %vm10641_vm4 = vmpackc.low %vm399_vm3, %vm398_vm2  ;;  %vm397_vm9 = vcmp.eq.s32.totalorder %v367_v18, %v12037_v22  ;;  %v362_v29 = vcombine.high %v352_v19, %v352_v19  ;;  %v375_v32 = vrot.slane %v360_v27, %v12019_v11  ;;  %v234_v33 = vrot.slane %v12052_v28, %v12019_v11  ;;  %v514_v18 = vld [vmem:[#allocation2 + $0x30] sm:$0xff]  ;;  %v515_v27 = vld [vmem:[#allocation2 + $0x38] sm:$0xff] }
  0x54   : > { %11023 = vmatpush3.bf16.xpose.msk.msra.mxu0 %vm10641_vm4, %v11838_v24  ;;  %vm402_vm5 = vcmp.eq.s32.totalorder %v371_v21, %v12024_v13  ;;  %vm403_vm6 = vcmp.eq.s32.totalorder %v371_v21, %v12027_v14  ;;  %vm400_vm10 = vcmp.eq.s32.totalorder %v371_v21, %v12007_v6  ;;  %vm401_vm11 = vcmp.eq.s32.totalorder %v371_v21, %v12037_v22  ;;  %vm10643_vm12 = vmpackc.low %vm397_vm9, %vm396_vm8 }
  0x55   : > { %vm10647_vm7 = vmpackc.low %vm403_vm6, %vm402_vm5  ;;  %11024 = vmatprep.subr.bf16.mxu0 %v11835_v3  ;;  %v379_v36 = vrot.slane %v362_v29, %v12019_v11  ;;  %vm259_vm14 = vcmp.eq.s32.totalorder %v230_v30, %v12007_v6  ;;  %vm260_vm15 = vcmp.eq.s32.totalorder %v230_v30, %v12037_v22  ;;  %vm406_vm0 = vcmp.eq.s32.totalorder %v375_v32, %v12024_v13 }
  0x56   : > { %11031 = vmatpush3.bf16.xpose.msk.msra.mxu1 %vm10647_vm7, %v11838_v24  ;;  %vm10649_vm13 = vmpackc.low %vm401_vm11, %vm400_vm10  ;;  %vm407_vm2 = vcmp.eq.s32.totalorder %v375_v32, %v12027_v14  ;;  %vm261_vm3 = vcmp.eq.s32.totalorder %v234_v33, %v12007_v6  ;;  %vm262_vm4 = vcmp.eq.s32.totalorder %v234_v33, %v12037_v22  ;;  %v254_v39 = vrot.slane %v224_v38, %v12019_v11  ;;  %v516_v33 = vld [vmem:[#allocation2 + $0x40] sm:$0xff] }
  0x57   : > { %11032 = vmatprep.subr.bf16.mxu1 %v11835_v3  ;;  %v226_v40 = vcombine.high %v12072_v37, %v12072_v37  ;;  %vm10645_vm5 = vmpackc.low %vm260_vm15, %vm259_vm14  ;;  %vm410_vm6 = vcmp.eq.s32.totalorder %v379_v36, %v12024_v13  ;;  %vm411_vm7 = vcmp.eq.s32.totalorder %v379_v36, %v12027_v14  ;;  %v225_v46 = vcombine.high %v12052_v28, %v12052_v28 }
  0x58   : > { %vm10653_vm8 = vmpackc.low %vm407_vm2, %vm406_vm0  ;;  %vm271_vm10 = vcmp.eq.s32.totalorder %v254_v39, %v12007_v6  ;;  %vm272_vm15 = vcmp.eq.s32.totalorder %v254_v39, %v12037_v22  ;;  %v359_v47 = vrot.slane %v331_v44, %v12016_v9  ;;  %v238_v48 = vrot.slane %v223_v43, %v12019_v11  ;;  %v517_v39 = vld [vmem:[#allocation2 + $0x48] sm:$0xff]  ;;  %v519_v43 = vld [vmem:[#allocation2 + $0x58] sm:$0xff] }
  0x59   : > { %vm10651_vm9 = vmpackc.low %vm262_vm4, %vm261_vm3  ;;  %v258_v42 = vrot.slane %v226_v40, %v12019_v11  ;;  %vm408_vm3 = vcmp.eq.s32.totalorder %v379_v36, %v12007_v6  ;;  %vm409_vm4 = vcmp.eq.s32.totalorder %v379_v36, %v12037_v22  ;;  %v383_v50 = vrot.slane %v345_v45, %v12019_v11 }
  0x5a   : > { %vm10659_vm11 = vmpackc.low %vm411_vm7, %vm410_vm6  ;;  %v242_v52 = vrot.slane %v225_v46, %v12019_v11  ;;  %v387_v53 = vrot.slane %v359_v47, %v12019_v11  ;;  %v361_v54 = vcombine.high %v345_v45, %v345_v45  ;;  %v363_v55 = vcombine.high %v359_v47, %v359_v47 }
  0x5b   : > { %vm273_vm14 = vcmp.eq.s32.totalorder %v258_v42, %v12007_v6  ;;  %vm274_vm0 = vcmp.eq.s32.totalorder %v258_v42, %v12037_v22  ;;  %vm10661_vm7 = vmpackc.low %vm409_vm4, %vm408_vm3  ;;  %v246_v56 = vrot.slane %v12062_v34, %v12019_v11  ;;  %v250_v58 = vrot.slane %v12072_v37, %v12019_v11 }
  0x5c   : > { %11025 = vmatpush3.bf16.xpose.msk.msra.mxu0 %vm10643_vm12, %v11838_v24  ;;  %vm404_vm12 = vcmp.eq.s32.totalorder %v375_v32, %v12007_v6  ;;  %vm12123_vm6 = vmpackc.low %vm274_vm0, %vm273_vm14  ;;  %vm419_vm0 = vcmp.eq.s32.totalorder %v387_v53, %v12027_v14  ;;  %v391_v57 = vrot.slane %v361_v54, %v12019_v11  ;;  %v395_v59 = vrot.slane %v363_v55, %v12019_v11  ;;  %v521_v55 = vld [vmem:[#allocation2 + $0x68] sm:$0xff] }
  0x5d   : > { %11038 = vmatprep.subr.bf16.mxu0 %v11835_v3 }
  0x5e   : > { %11033 = vmatpush3.bf16.xpose.msk.msra.mxu1 %vm10649_vm13, %v11838_v24  ;;  %vm405_vm13 = vcmp.eq.s32.totalorder %v375_v32, %v12037_v22 }
  0x5f   : > { %11046 = vmatprep.subr.bf16.mxu1 %v11835_v3  ;;  %vm10655_vm2 = vmpackc.low %vm405_vm13, %vm404_vm12  ;;  %vm265_vm12 = vcmp.eq.s32.totalorder %v242_v52, %v12007_v6  ;;  %vm266_vm13 = vcmp.eq.s32.totalorder %v242_v52, %v12037_v22 }
  0x60   : > { %vm10663_vm3 = vmpackc.low %vm266_vm13, %vm265_vm12  ;;  %vm267_vm13 = vcmp.eq.s32.totalorder %v246_v56, %v12007_v6 }
  0x63   : > { %11027 = vmatmul.mubr.msk.bf16.vlgmr.msra.gmra.mxu0 %vm10645_vm5, %v11838_v24  ;;  %vm12116_vm5 = vmpackc.low %vm272_vm15, %vm271_vm10  ;;  %vm414_vm10 = vcmp.eq.s32.totalorder %v383_v50, %v12024_v13  ;;  %vm418_vm15 = vcmp.eq.s32.totalorder %v387_v53, %v12024_v13 }
  0x64   : > { %11039 = vmatpush3.bf16.xpose.msk.msra.mxu0 %vm10653_vm8, %v11838_v24  ;;  %11042 = vmatprep.mubr.msk.bf16.mxu0 %vm11837_vm1, %v11835_v3  ;;  %vm263_vm8 = vcmp.eq.s32.totalorder %v238_v48, %v12007_v6  ;;  %vm10671_vm4 = vmpackc.low %vm419_vm0, %vm418_vm15  ;;  %vm422_vm15 = vcmp.eq.s32.totalorder %v391_v57, %v12024_v13  ;;  %vm423_vm0 = vcmp.eq.s32.totalorder %v391_v57, %v12027_v14 }
  0x65   : > { %11035 = vmatmul.mubr.msk.bf16.vlgmr.msra.gmra.mxu1 %vm10651_vm9, %v11838_v24  ;;  %11040 = vmatprep.subr.bf16.mxu0 %v11835_v3  ;;  %vm264_vm9 = vcmp.eq.s32.totalorder %v238_v48, %v12037_v22 }
  0x66   : > { %11047 = vmatpush3.bf16.xpose.msk.msra.mxu1 %vm10659_vm11, %v11838_v24  ;;  %11050 = vmatprep.mubr.msk.bf16.mxu1 %vm11837_vm1, %v11835_v3  ;;  %vm415_vm11 = vcmp.eq.s32.totalorder %v383_v50, %v12027_v14  ;;  %vm10657_vm14 = vmpackc.low %vm264_vm9, %vm263_vm8  ;;  %vm413_vm8 = vcmp.eq.s32.totalorder %v383_v50, %v12037_v22  ;;  %vm416_vm9 = vcmp.eq.s32.totalorder %v387_v53, %v12007_v6 }
  0x67   : > { %11048 = vmatprep.subr.bf16.mxu1 %v11835_v3 }
  0x6c   : > { %11041 = vmatpush3.bf16.xpose.msk.msra.mxu0 %vm10655_vm2, %v11838_v24  ;;  %vm10665_vm2 = vmpackc.low %vm415_vm11, %vm414_vm10  ;;  %vm417_vm10 = vcmp.eq.s32.totalorder %v387_v53, %v12037_v22 }
  0x6d   : > { %11054 = vmatprep.subr.bf16.mxu0 %v11835_v3  ;;  %vm10673_vm12 = vmpackc.low %vm417_vm10, %vm416_vm9 }
  0x6e   : > { %11049 = vmatpush3.bf16.xpose.msk.msra.mxu1 %vm10661_vm7, %v11838_v24  ;;  %vm412_vm7 = vcmp.eq.s32.totalorder %v383_v50, %v12007_v6  ;;  %vm10677_vm9 = vmpackc.low %vm423_vm0, %vm422_vm15  ;;  %vm425_vm15 = vcmp.eq.s32.totalorder %v395_v59, %v12037_v22 }
  0x6f   : > { %11062 = vmatprep.subr.bf16.mxu1 %v11835_v3  ;;  %vm10667_vm11 = vmpackc.low %vm413_vm8, %vm412_vm7  ;;  %vm426_vm7 = vcmp.eq.s32.totalorder %v395_v59, %v12024_v13  ;;  %vm427_vm8 = vcmp.eq.s32.totalorder %v395_v59, %v12027_v14 }
  0x73   : > { %11043 = vmatmul.mubr.msk.bf16.vlgmr.msra.gmra.mxu0 %vm10657_vm14, %v11838_v24  ;;  %vm268_vm14 = vcmp.eq.s32.totalorder %v246_v56, %v12037_v22 }
  0x74   : > { %11055 = vmatpush3.bf16.xpose.msk.msra.mxu0 %vm10665_vm2, %v11838_v24  ;;  %11058 = vmatprep.mubr.msk.bf16.mxu0 %vm11837_vm1, %v11835_v3  ;;  %vm269_vm2 = vcmp.eq.s32.totalorder %v250_v58, %v12007_v6 }
  0x75   : > { %11051 = vmatmul.mubr.msk.bf16.vlgmr.msra.gmra.mxu1 %vm10663_vm3, %v11838_v24  ;;  %11056 = vmatprep.subr.bf16.mxu0 %v11835_v3  ;;  %vm270_vm3 = vcmp.eq.s32.totalorder %v250_v58, %v12037_v22 }
  0x76   : > { %11063 = vmatpush3.bf16.xpose.msk.msra.mxu1 %vm10671_vm4, %v11838_v24  ;;  %11066 = vmatprep.mubr.msk.bf16.mxu1 %vm11837_vm1, %v11835_v3  ;;  %vm10669_vm4 = vmpackc.low %vm268_vm14, %vm267_vm13  ;;  %vm421_vm13 = vcmp.eq.s32.totalorder %v391_v57, %v12037_v22  ;;  %vm424_vm14 = vcmp.eq.s32.totalorder %v395_v59, %v12007_v6  ;;  %v523_v59 = vld [vmem:[#allocation2 + $0x78] sm:$0xff] }
  0x77   : > { %11064 = vmatprep.subr.bf16.mxu1 %v11835_v3  ;;  %vm10675_vm10 = vmpackc.low %vm270_vm3, %vm269_vm2 }
  0x78   : > { %vm10685_vm2 = vmpackc.low %vm425_vm15, %vm424_vm14 }
  0x7c   : > { %11057 = vmatpush3.bf16.xpose.msk.msra.mxu0 %vm10667_vm11, %v11838_v24  ;;  %vm10683_vm11 = vmpackc.low %vm427_vm8, %vm426_vm7 }
  0x7d   : > { %11070 = vmatprep.subr.bf16.mxu0 %v11835_v3 }
  0x7e   : > { %11065 = vmatpush3.bf16.xpose.msk.msra.mxu1 %vm10673_vm12, %v11838_v24  ;;  %vm420_vm12 = vcmp.eq.s32.totalorder %v391_v57, %v12007_v6 }
  0x7f   : > { %11078 = vmatprep.subr.bf16.mxu1 %v11835_v3  ;;  %vm10679_vm0 = vmpackc.low %vm421_vm13, %vm420_vm12 }
  0x83   : > { %11059 = vmatmul.mubr.msk.bf16.vlgmr.msra.gmra.mxu0 %vm10669_vm4, %v11838_v24 }
  0x84   : > { %11071 = vmatpush3.bf16.xpose.msk.msra.mxu0 %vm10677_vm9, %v11838_v24  ;;  %11074 = vmatprep.mubr.msk.bf16.mxu0 %vm11837_vm1, %v11835_v3 }
  0x85   : > { %11067 = vmatmul.mubr.msk.bf16.vlgmr.msra.gmra.mxu1 %vm10675_vm10, %v11838_v24  ;;  %11072 = vmatprep.subr.bf16.mxu0 %v11835_v3 }
  0x86   : > { %11079 = vmatpush3.bf16.xpose.msk.msra.mxu1 %vm10683_vm11, %v11838_v24  ;;  %11082 = vmatprep.mubr.msk.bf16.mxu1 %vm11837_vm1, %v11835_v3  ;;  %vm868_vm1 = vcmask 261120  }
  0x87   : > { %11080 = vmatprep.subr.bf16.mxu1 %v11835_v3  ;;  %v509_v3 = vld [vmem:[#allocation2 + $0x8] sm:$0xff] }
  0x8c   : > { %11073 = vmatpush3.bf16.xpose.msk.msra.mxu0 %vm10679_vm0, %v11838_v24 }
  0x8e   : > { %11081 = vmatpush3.bf16.xpose.msk.msra.mxu1 %vm10685_vm2, %v11838_v24 }
  0x93   : > { %11075 = vmatmul.mubr.msk.bf16.vlgmr.msra.gmra.mxu0 %vm12116_vm5, %v11838_v24 }
  0x95   : > { %11083 = vmatmul.mubr.msk.bf16.vlgmr.msra.gmra.mxu1 %vm12123_vm6, %v11838_v24 }
 0x123   : > { %v558_v61 = vpop.f32.mrf.mxu0 }
 0x124   : > { %v852_v63 = vadd.f32 %v558_v61, %v508_v60 }
 0x125   : > { %v11028_v0 = vpop.f32.mrf.mxu0  ;;  %v599_v1 = vpop.f32.mrf.mxu1 }
 0x126   : > { %869 = vst.msk [vmem:[#allocation2] sm:$0xff] %vm868_vm1, %v852_v63  ;;  %v854_v4 = vadd.f32 %v599_v1, %v510_v62 }
 0x127   : > { %v561_v5 = vpop.f32.mrf.mxu0  ;;  %v11036_v7 = vpop.f32.mrf.mxu1 }
 0x128   : > { %871 = vst.msk [vmem:[#allocation2 + $0x10] sm:$0xff] %vm868_vm1, %v854_v4  ;;  %v853_v10 = vadd.f32 %v561_v5, %v509_v3 }
 0x129   : > { %v11029_v12 = vpop.f32.mrf.mxu0  ;;  %v602_v13 = vpop.f32.mrf.mxu1 }
 0x12a   : > { %870 = vst.msk [vmem:[#allocation2 + $0x8] sm:$0xff] %vm868_vm1, %v853_v10  ;;  %v855_v14 = vadd.f32 %v602_v13, %v511_v8 }
 0x12b   : > { %v11037_v15 = vpop.f32.mrf.mxu1 }
 0x12c   : > { %872 = vst.msk [vmem:[#allocation2 + $0x18] sm:$0xff] %vm868_vm1, %v855_v14 }
 0x133   : > { %v640_v17 = vpop.f32.mrf.mxu0 }
 0x134   : > { %v856_v19 = vadd.f32 %v640_v17, %v512_v16 }
 0x135   : > { %v11044_v20 = vpop.f32.mrf.mxu0  ;;  %v681_v21 = vpop.f32.mrf.mxu1 }
 0x136   : > { %873 = vst.msk [vmem:[#allocation2 + $0x20] sm:$0xff] %vm868_vm1, %v856_v19  ;;  %v858_v24 = vadd.f32 %v681_v21, %v514_v18 }
 0x137   : > { %v643_v25 = vpop.f32.mrf.mxu0  ;;  %v11052_v26 = vpop.f32.mrf.mxu1 }
 0x138   : > { %875 = vst.msk [vmem:[#allocation2 + $0x30] sm:$0xff] %vm868_vm1, %v858_v24  ;;  %v857_v28 = vadd.f32 %v643_v25, %v513_v23 }
 0x139   : > { %v11045_v29 = vpop.f32.mrf.mxu0  ;;  %v684_v30 = vpop.f32.mrf.mxu1 }
 0x13a   : > { %874 = vst.msk [vmem:[#allocation2 + $0x28] sm:$0xff] %vm868_vm1, %v857_v28  ;;  %v859_v31 = vadd.f32 %v684_v30, %v515_v27 }
 0x13b   : > { %v11053_v32 = vpop.f32.mrf.mxu1 }
 0x13c   : > { %876 = vst.msk [vmem:[#allocation2 + $0x38] sm:$0xff] %vm868_vm1, %v859_v31 }
 0x143   : > { %v722_v34 = vpop.f32.mrf.mxu0 }
 0x144   : > { %v860_v36 = vadd.f32 %v722_v34, %v516_v33 }
 0x145   : > { %v11060_v37 = vpop.f32.mrf.mxu0  ;;  %v763_v38 = vpop.f32.mrf.mxu1 }
 0x146   : > { %877 = vst.msk [vmem:[#allocation2 + $0x40] sm:$0xff] %vm868_vm1, %v860_v36  ;;  %v862_v40 = vadd.f32 %v763_v38, %v518_v35 }
 0x147   : > { %v725_v41 = vpop.f32.mrf.mxu0  ;;  %v11068_v42 = vpop.f32.mrf.mxu1 }
 0x148   : > { %879 = vst.msk [vmem:[#allocation2 + $0x50] sm:$0xff] %vm868_vm1, %v862_v40  ;;  %v861_v44 = vadd.f32 %v725_v41, %v517_v39 }
 0x149   : > { %v11061_v45 = vpop.f32.mrf.mxu0  ;;  %v766_v46 = vpop.f32.mrf.mxu1 }
 0x14a   : > { %878 = vst.msk [vmem:[#allocation2 + $0x48] sm:$0xff] %vm868_vm1, %v861_v44  ;;  %v863_v47 = vadd.f32 %v766_v46, %v519_v43 }
 0x14b   : > { %v11069_v48 = vpop.f32.mrf.mxu1 }
 0x14c   : > { %880 = vst.msk [vmem:[#allocation2 + $0x58] sm:$0xff] %vm868_vm1, %v863_v47 }
 0x153   : > { %v804_v50 = vpop.f32.mrf.mxu0 }
 0x154   : > { %v864_v52 = vadd.f32 %v804_v50, %v520_v49 }
 0x155   : > { %v11076_v53 = vpop.f32.mrf.mxu0  ;;  %v845_v54 = vpop.f32.mrf.mxu1 }
 0x156   : > { %881 = vst.msk [vmem:[#allocation2 + $0x60] sm:$0xff] %vm868_vm1, %v864_v52  ;;  %v866_v56 = vadd.f32 %v845_v54, %v522_v51 }
 0x157   : > { %v807_v57 = vpop.f32.mrf.mxu0  ;;  %v11084_v58 = vpop.f32.mrf.mxu1 }
 0x158   : > { %883 = vst.msk [vmem:[#allocation2 + $0x70] sm:$0xff] %vm868_vm1, %v866_v56  ;;  %v865_v60 = vadd.f32 %v807_v57, %v521_v55  ;;  %888 = sbr.rel (%p10689_p7) target bundleno = 1155 (0x483), region = 36 }
 0x159   : > { %v11077_v61 = vpop.f32.mrf.mxu0  ;;  %v848_v62 = vpop.f32.mrf.mxu1 }
 0x15a   : > { %882 = vst.msk [vmem:[#allocation2 + $0x68] sm:$0xff] %vm868_vm1, %v865_v60  ;;  %v867_v63 = vadd.f32 %v848_v62, %v523_v59 }
 0x15b   : > { %v11085_v0 = vpop.f32.mrf.mxu1 }
 0x15c   : > { %884 = vst.msk [vmem:[#allocation2 + $0x78] sm:$0xff] %vm868_vm1, %v867_v63 }
 0x15d   : > { %v897_v1 = vld [vmem:[#allocation2 + $0x1] sm:$0x1]  ;;  %v898_v3 = vld [vmem:[#allocation2 + $0x11] sm:$0x1]  ;;  %v14195_v4 = vmov 0.0   ;;  %vm914_vm5 = vcmask 1041409  }
 0x15e   : > { %11086 = vmatprep.subr.mxu0 %v14195_v4  ;;  %v899_v5 = vld [vmem:[#allocation2 + $0x21] sm:$0x1]  ;;  %v900_v7 = vld [vmem:[#allocation2 + $0x31] sm:$0x1]  ;;  %11091 = vmatprep.subr.mxu1 %v14195_v4  ;;  %v913_v14 = vrot.slane %v898_v3, 7  ;;  %vm14283_vm6 = vcmask 1042434  }
 0x15f   : > { %v901_v8 = vld [vmem:[#allocation2 + $0x41] sm:$0x1]  ;;  %v902_v10 = vld [vmem:[#allocation2 + $0x51] sm:$0x1]  ;;  %9312 = vadd.xlane.f32.xlu0 %v14195_v4  ;;  %9309 = vadd.xlane.f32.xlu1 %v14195_v4  ;;  %v916_v15 = vrot.slane %v899_v5, 6  ;;  %v919_v16 = vrot.slane %v900_v7, 5 }
 0x160   : > { %v903_v12 = vld [vmem:[#allocation2 + $0x61] sm:$0x1]  ;;  %v904_v13 = vld [vmem:[#allocation2 + $0x71] sm:$0x1]  ;;  %vm14282_vm3 = vcmask 1043459   ;;  %v922_v17 = vrot.slane %v901_v8, 4  ;;  %v915_v20 = vsel %vm914_vm5, %v913_v14, %v897_v1 }
 0x161   : > { %vm14281_vm4 = vcmask 1044484   ;;  %v925_v18 = vrot.slane %v902_v10, 3  ;;  %v890_v19 = vld [vmem:[#allocation2 + $0x10] sm:$0x1]  ;;  %vm14280_vm7 = vcmask 1045509   ;;  %v928_v21 = vrot.slane %v903_v12, 2 }
 0x162   : > { %vm14279_vm8 = vcmask 1046534   ;;  %v889_v23 = vld [vmem:[#allocation2] sm:$0x1]  ;;  %v918_v25 = vsel %vm14283_vm6, %v916_v15, %v915_v20  ;;  %v931_v26 = vrot.slane %v904_v13, 1  ;;  %vm14275_vm9 = vcmask 1047559  }
 0x163   : > { %v891_v24 = vld [vmem:[#allocation2 + $0x20] sm:$0x1]  ;;  %v892_v27 = vld [vmem:[#allocation2 + $0x30] sm:$0x1]  ;;  %9318 = vadd.xlane.f32.xlu0 %v14195_v4  ;;  %9315 = vadd.xlane.f32.xlu1 %v14195_v4  ;;  %v921_v28 = vsel %vm14282_vm3, %v919_v16, %v918_v25  ;;  %vm11840_vm10 = vmmov 0   ;;  %v1390_v33 = vrot.slane %v890_v19, 7 }
 0x164   : > { %11088 = vmatprep.mubr.msk.f32.mxu0 %vm11840_vm10, %v14195_v4  ;;  %11093 = vmatprep.mubr.msk.f32.mxu1 %vm11840_vm10, %v14195_v4  ;;  %v893_v29 = vld [vmem:[#allocation2 + $0x40] sm:$0x1]  ;;  %v894_v30 = vld [vmem:[#allocation2 + $0x50] sm:$0x1]  ;;  %v924_v32 = vsel %vm14281_vm4, %v922_v17, %v921_v28  ;;  %v1392_v34 = vrot.slane %v891_v24, 6  ;;  %v1394_v35 = vrot.slane %v892_v27, 5 }
 0x165   : > { %v895_v31 = vld [vmem:[#allocation2 + $0x60] sm:$0x1]  ;;  %v927_v36 = vsel %vm14280_vm7, %v925_v18, %v924_v32  ;;  %v896_v37 = vld [vmem:[#allocation2 + $0x70] sm:$0x1]  ;;  %v1396_v38 = vrot.slane %v893_v29, 4  ;;  %v1398_v39 = vrot.slane %v894_v30, 3  ;;  %v1391_v42 = vsel %vm914_vm5, %v1390_v33, %v889_v23 }
 0x166   : > { %v1400_v40 = vrot.slane %v895_v31, 2  ;;  %v930_v41 = vsel %vm14279_vm8, %v928_v21, %v927_v36  ;;  %v1852_v43 = vld [vmem:[#allocation2 + $0x2] sm:$0x1]  ;;  %v1853_v44 = vld [vmem:[#allocation2 + $0x12] sm:$0x1]  ;;  %v1393_v47 = vsel %vm14283_vm6, %v1392_v34, %v1391_v42  ;;  %v1402_v53 = vrot.slane %v896_v37, 1 }
 0x167   : > { %v1854_v45 = vld [vmem:[#allocation2 + $0x22] sm:$0x1]  ;;  %9324 = vadd.xlane.f32.xlu0 %v14195_v4  ;;  %9321 = vadd.xlane.f32.xlu1 %v14195_v4  ;;  %v933_v46 = vsel %vm14275_vm9, %v931_v26, %v930_v41  ;;  %v1855_v48 = vld [vmem:[#allocation2 + $0x32] sm:$0x1]  ;;  %v1395_v52 = vsel %vm14282_vm3, %v1394_v35, %v1393_v47  ;;  %v1868_v55 = vrot.slane %v1853_v44, 7  ;;  %vm8562_vm12 = vcmask 64512  }
 0x168   : > { %v1856_v49 = vld [vmem:[#allocation2 + $0x42] sm:$0x1]  ;;  %v1857_v50 = vld [vmem:[#allocation2 + $0x52] sm:$0x1]  ;;  %v934_v51 = vsel %vm868_vm1, %v933_v46, 0  ;;  %v1397_v57 = vsel %vm14281_vm4, %v1396_v38, %v1395_v52  ;;  %v1870_v59 = vrot.slane %v1854_v45, 6 }
 0x169   : > { %v1858_v54 = vld [vmem:[#allocation2 + $0x62] sm:$0x1]  ;;  %v12235_v56 = vand.u32 4294901760, %v934_v51  ;;  %v1859_v58 = vld [vmem:[#allocation2 + $0x72] sm:$0x1]  ;;  %v1872_v60 = vrot.slane %v1855_v48, 5  ;;  %v1399_v61 = vsel %vm14280_vm7, %v1398_v39, %v1397_v57  ;;  %v1869_v62 = vsel %vm914_vm5, %v1868_v55, %v1852_v43 }
 0x16a   : > { %v1874_v63 = vrot.slane %v1856_v49, 4  ;;  %v1876_v0 = vrot.slane %v1857_v50, 3  ;;  %v2332_v1 = vld [vmem:[#allocation2 + $0x13] sm:$0x1]  ;;  %v2333_v3 = vld [vmem:[#allocation2 + $0x23] sm:$0x1]  ;;  %v1401_v7 = vsel %vm14279_vm8, %v1400_v40, %v1399_v61  ;;  %v1871_v8 = vsel %vm14283_vm6, %v1870_v59, %v1869_v62 }
 0x16b   : > { %9330 = vadd.xlane.f32.xlu0 %v14195_v4  ;;  %9327 = vadd.xlane.f32.xlu1 %v14195_v4  ;;  %v1003_v5 = vsub.f32 %v934_v51, %v12235_v56  ;;  %v1878_v10 = vrot.slane %v1858_v54, 2  ;;  %v2331_v12 = vld [vmem:[#allocation2 + $0x3] sm:$0x1]  ;;  %v2334_v13 = vld [vmem:[#allocation2 + $0x33] sm:$0x1]  ;;  %v1403_v14 = vsel %vm14275_vm9, %v1402_v53, %v1401_v7  ;;  %v1873_v15 = vsel %vm14282_vm3, %v1872_v60, %v1871_v8 }
 0x16c   : > { %11087 = vmatpush3.xpose.msra.mxu0 %v12235_v56  ;;  %v1880_v16 = vrot.slane %v1859_v58, 1  ;;  %v2347_v17 = vrot.slane %v2332_v1, 7  ;;  %v1404_v19 = vsel %vm868_vm1, %v1403_v14, 0  ;;  %v1875_v20 = vsel %vm14281_vm4, %v1874_v63, %v1873_v15  ;;  %v2335_v21 = vld [vmem:[#allocation2 + $0x43] sm:$0x1] }
 0x16d   : > { %11096 = vmatprep.subr.mxu0 %v14195_v4  ;;  %v1004_v18 = vand.u32 4294901760, %v1003_v5  ;;  %v2349_v23 = vrot.slane %v2333_v3, 6  ;;  %v12251_v24 = vand.u32 4294901760, %v1404_v19  ;;  %v1877_v25 = vsel %vm14280_vm7, %v1876_v0, %v1875_v20  ;;  %v2336_v32 = vld [vmem:[#allocation2 + $0x53] sm:$0x1] }
 0x16e   : > { %v2348_v26 = vsel %vm914_vm5, %v2347_v17, %v2331_v12  ;;  %v2351_v27 = vrot.slane %v2334_v13, 5  ;;  %v1879_v29 = vsel %vm14279_vm8, %v1878_v10, %v1877_v25  ;;  %v2353_v33 = vrot.slane %v2335_v21, 4  ;;  %v2811_v34 = vld [vmem:[#allocation2 + $0x14] sm:$0x1]  ;;  %v2337_v38 = vld [vmem:[#allocation2 + $0x63] sm:$0x1] }
 0x16f   : > { %9336 = vadd.xlane.f32.xlu0 %v14195_v4  ;;  %9333 = vadd.xlane.f32.xlu1 %v14195_v4  ;;  %v1005_v28 = vsub.f32 %v1003_v5, %v1004_v18  ;;  %v2350_v30 = vsel %vm14283_vm6, %v2349_v23, %v2348_v26  ;;  %v12260_v31 = vsub.f32 %v1404_v19, %v12251_v24  ;;  %v2355_v40 = vrot.slane %v2336_v32, 3  ;;  %v2812_v41 = vld [vmem:[#allocation2 + $0x24] sm:$0x1]  ;;  %v2338_v46 = vld [vmem:[#allocation2 + $0x73] sm:$0x1] }
 0x170   : > { %v1881_v36 = vsel %vm14275_vm9, %v1880_v16, %v1879_v29  ;;  %v2352_v37 = vsel %vm14282_vm3, %v2351_v27, %v2350_v30  ;;  %v2826_v42 = vrot.slane %v2811_v34, 7  ;;  %v2810_v45 = vld [vmem:[#allocation2 + $0x4] sm:$0x1]  ;;  %v2357_v47 = vrot.slane %v2337_v38, 2  ;;  %v2813_v48 = vld [vmem:[#allocation2 + $0x34] sm:$0x1] }
 0x171   : > { %v1006_v35 = vand.u32 4294901760, %v1005_v28  ;;  %v12267_v39 = vand.u32 4294901760, %v12260_v31  ;;  %v1882_v43 = vsel %vm868_vm1, %v1881_v36, 0  ;;  %v2354_v44 = vsel %vm14281_vm4, %v2353_v33, %v2352_v37  ;;  %v2814_v55 = vld [vmem:[#allocation2 + $0x44] sm:$0x1] }
 0x172   : > { %v2828_v49 = vrot.slane %v2812_v41, 6  ;;  %v12280_v51 = vand.u32 4294901760, %v1882_v43  ;;  %v2356_v52 = vsel %vm14280_vm7, %v2355_v40, %v2354_v44  ;;  %v2827_v53 = vsel %vm914_vm5, %v2826_v42, %v2810_v45  ;;  %v2815_v62 = vld [vmem:[#allocation2 + $0x54] sm:$0x1]  ;;  %v3290_v0 = vld [vmem:[#allocation2 + $0x15] sm:$0x1] }
 0x173   : > { %9342 = vadd.xlane.f32.xlu0 %v14195_v4  ;;  %9339 = vadd.xlane.f32.xlu1 %v14195_v4  ;;  %v1475_v50 = vsub.f32 %v12260_v31, %v12267_v39  ;;  %v2359_v54 = vrot.slane %v2338_v46, 1  ;;  %v2830_v57 = vrot.slane %v2813_v48, 5  ;;  %v2358_v58 = vsel %vm14279_vm8, %v2357_v47, %v2356_v52  ;;  %v3291_v10 = vld [vmem:[#allocation2 + $0x25] sm:$0x1]  ;;  %v2817_v15 = vld [vmem:[#allocation2 + $0x74] sm:$0x1] }
 0x174   : > { %11089 = vmatmul.mubr.f32.vlgmr.msra.gmra.mxu0 %v1006_v35  ;;  %11092 = vmatpush3.xpose.msra.mxu1 %v1006_v35  ;;  %v2829_v59 = vsel %vm14283_vm6, %v2828_v49, %v2827_v53  ;;  %v12295_v61 = vsub.f32 %v1882_v43, %v12280_v51  ;;  %v2832_v63 = vrot.slane %v2814_v55, 4  ;;  %v2834_v8 = vrot.slane %v2815_v62, 3  ;;  %v3289_v14 = vld [vmem:[#allocation2 + $0x5] sm:$0x1]  ;;  %v3292_v17 = vld [vmem:[#allocation2 + $0x35] sm:$0x1] }
 0x175   : > { %11097 = vmatpush3.xpose.msra.mxu0 %v1003_v5  ;;  %11098 = vmatprep.mubr.msk.f32.mxu0 %vm11840_vm10, %v14195_v4  ;;  %v1476_v60 = vand.u32 4294901760, %v1475_v50  ;;  %v2360_v1 = vsel %vm14275_vm9, %v2359_v54, %v2358_v58  ;;  %v2831_v3 = vsel %vm14282_vm3, %v2830_v57, %v2829_v59  ;;  %v3305_v12 = vrot.slane %v3290_v0, 7  ;;  %v3293_v26 = vld [vmem:[#allocation2 + $0x45] sm:$0x1]  ;;  %v3294_v32 = vld [vmem:[#allocation2 + $0x55] sm:$0x1] }
 0x176   : > { %11101 = vmatprep.subr.mxu1 %v14195_v4  ;;  %11106 = vmatprep.subr.mxu0 %v14195_v4  ;;  %v12308_v7 = vand.u32 4294901760, %v12295_v61  ;;  %v2361_v13 = vsel %vm868_vm1, %v2360_v1, 0  ;;  %v2838_v25 = vrot.slane %v2817_v15, 1  ;;  %v3309_v27 = vrot.slane %v3292_v17, 5  ;;  %v3769_v34 = vld [vmem:[#allocation2 + $0x16] sm:$0x1] }
 0x177   : > { %11094 = vmatmul.mubr.f32.vlgmr.msra.gmra.mxu1 %v12235_v56  ;;  %9348 = vadd.xlane.f32.xlu0 %v14195_v4  ;;  %v12324_v20 = vand.u32 4294901760, %v2361_v13  ;;  %v3306_v23 = vsel %vm914_vm5, %v3305_v12, %v3289_v14  ;;  %v3311_v33 = vrot.slane %v3293_v26, 4  ;;  %v3295_v37 = vld [vmem:[#allocation2 + $0x65] sm:$0x1]  ;;  %v3770_v40 = vld [vmem:[#allocation2 + $0x26] sm:$0x1] }
 0x178   : > { %11099 = vmatmul.mubr.f32.vlgmr.msra.gmra.mxu0 %v1003_v5  ;;  %11102 = vmatpush3.xpose.msra.mxu1 %v12235_v56  ;;  %v2816_v5 = vld [vmem:[#allocation2 + $0x64] sm:$0x1]  ;;  %v1953_v19 = vsub.f32 %v12295_v61, %v12308_v7  ;;  %v3784_v41 = vrot.slane %v3769_v34, 7  ;;  %v3768_v43 = vld [vmem:[#allocation2 + $0x6] sm:$0x1]  ;;  %v3315_v45 = vrot.slane %v3295_v37, 2 }
 0x179   : > { %11107 = vmatpush3.xpose.msra.mxu0 %v1004_v18  ;;  %11103 = vmatprep.mubr.msk.f32.mxu1 %vm11840_vm10, %v14195_v4  ;;  %v2836_v16 = vrot.slane %v2816_v5, 2  ;;  %v3296_v44 = vld [vmem:[#allocation2 + $0x75] sm:$0x1]  ;;  %v3771_v46 = vld [vmem:[#allocation2 + $0x36] sm:$0x1]  ;;  %v3786_v47 = vrot.slane %v3770_v40, 6 }
 0x17a   : > { %11108 = vmatprep.mubr.msk.f32.mxu0 %vm11840_vm10, %v14195_v4  ;;  %11111 = vmatprep.subr.mxu1 %v14195_v4  ;;  %v1954_v30 = vand.u32 4294901760, %v1953_v19  ;;  %v3785_v52 = vsel %vm914_vm5, %v3784_v41, %v3768_v43  ;;  %v3317_v53 = vrot.slane %v3296_v44, 1  ;;  %v3772_v54 = vld [vmem:[#allocation2 + $0x46] sm:$0x1]  ;;  %v3788_v55 = vrot.slane %v3771_v46, 5 }
 0x17b   : > { %11104 = vmatmul.mubr.f32.vlgmr.msra.gmra.mxu1 %v1004_v18  ;;  %11116 = vmatprep.subr.mxu0 %v14195_v4  ;;  %v3307_v18 = vrot.slane %v3291_v10, 6  ;;  %v3787_v58 = vsel %vm14283_vm6, %v3786_v47, %v3785_v52  ;;  %v3790_v62 = vrot.slane %v3772_v54, 4  ;;  %v4250_v15 = vld [vmem:[#allocation2 + $0x37] sm:$0x1]  ;;  %v4729_v44 = vld [vmem:[#allocation2 + $0x38] sm:$0x1] }
 0x17c   : > { %11109 = vmatmul.mubr.f32.vlgmr.msra.gmra.mxu0 %v12235_v56  ;;  %11112 = vmatpush3.xpose.msra.mxu1 %v12235_v56  ;;  %v3789_v1 = vsel %vm14282_vm3, %v3788_v55, %v3787_v58  ;;  %v4267_v26 = vrot.slane %v4250_v15, 5  ;;  %v4746_v54 = vrot.slane %v4729_v44, 5 }
 0x17d   : > { %11117 = vmatpush3.xpose.msra.mxu0 %v12251_v24  ;;  %11113 = vmatprep.mubr.msk.f32.mxu1 %vm11840_vm10, %v14195_v4  ;;  %v3308_v29 = vsel %vm14283_vm6, %v3307_v18, %v3306_v23 }
 0x17e   : > { %11118 = vmatprep.mubr.msk.f32.mxu0 %vm11840_vm10, %v14195_v4  ;;  %11121 = vmatprep.subr.mxu1 %v14195_v4  ;;  %v3310_v36 = vsel %vm14282_vm3, %v3309_v27, %v3308_v29 }
 0x17f   : > { %11114 = vmatmul.mubr.f32.vlgmr.msra.gmra.mxu1 %v12235_v56  ;;  %11126 = vmatprep.subr.mxu0 %v14195_v4  ;;  %v2833_v56 = vsel %vm14281_vm4, %v2832_v63, %v2831_v3  ;;  %v4248_v63 = vld [vmem:[#allocation2 + $0x17] sm:$0x1]  ;;  %v3774_v3 = vld [vmem:[#allocation2 + $0x66] sm:$0x1] }
 0x180   : > { %11119 = vmatmul.mubr.f32.vlgmr.msra.gmra.mxu0 %v1476_v60  ;;  %11122 = vmatpush3.xpose.msra.mxu1 %v1476_v60  ;;  %v2835_v21 = vsel %vm14280_vm7, %v2834_v8, %v2833_v56  ;;  %v4249_v8 = vld [vmem:[#allocation2 + $0x27] sm:$0x1]  ;;  %v4263_v10 = vrot.slane %v4248_v63, 7  ;;  %v3775_v56 = vld [vmem:[#allocation2 + $0x76] sm:$0x1]  ;;  %v3794_v14 = vrot.slane %v3774_v3, 2 }
 0x181   : > { %11127 = vmatpush3.xpose.msra.mxu0 %v12260_v31  ;;  %11123 = vmatprep.mubr.msk.f32.mxu1 %vm11840_vm10, %v14195_v4  ;;  %v2837_v28 = vsel %vm14279_vm8, %v2836_v16, %v2835_v21  ;;  %v4265_v16 = vrot.slane %v4249_v8, 6  ;;  %v3796_v23 = vrot.slane %v3775_v56, 1  ;;  %v5208_v56 = vld [vmem:[#allocation2 + $0x39] sm:$0x1] }
 0x182   : > { %11128 = vmatprep.mubr.msk.f32.mxu0 %vm11840_vm10, %v14195_v4  ;;  %11131 = vmatprep.subr.mxu1 %v14195_v4  ;;  %v2839_v35 = vsel %vm14275_vm9, %v2838_v25, %v2837_v28  ;;  %v4251_v25 = vld [vmem:[#allocation2 + $0x47] sm:$0x1] }
 0x183   : > { %11124 = vmatmul.mubr.f32.vlgmr.msra.gmra.mxu1 %v12251_v24  ;;  %11136 = vmatprep.subr.mxu0 %v14195_v4  ;;  %v2840_v42 = vsel %vm868_vm1, %v2839_v35, 0 }
 0x184   : > { %11129 = vmatmul.mubr.f32.vlgmr.msra.gmra.mxu0 %v12260_v31  ;;  %11132 = vmatpush3.xpose.msra.mxu1 %v12251_v24  ;;  %v12341_v31 = vsub.f32 %v2361_v13, %v12324_v20  ;;  %v12370_v49 = vand.u32 4294901760, %v2840_v42  ;;  %v4247_v13 = vld [vmem:[#allocation2 + $0x7] sm:$0x1] }
 0x185   : > { %11137 = vmatpush3.xpose.msra.mxu0 %v12267_v39  ;;  %11133 = vmatprep.mubr.msk.f32.mxu1 %vm11840_vm10, %v14195_v4  ;;  %v4264_v21 = vsel %vm914_vm5, %v4263_v10, %v4247_v13 }
 0x186   : > { %11138 = vmatprep.mubr.msk.f32.mxu0 %vm11840_vm10, %v14195_v4  ;;  %11141 = vmatprep.subr.mxu1 %v14195_v4  ;;  %v12354_v38 = vand.u32 4294901760, %v12341_v31  ;;  %v12387_v60 = vsub.f32 %v2840_v42, %v12370_v49  ;;  %v4266_v28 = vsel %vm14283_vm6, %v4265_v16, %v4264_v21  ;;  %v4726_v42 = vld [vmem:[#allocation2 + $0x8] sm:$0x1] }
 0x187   : > { %11134 = vmatmul.mubr.f32.vlgmr.msra.gmra.mxu1 %v12267_v39  ;;  %11146 = vmatprep.subr.mxu0 %v14195_v4  ;;  %v3313_v39 = vrot.slane %v3294_v32, 3  ;;  %v4269_v32 = vrot.slane %v4251_v25, 4  ;;  %v4268_v35 = vsel %vm14282_vm3, %v4267_v26, %v4266_v28  ;;  %v5225_v25 = vrot.slane %v5208_v56, 5 }
 0x188   : > { %11139 = vmatmul.mubr.f32.vlgmr.msra.gmra.mxu0 %v12251_v24  ;;  %11142 = vmatpush3.xpose.msra.mxu1 %v12251_v24  ;;  %v2432_v48 = vsub.f32 %v12341_v31, %v12354_v38  ;;  %v12400_v5 = vand.u32 4294901760, %v12387_v60 }
 0x189   : > { %11147 = vmatpush3.xpose.msra.mxu0 %v12280_v51  ;;  %11143 = vmatprep.mubr.msk.f32.mxu1 %vm11840_vm10, %v14195_v4 }
 0x18a   : > { %11148 = vmatprep.mubr.msk.f32.mxu0 %vm11840_vm10, %v14195_v4  ;;  %11151 = vmatprep.subr.mxu1 %v14195_v4  ;;  %v2433_v59 = vand.u32 4294901760, %v2432_v48  ;;  %v2911_v17 = vsub.f32 %v12387_v60, %v12400_v5 }
 0x18b   : > { %11144 = vmatmul.mubr.f32.vlgmr.msra.gmra.mxu1 %v12251_v24  ;;  %11156 = vmatprep.subr.mxu0 %v14195_v4  ;;  %v3312_v24 = vsel %vm14281_vm4, %v3311_v33, %v3310_v36  ;;  %v4727_v33 = vld [vmem:[#allocation2 + $0x18] sm:$0x1]  ;;  %v4253_v36 = vld [vmem:[#allocation2 + $0x67] sm:$0x1] }
 0x18c   : > { %11149 = vmatmul.mubr.f32.vlgmr.msra.gmra.mxu0 %v1954_v30  ;;  %11152 = vmatpush3.xpose.msra.mxu1 %v1954_v30  ;;  %v3314_v50 = vsel %vm14280_vm7, %v3313_v39, %v3312_v24  ;;  %v2912_v29 = vand.u32 4294901760, %v2911_v17  ;;  %v4728_v39 = vld [vmem:[#allocation2 + $0x28] sm:$0x1]  ;;  %v4742_v40 = vrot.slane %v4727_v33, 7  ;;  %v4254_v24 = vld [vmem:[#allocation2 + $0x77] sm:$0x1] }
 0x18d   : > { %11157 = vmatpush3.xpose.msra.mxu0 %v12295_v61  ;;  %11153 = vmatprep.mubr.msk.f32.mxu1 %vm11840_vm10, %v14195_v4  ;;  %v3316_v57 = vsel %vm14279_vm8, %v3315_v45, %v3314_v50  ;;  %v4273_v43 = vrot.slane %v4253_v36, 2  ;;  %v4744_v45 = vrot.slane %v4728_v39, 6  ;;  %v4275_v52 = vrot.slane %v4254_v24, 1  ;;  %v5687_v24 = vld [vmem:[#allocation2 + $0x3a] sm:$0x1] }
 0x18e   : > { %11158 = vmatprep.mubr.msk.f32.mxu0 %vm11840_vm10, %v14195_v4  ;;  %11161 = vmatprep.subr.mxu1 %v14195_v4  ;;  %v3318_v0 = vsel %vm14275_vm9, %v3317_v53, %v3316_v57  ;;  %v4743_v50 = vsel %vm914_vm5, %v4742_v40, %v4726_v42  ;;  %v4730_v53 = vld [vmem:[#allocation2 + $0x48] sm:$0x1] }
 0x18f   : > { %11154 = vmatmul.mubr.f32.vlgmr.msra.gmra.mxu1 %v12280_v51  ;;  %11166 = vmatprep.subr.mxu0 %v14195_v4  ;;  %v3319_v12 = vsel %vm868_vm1, %v3318_v0, 0  ;;  %v4745_v57 = vsel %vm14283_vm6, %v4744_v45, %v4743_v50 }
 0x190   : > { %11159 = vmatmul.mubr.f32.vlgmr.msra.gmra.mxu0 %v12295_v61  ;;  %11162 = vmatpush3.xpose.msra.mxu1 %v12280_v51  ;;  %v3773_v61 = vld [vmem:[#allocation2 + $0x56] sm:$0x1]  ;;  %v12416_v18 = vand.u32 4294901760, %v3319_v12  ;;  %v4747_v0 = vsel %vm14282_vm3, %v4746_v54, %v4745_v57 }
 0x191   : > { %11167 = vmatpush3.xpose.msra.mxu0 %v12308_v7  ;;  %11163 = vmatprep.mubr.msk.f32.mxu1 %vm11840_vm10, %v14195_v4 }
 0x192   : > { %11168 = vmatprep.mubr.msk.f32.mxu0 %vm11840_vm10, %v14195_v4  ;;  %11171 = vmatprep.subr.mxu1 %v14195_v4  ;;  %v12433_v30 = vsub.f32 %v3319_v12, %v12416_v18  ;;  %v5205_v12 = vld [vmem:[#allocation2 + $0x9] sm:$0x1] }
 0x193   : > { %11164 = vmatmul.mubr.f32.vlgmr.msra.gmra.mxu1 %v12308_v7  ;;  %11176 = vmatprep.subr.mxu0 %v14195_v4  ;;  %v3792_v7 = vrot.slane %v3773_v61, 3  ;;  %v4748_v61 = vrot.slane %v4730_v53, 4  ;;  %v5704_v53 = vrot.slane %v5687_v24, 5 }
 0x194   : > { %11169 = vmatmul.mubr.f32.vlgmr.msra.gmra.mxu0 %v12280_v51  ;;  %11172 = vmatpush3.xpose.msra.mxu1 %v12280_v51  ;;  %v12446_v37 = vand.u32 4294901760, %v12433_v30 }
 0x195   : > { %11177 = vmatpush3.xpose.msra.mxu0 %v12324_v20  ;;  %11173 = vmatprep.mubr.msk.f32.mxu1 %vm11840_vm10, %v14195_v4 }
 0x196   : > { %11178 = vmatprep.mubr.msk.f32.mxu0 %vm11840_vm10, %v14195_v4  ;;  %11181 = vmatprep.subr.mxu1 %v14195_v4  ;;  %v3390_v46 = vsub.f32 %v12433_v30, %v12446_v37 }
 0x197   : > { %11174 = vmatmul.mubr.f32.vlgmr.msra.gmra.mxu1 %v12280_v51  ;;  %11186 = vmatprep.subr.mxu0 %v14195_v4  ;;  %v3791_v51 = vsel %vm14281_vm4, %v3790_v62, %v3789_v1  ;;  %v5206_v62 = vld [vmem:[#allocation2 + $0x19] sm:$0x1]  ;;  %v4732_v1 = vld [vmem:[#allocation2 + $0x68] sm:$0x1] }
 0x198   : > { %11179 = vmatmul.mubr.f32.vlgmr.msra.gmra.mxu0 %v2433_v59  ;;  %11182 = vmatpush3.xpose.msra.mxu1 %v2433_v59  ;;  %v3793_v19 = vsel %vm14280_vm7, %v3792_v7, %v3791_v51  ;;  %v3391_v58 = vand.u32 4294901760, %v3390_v46  ;;  %v5207_v7 = vld [vmem:[#allocation2 + $0x29] sm:$0x1]  ;;  %v5221_v8 = vrot.slane %v5206_v62, 7  ;;  %v4733_v51 = vld [vmem:[#allocation2 + $0x78] sm:$0x1] }
 0x199   : > { %11187 = vmatpush3.xpose.msra.mxu0 %v12341_v31  ;;  %11183 = vmatprep.mubr.msk.f32.mxu1 %vm11840_vm10, %v14195_v4  ;;  %v3795_v27 = vsel %vm14279_vm8, %v3794_v14, %v3793_v19  ;;  %v4752_v13 = vrot.slane %v4732_v1, 2  ;;  %v5223_v14 = vrot.slane %v5207_v7, 6  ;;  %v4754_v21 = vrot.slane %v4733_v51, 1  ;;  %v6166_v51 = vld [vmem:[#allocation2 + $0x3b] sm:$0x1] }
 0x19a   : > { %11188 = vmatprep.mubr.msk.f32.mxu0 %vm11840_vm10, %v14195_v4  ;;  %11191 = vmatprep.subr.mxu1 %v14195_v4  ;;  %v3797_v34 = vsel %vm14275_vm9, %v3796_v23, %v3795_v27  ;;  %v5222_v19 = vsel %vm914_vm5, %v5221_v8, %v5205_v12  ;;  %v5209_v23 = vld [vmem:[#allocation2 + $0x49] sm:$0x1] }
 0x19b   : > { %11184 = vmatmul.mubr.f32.vlgmr.msra.gmra.mxu1 %v12324_v20  ;;  %11196 = vmatprep.subr.mxu0 %v14195_v4  ;;  %v3798_v41 = vsel %vm868_vm1, %v3797_v34, 0  ;;  %v5224_v27 = vsel %vm14283_vm6, %v5223_v14, %v5222_v19 }
 0x19c   : > { %11189 = vmatmul.mubr.f32.vlgmr.msra.gmra.mxu0 %v12341_v31  ;;  %11192 = vmatpush3.xpose.msra.mxu1 %v12324_v20  ;;  %v4252_v31 = vld [vmem:[#allocation2 + $0x57] sm:$0x1]  ;;  %v12462_v47 = vand.u32 4294901760, %v3798_v41  ;;  %v5226_v34 = vsel %vm14282_vm3, %v5225_v25, %v5224_v27 }
 0x19d   : > { %11197 = vmatpush3.xpose.msra.mxu0 %v12354_v38  ;;  %11193 = vmatprep.mubr.msk.f32.mxu1 %vm11840_vm10, %v14195_v4 }
 0x19e   : > { %11198 = vmatprep.mubr.msk.f32.mxu0 %vm11840_vm10, %v14195_v4  ;;  %11201 = vmatprep.subr.mxu1 %v14195_v4  ;;  %v12479_v59 = vsub.f32 %v3798_v41, %v12462_v47  ;;  %v5684_v41 = vld [vmem:[#allocation2 + $0xa] sm:$0x1] }
 0x19f   : > { %11194 = vmatmul.mubr.f32.vlgmr.msra.gmra.mxu1 %v12354_v38  ;;  %11206 = vmatprep.subr.mxu0 %v14195_v4  ;;  %v4271_v38 = vrot.slane %v4252_v31, 3  ;;  %v5227_v31 = vrot.slane %v5209_v23, 4  ;;  %v6183_v23 = vrot.slane %v6166_v51, 5 }
 0x1a0   : > { %11199 = vmatmul.mubr.f32.vlgmr.msra.gmra.mxu0 %v12324_v20  ;;  %11202 = vmatpush3.xpose.msra.mxu1 %v12324_v20  ;;  %v12492_v3 = vand.u32 4294901760, %v12479_v59 }
 0x1a1   : > { %11207 = vmatpush3.xpose.msra.mxu0 %v12370_v49  ;;  %11203 = vmatprep.mubr.msk.f32.mxu1 %vm11840_vm10, %v14195_v4 }
 0x1a2   : > { %11208 = vmatprep.mubr.msk.f32.mxu0 %vm11840_vm10, %v14195_v4  ;;  %11211 = vmatprep.subr.mxu1 %v14195_v4  ;;  %v3869_v15 = vsub.f32 %v12479_v59, %v12492_v3 }
 0x1a3   : > { %11204 = vmatmul.mubr.f32.vlgmr.msra.gmra.mxu1 %v12324_v20  ;;  %11216 = vmatprep.subr.mxu0 %v14195_v4  ;;  %v4270_v20 = vsel %vm14281_vm4, %v4269_v32, %v4268_v35  ;;  %v5685_v32 = vld [vmem:[#allocation2 + $0x1a] sm:$0x1]  ;;  %v5211_v35 = vld [vmem:[#allocation2 + $0x69] sm:$0x1] }
 0x1a4   : > { %11209 = vmatmul.mubr.f32.vlgmr.msra.gmra.mxu0 %v2912_v29  ;;  %11212 = vmatpush3.xpose.msra.mxu1 %v2912_v29  ;;  %v4272_v48 = vsel %vm14280_vm7, %v4271_v38, %v4270_v20  ;;  %v3870_v28 = vand.u32 4294901760, %v3869_v15  ;;  %v5686_v38 = vld [vmem:[#allocation2 + $0x2a] sm:$0x1]  ;;  %v5700_v39 = vrot.slane %v5685_v32, 7  ;;  %v5212_v20 = vld [vmem:[#allocation2 + $0x79] sm:$0x1] }
 0x1a5   : > { %11217 = vmatpush3.xpose.msra.mxu0 %v12387_v60  ;;  %11213 = vmatprep.mubr.msk.f32.mxu1 %vm11840_vm10, %v14195_v4  ;;  %v4274_v55 = vsel %vm14279_vm8, %v4273_v43, %v4272_v48  ;;  %v5231_v42 = vrot.slane %v5211_v35, 2  ;;  %v5702_v43 = vrot.slane %v5686_v38, 6  ;;  %v5233_v50 = vrot.slane %v5212_v20, 1  ;;  %v6645_v20 = vld [vmem:[#allocation2 + $0x3c] sm:$0x1] }
 0x1a6   : > { %11218 = vmatprep.mubr.msk.f32.mxu0 %vm11840_vm10, %v14195_v4  ;;  %11221 = vmatprep.subr.mxu1 %v14195_v4  ;;  %v4276_v63 = vsel %vm14275_vm9, %v4275_v52, %v4274_v55  ;;  %v5701_v48 = vsel %vm914_vm5, %v5700_v39, %v5684_v41  ;;  %v5688_v52 = vld [vmem:[#allocation2 + $0x4a] sm:$0x1] }
 0x1a7   : > { %11214 = vmatmul.mubr.f32.vlgmr.msra.gmra.mxu1 %v12370_v49  ;;  %11226 = vmatprep.subr.mxu0 %v14195_v4  ;;  %v4277_v10 = vsel %vm868_vm1, %v4276_v63, 0  ;;  %v5703_v55 = vsel %vm14283_vm6, %v5702_v43, %v5701_v48 }
 0x1a8   : > { %11219 = vmatmul.mubr.f32.vlgmr.msra.gmra.mxu0 %v12387_v60  ;;  %11222 = vmatpush3.xpose.msra.mxu1 %v12370_v49  ;;  %v4731_v60 = vld [vmem:[#allocation2 + $0x58] sm:$0x1]  ;;  %v12508_v16 = vand.u32 4294901760, %v4277_v10  ;;  %v5705_v63 = vsel %vm14282_vm3, %v5704_v53, %v5703_v55 }
 0x1a9   : > { %11227 = vmatpush3.xpose.msra.mxu0 %v12400_v5  ;;  %11223 = vmatprep.mubr.msk.f32.mxu1 %vm11840_vm10, %v14195_v4 }
 0x1aa   : > { %11228 = vmatprep.mubr.msk.f32.mxu0 %vm11840_vm10, %v14195_v4  ;;  %11231 = vmatprep.subr.mxu1 %v14195_v4  ;;  %v12525_v29 = vsub.f32 %v4277_v10, %v12508_v16  ;;  %v6163_v10 = vld [vmem:[#allocation2 + $0xb] sm:$0x1] }
 0x1ab   : > { %11224 = vmatmul.mubr.f32.vlgmr.msra.gmra.mxu1 %v12400_v5  ;;  %11236 = vmatprep.subr.mxu0 %v14195_v4  ;;  %v4750_v5 = vrot.slane %v4731_v60, 3  ;;  %v5706_v60 = vrot.slane %v5688_v52, 4  ;;  %v6662_v52 = vrot.slane %v6645_v20, 5 }
 0x1ac   : > { %11229 = vmatmul.mubr.f32.vlgmr.msra.gmra.mxu0 %v12370_v49  ;;  %11232 = vmatpush3.xpose.msra.mxu1 %v12370_v49  ;;  %v12538_v36 = vand.u32 4294901760, %v12525_v29 }
 0x1ad   : > { %11237 = vmatpush3.xpose.msra.mxu0 %v12416_v18  ;;  %11233 = vmatprep.mubr.msk.f32.mxu1 %vm11840_vm10, %v14195_v4 }
 0x1ae   : > { %11238 = vmatprep.mubr.msk.f32.mxu0 %vm11840_vm10, %v14195_v4  ;;  %11241 = vmatprep.subr.mxu1 %v14195_v4  ;;  %v4348_v44 = vsub.f32 %v12525_v29, %v12538_v36 }
 0x1af   : > { %11234 = vmatmul.mubr.f32.vlgmr.msra.gmra.mxu1 %v12370_v49  ;;  %11246 = vmatprep.subr.mxu0 %v14195_v4  ;;  %v4749_v49 = vsel %vm14281_vm4, %v4748_v61, %v4747_v0  ;;  %v6164_v61 = vld [vmem:[#allocation2 + $0x1b] sm:$0x1]  ;;  %v5690_v0 = vld [vmem:[#allocation2 + $0x6a] sm:$0x1] }
 0x1b0   : > { %11239 = vmatmul.mubr.f32.vlgmr.msra.gmra.mxu0 %v3391_v58  ;;  %11242 = vmatpush3.xpose.msra.mxu1 %v3391_v58  ;;  %v4751_v17 = vsel %vm14280_vm7, %v4750_v5, %v4749_v49  ;;  %v4349_v57 = vand.u32 4294901760, %v4348_v44  ;;  %v6165_v5 = vld [vmem:[#allocation2 + $0x2b] sm:$0x1]  ;;  %v6179_v7 = vrot.slane %v6164_v61, 7  ;;  %v5691_v49 = vld [vmem:[#allocation2 + $0x7a] sm:$0x1] }
 0x1b1   : > { %11247 = vmatpush3.xpose.msra.mxu0 %v12433_v30  ;;  %11243 = vmatprep.mubr.msk.f32.mxu1 %vm11840_vm10, %v14195_v4  ;;  %v4753_v26 = vsel %vm14279_vm8, %v4752_v13, %v4751_v17  ;;  %v5710_v12 = vrot.slane %v5690_v0, 2  ;;  %v6181_v13 = vrot.slane %v6165_v5, 6  ;;  %v5712_v19 = vrot.slane %v5691_v49, 1  ;;  %v7124_v49 = vld [vmem:[#allocation2 + $0x3d] sm:$0x1] }
 0x1b2   : > { %11248 = vmatprep.mubr.msk.f32.mxu0 %vm11840_vm10, %v14195_v4  ;;  %11251 = vmatprep.subr.mxu1 %v14195_v4  ;;  %v4755_v33 = vsel %vm14275_vm9, %v4754_v21, %v4753_v26  ;;  %v6180_v17 = vsel %vm914_vm5, %v6179_v7, %v6163_v10  ;;  %v6167_v21 = vld [vmem:[#allocation2 + $0x4b] sm:$0x1] }
 0x1b3   : > { %11244 = vmatmul.mubr.f32.vlgmr.msra.gmra.mxu1 %v12416_v18  ;;  %11256 = vmatprep.subr.mxu0 %v14195_v4  ;;  %v4756_v40 = vsel %vm868_vm1, %v4755_v33, 0  ;;  %v6182_v26 = vsel %vm14283_vm6, %v6181_v13, %v6180_v17 }
 0x1b4   : > { %11249 = vmatmul.mubr.f32.vlgmr.msra.gmra.mxu0 %v12433_v30  ;;  %11252 = vmatpush3.xpose.msra.mxu1 %v12416_v18  ;;  %v5210_v30 = vld [vmem:[#allocation2 + $0x59] sm:$0x1]  ;;  %v12554_v45 = vand.u32 4294901760, %v4756_v40  ;;  %v6184_v33 = vsel %vm14282_vm3, %v6183_v23, %v6182_v26 }
 0x1b5   : > { %11257 = vmatpush3.xpose.msra.mxu0 %v12446_v37  ;;  %11253 = vmatprep.mubr.msk.f32.mxu1 %vm11840_vm10, %v14195_v4 }
 0x1b6   : > { %11258 = vmatprep.mubr.msk.f32.mxu0 %vm11840_vm10, %v14195_v4  ;;  %11261 = vmatprep.subr.mxu1 %v14195_v4  ;;  %v12571_v58 = vsub.f32 %v4756_v40, %v12554_v45  ;;  %v6642_v40 = vld [vmem:[#allocation2 + $0xc] sm:$0x1] }
 0x1b7   : > { %11254 = vmatmul.mubr.f32.vlgmr.msra.gmra.mxu1 %v12446_v37  ;;  %11266 = vmatprep.subr.mxu0 %v14195_v4  ;;  %v5229_v37 = vrot.slane %v5210_v30, 3  ;;  %v6185_v30 = vrot.slane %v6167_v21, 4  ;;  %v7141_v21 = vrot.slane %v7124_v49, 5 }
 0x1b8   : > { %11259 = vmatmul.mubr.f32.vlgmr.msra.gmra.mxu0 %v12416_v18  ;;  %11262 = vmatpush3.xpose.msra.mxu1 %v12416_v18  ;;  %v12584_v1 = vand.u32 4294901760, %v12571_v58 }
 0x1b9   : > { %11267 = vmatpush3.xpose.msra.mxu0 %v12462_v47  ;;  %11263 = vmatprep.mubr.msk.f32.mxu1 %vm11840_vm10, %v14195_v4 }
 0x1ba   : > { %11268 = vmatprep.mubr.msk.f32.mxu0 %vm11840_vm10, %v14195_v4  ;;  %11271 = vmatprep.subr.mxu1 %v14195_v4  ;;  %v4827_v56 = vsub.f32 %v12571_v58, %v12584_v1 }
 0x1bb   : > { %11264 = vmatmul.mubr.f32.vlgmr.msra.gmra.mxu1 %v12416_v18  ;;  %11276 = vmatprep.subr.mxu0 %v14195_v4  ;;  %v5228_v18 = vsel %vm14281_vm4, %v5227_v31, %v5226_v34  ;;  %v6643_v31 = vld [vmem:[#allocation2 + $0x1c] sm:$0x1]  ;;  %v6169_v34 = vld [vmem:[#allocation2 + $0x6b] sm:$0x1] }
 0x1bc   : > { %11269 = vmatmul.mubr.f32.vlgmr.msra.gmra.mxu0 %v3870_v28  ;;  %11272 = vmatpush3.xpose.msra.mxu1 %v3870_v28  ;;  %v5230_v46 = vsel %vm14280_vm7, %v5229_v37, %v5228_v18  ;;  %v4828_v27 = vand.u32 4294901760, %v4827_v56  ;;  %v6644_v37 = vld [vmem:[#allocation2 + $0x2c] sm:$0x1]  ;;  %v6658_v38 = vrot.slane %v6643_v31, 7  ;;  %v6170_v18 = vld [vmem:[#allocation2 + $0x7b] sm:$0x1] }
 0x1bd   : > { %11277 = vmatpush3.xpose.msra.mxu0 %v12479_v59  ;;  %11273 = vmatprep.mubr.msk.f32.mxu1 %vm11840_vm10, %v14195_v4  ;;  %v5232_v54 = vsel %vm14279_vm8, %v5231_v42, %v5230_v46  ;;  %v6189_v41 = vrot.slane %v6169_v34, 2  ;;  %v6660_v42 = vrot.slane %v6644_v37, 6  ;;  %v6191_v48 = vrot.slane %v6170_v18, 1  ;;  %v7603_v18 = vld [vmem:[#allocation2 + $0x3e] sm:$0x1] }
 0x1be   : > { %11278 = vmatprep.mubr.msk.f32.mxu0 %vm11840_vm10, %v14195_v4  ;;  %11281 = vmatprep.subr.mxu1 %v14195_v4  ;;  %v5234_v62 = vsel %vm14275_vm9, %v5233_v50, %v5232_v54  ;;  %v6659_v46 = vsel %vm914_vm5, %v6658_v38, %v6642_v40  ;;  %v6646_v50 = vld [vmem:[#allocation2 + $0x4c] sm:$0x1] }
 0x1bf   : > { %11274 = vmatmul.mubr.f32.vlgmr.msra.gmra.mxu1 %v12462_v47  ;;  %11286 = vmatprep.subr.mxu0 %v14195_v4  ;;  %v5235_v8 = vsel %vm868_vm1, %v5234_v62, 0  ;;  %v6661_v54 = vsel %vm14283_vm6, %v6660_v42, %v6659_v46 }
 0x1c0   : > { %11279 = vmatmul.mubr.f32.vlgmr.msra.gmra.mxu0 %v12479_v59  ;;  %11282 = vmatpush3.xpose.msra.mxu1 %v12462_v47  ;;  %v5689_v59 = vld [vmem:[#allocation2 + $0x5a] sm:$0x1]  ;;  %v12600_v14 = vand.u32 4294901760, %v5235_v8  ;;  %v6663_v62 = vsel %vm14282_vm3, %v6662_v52, %v6661_v54 }
 0x1c1   : > { %11287 = vmatpush3.xpose.msra.mxu0 %v12492_v3  ;;  %11283 = vmatprep.mubr.msk.f32.mxu1 %vm11840_vm10, %v14195_v4 }
 0x1c2   : > { %11288 = vmatprep.mubr.msk.f32.mxu0 %vm11840_vm10, %v14195_v4  ;;  %11291 = vmatprep.subr.mxu1 %v14195_v4  ;;  %v12617_v28 = vsub.f32 %v5235_v8, %v12600_v14  ;;  %v7121_v8 = vld [vmem:[#allocation2 + $0xd] sm:$0x1] }
 0x1c3   : > { %11284 = vmatmul.mubr.f32.vlgmr.msra.gmra.mxu1 %v12492_v3  ;;  %11296 = vmatprep.subr.mxu0 %v14195_v4  ;;  %v5708_v3 = vrot.slane %v5689_v59, 3  ;;  %v6664_v59 = vrot.slane %v6646_v50, 4  ;;  %v7620_v50 = vrot.slane %v7603_v18, 5 }
 0x1c4   : > { %11289 = vmatmul.mubr.f32.vlgmr.msra.gmra.mxu0 %v12462_v47  ;;  %11292 = vmatpush3.xpose.msra.mxu1 %v12462_v47  ;;  %v12630_v35 = vand.u32 4294901760, %v12617_v28 }
 0x1c5   : > { %11297 = vmatpush3.xpose.msra.mxu0 %v12508_v16  ;;  %11293 = vmatprep.mubr.msk.f32.mxu1 %vm11840_vm10, %v14195_v4 }
 0x1c6   : > { %11298 = vmatprep.mubr.msk.f32.mxu0 %vm11840_vm10, %v14195_v4  ;;  %11301 = vmatprep.subr.mxu1 %v14195_v4  ;;  %v5306_v24 = vsub.f32 %v12617_v28, %v12630_v35 }
 0x1c7   : > { %11294 = vmatmul.mubr.f32.vlgmr.msra.gmra.mxu1 %v12462_v47  ;;  %11306 = vmatprep.subr.mxu0 %v14195_v4  ;;  %v5707_v47 = vsel %vm14281_vm4, %v5706_v60, %v5705_v63  ;;  %v7122_v60 = vld [vmem:[#allocation2 + $0x1d] sm:$0x1]  ;;  %v6648_v63 = vld [vmem:[#allocation2 + $0x6c] sm:$0x1] }
 0x1c8   : > { %11299 = vmatmul.mubr.f32.vlgmr.msra.gmra.mxu0 %v4349_v57  ;;  %11302 = vmatpush3.xpose.msra.mxu1 %v4349_v57  ;;  %v5709_v15 = vsel %vm14280_vm7, %v5708_v3, %v5707_v47  ;;  %v5307_v55 = vand.u32 4294901760, %v5306_v24  ;;  %v7123_v3 = vld [vmem:[#allocation2 + $0x2d] sm:$0x1]  ;;  %v7137_v5 = vrot.slane %v7122_v60, 7  ;;  %v6649_v47 = vld [vmem:[#allocation2 + $0x7c] sm:$0x1] }
 0x1c9   : > { %11307 = vmatpush3.xpose.msra.mxu0 %v12525_v29  ;;  %11303 = vmatprep.mubr.msk.f32.mxu1 %vm11840_vm10, %v14195_v4  ;;  %v5711_v25 = vsel %vm14279_vm8, %v5710_v12, %v5709_v15  ;;  %v6668_v10 = vrot.slane %v6648_v63, 2  ;;  %v7139_v12 = vrot.slane %v7123_v3, 6  ;;  %v6670_v17 = vrot.slane %v6649_v47, 1  ;;  %v8082_v47 = vld [vmem:[#allocation2 + $0x3f] sm:$0x1] }
 0x1ca   : > { %11308 = vmatprep.mubr.msk.f32.mxu0 %vm11840_vm10, %v14195_v4  ;;  %11311 = vmatprep.subr.mxu1 %v14195_v4  ;;  %v5713_v32 = vsel %vm14275_vm9, %v5712_v19, %v5711_v25  ;;  %v7138_v15 = vsel %vm914_vm5, %v7137_v5, %v7121_v8  ;;  %v7125_v19 = vld [vmem:[#allocation2 + $0x4d] sm:$0x1] }
 0x1cb   : > { %11304 = vmatmul.mubr.f32.vlgmr.msra.gmra.mxu1 %v12508_v16  ;;  %11316 = vmatprep.subr.mxu0 %v14195_v4  ;;  %v5714_v39 = vsel %vm868_vm1, %v5713_v32, 0  ;;  %v7140_v25 = vsel %vm14283_vm6, %v7139_v12, %v7138_v15 }
 0x1cc   : > { %11309 = vmatmul.mubr.f32.vlgmr.msra.gmra.mxu0 %v12525_v29  ;;  %11312 = vmatpush3.xpose.msra.mxu1 %v12508_v16  ;;  %v6168_v29 = vld [vmem:[#allocation2 + $0x5b] sm:$0x1]  ;;  %v12646_v43 = vand.u32 4294901760, %v5714_v39  ;;  %v7142_v32 = vsel %vm14282_vm3, %v7141_v21, %v7140_v25 }
 0x1cd   : > { %11317 = vmatpush3.xpose.msra.mxu0 %v12538_v36  ;;  %11313 = vmatprep.mubr.msk.f32.mxu1 %vm11840_vm10, %v14195_v4 }
 0x1ce   : > { %11318 = vmatprep.mubr.msk.f32.mxu0 %vm11840_vm10, %v14195_v4  ;;  %11321 = vmatprep.subr.mxu1 %v14195_v4  ;;  %v12663_v57 = vsub.f32 %v5714_v39, %v12646_v43  ;;  %v7600_v39 = vld [vmem:[#allocation2 + $0xe] sm:$0x1] }
 0x1cf   : > { %11314 = vmatmul.mubr.f32.vlgmr.msra.gmra.mxu1 %v12538_v36  ;;  %11326 = vmatprep.subr.mxu0 %v14195_v4  ;;  %v6187_v36 = vrot.slane %v6168_v29, 3  ;;  %v7143_v29 = vrot.slane %v7125_v19, 4  ;;  %v8099_v19 = vrot.slane %v8082_v47, 5 }
 0x1d0   : > { %11319 = vmatmul.mubr.f32.vlgmr.msra.gmra.mxu0 %v12508_v16  ;;  %11322 = vmatpush3.xpose.msra.mxu1 %v12508_v16  ;;  %v12676_v0 = vand.u32 4294901760, %v12663_v57 }
 0x1d1   : > { %11327 = vmatpush3.xpose.msra.mxu0 %v12554_v45  ;;  %11323 = vmatprep.mubr.msk.f32.mxu1 %vm11840_vm10, %v14195_v4 }
 0x1d2   : > { %11328 = vmatprep.mubr.msk.f32.mxu0 %vm11840_vm10, %v14195_v4  ;;  %11331 = vmatprep.subr.mxu1 %v14195_v4  ;;  %v5785_v51 = vsub.f32 %v12663_v57, %v12676_v0 }
 0x1d3   : > { %11324 = vmatmul.mubr.f32.vlgmr.msra.gmra.mxu1 %v12508_v16  ;;  %11336 = vmatprep.subr.mxu0 %v14195_v4  ;;  %v6186_v16 = vsel %vm14281_vm4, %v6185_v30, %v6184_v33  ;;  %v7601_v30 = vld [vmem:[#allocation2 + $0x1e] sm:$0x1]  ;;  %v7127_v33 = vld [vmem:[#allocation2 + $0x6d] sm:$0x1] }
 0x1d4   : > { %11329 = vmatmul.mubr.f32.vlgmr.msra.gmra.mxu0 %v4828_v27  ;;  %11332 = vmatpush3.xpose.msra.mxu1 %v4828_v27  ;;  %v6188_v44 = vsel %vm14280_vm7, %v6187_v36, %v6186_v16  ;;  %v5786_v26 = vand.u32 4294901760, %v5785_v51  ;;  %v7602_v36 = vld [vmem:[#allocation2 + $0x2e] sm:$0x1]  ;;  %v7616_v37 = vrot.slane %v7601_v30, 7  ;;  %v7128_v16 = vld [vmem:[#allocation2 + $0x7d] sm:$0x1] }
 0x1d5   : > { %11337 = vmatpush3.xpose.msra.mxu0 %v12571_v58  ;;  %11333 = vmatprep.mubr.msk.f32.mxu1 %vm11840_vm10, %v14195_v4  ;;  %v6190_v53 = vsel %vm14279_vm8, %v6189_v41, %v6188_v44  ;;  %v7147_v40 = vrot.slane %v7127_v33, 2  ;;  %v7618_v41 = vrot.slane %v7602_v36, 6  ;;  %v7149_v46 = vrot.slane %v7128_v16, 1 }
 0x1d6   : > { %11338 = vmatprep.mubr.msk.f32.mxu0 %vm11840_vm10, %v14195_v4  ;;  %11341 = vmatprep.subr.mxu1 %v14195_v4  ;;  %v6192_v61 = vsel %vm14275_vm9, %v6191_v48, %v6190_v53  ;;  %v7617_v44 = vsel %vm914_vm5, %v7616_v37, %v7600_v39  ;;  %v7604_v48 = vld [vmem:[#allocation2 + $0x4e] sm:$0x1] }
 0x1d7   : > { %11334 = vmatmul.mubr.f32.vlgmr.msra.gmra.mxu1 %v12554_v45  ;;  %11346 = vmatprep.subr.mxu0 %v14195_v4  ;;  %v6193_v7 = vsel %vm868_vm1, %v6192_v61, 0  ;;  %v7619_v53 = vsel %vm14283_vm6, %v7618_v41, %v7617_v44 }
 0x1d8   : > { %11339 = vmatmul.mubr.f32.vlgmr.msra.gmra.mxu0 %v12571_v58  ;;  %11342 = vmatpush3.xpose.msra.mxu1 %v12554_v45  ;;  %v6647_v58 = vld [vmem:[#allocation2 + $0x5c] sm:$0x1]  ;;  %v12692_v13 = vand.u32 4294901760, %v6193_v7  ;;  %v7621_v61 = vsel %vm14282_vm3, %v7620_v50, %v7619_v53 }
 0x1d9   : > { %11347 = vmatpush3.xpose.msra.mxu0 %v12584_v1  ;;  %11343 = vmatprep.mubr.msk.f32.mxu1 %vm11840_vm10, %v14195_v4 }
 0x1da   : > { %11348 = vmatprep.mubr.msk.f32.mxu0 %vm11840_vm10, %v14195_v4  ;;  %11351 = vmatprep.subr.mxu1 %v14195_v4  ;;  %v12709_v27 = vsub.f32 %v6193_v7, %v12692_v13  ;;  %v8079_v7 = vld [vmem:[#allocation2 + $0xf] sm:$0x1] }
 0x1db   : > { %11344 = vmatmul.mubr.f32.vlgmr.msra.gmra.mxu1 %v12584_v1  ;;  %11356 = vmatprep.subr.mxu0 %v14195_v4  ;;  %v6666_v1 = vrot.slane %v6647_v58, 3  ;;  %v7622_v58 = vrot.slane %v7604_v48, 4 }
 0x1dc   : > { %11349 = vmatmul.mubr.f32.vlgmr.msra.gmra.mxu0 %v12554_v45  ;;  %11352 = vmatpush3.xpose.msra.mxu1 %v12554_v45  ;;  %v12722_v34 = vand.u32 4294901760, %v12709_v27 }
 0x1dd   : > { %11357 = vmatpush3.xpose.msra.mxu0 %v12600_v14  ;;  %11353 = vmatprep.mubr.msk.f32.mxu1 %vm11840_vm10, %v14195_v4 }
 0x1de   : > { %11358 = vmatprep.mubr.msk.f32.mxu0 %vm11840_vm10, %v14195_v4  ;;  %11361 = vmatprep.subr.mxu1 %v14195_v4  ;;  %v6264_v20 = vsub.f32 %v12709_v27, %v12722_v34 }
 0x1df   : > { %11354 = vmatmul.mubr.f32.vlgmr.msra.gmra.mxu1 %v12554_v45  ;;  %11366 = vmatprep.subr.mxu0 %v14195_v4  ;;  %v6665_v45 = vsel %vm14281_vm4, %v6664_v59, %v6663_v62  ;;  %v8080_v59 = vld [vmem:[#allocation2 + $0x1f] sm:$0x1]  ;;  %v7606_v62 = vld [vmem:[#allocation2 + $0x6e] sm:$0x1] }
 0x1e0   : > { %11359 = vmatmul.mubr.f32.vlgmr.msra.gmra.mxu0 %v5307_v55  ;;  %11362 = vmatpush3.xpose.msra.mxu1 %v5307_v55  ;;  %v6667_v56 = vsel %vm14280_vm7, %v6666_v1, %v6665_v45  ;;  %v6265_v54 = vand.u32 4294901760, %v6264_v20  ;;  %v8081_v1 = vld [vmem:[#allocation2 + $0x2f] sm:$0x1]  ;;  %v8095_v3 = vrot.slane %v8080_v59, 7  ;;  %v7607_v45 = vld [vmem:[#allocation2 + $0x7e] sm:$0x1] }
 0x1e1   : > { %11367 = vmatpush3.xpose.msra.mxu0 %v12617_v28  ;;  %11363 = vmatprep.mubr.msk.f32.mxu1 %vm11840_vm10, %v14195_v4  ;;  %v6669_v23 = vsel %vm14279_vm8, %v6668_v10, %v6667_v56  ;;  %v7626_v8 = vrot.slane %v7606_v62, 2  ;;  %v8097_v10 = vrot.slane %v8081_v1, 6  ;;  %v7628_v15 = vrot.slane %v7607_v45, 1 }
 0x1e2   : > { %11368 = vmatprep.mubr.msk.f32.mxu0 %vm11840_vm10, %v14195_v4  ;;  %11371 = vmatprep.subr.mxu1 %v14195_v4  ;;  %v6671_v31 = vsel %vm14275_vm9, %v6670_v17, %v6669_v23  ;;  %v8096_v56 = vsel %vm914_vm5, %v8095_v3, %v8079_v7  ;;  %v8083_v17 = vld [vmem:[#allocation2 + $0x4f] sm:$0x1] }
 0x1e3   : > { %11364 = vmatmul.mubr.f32.vlgmr.msra.gmra.mxu1 %v12600_v14  ;;  %11376 = vmatprep.subr.mxu0 %v14195_v4  ;;  %v6672_v38 = vsel %vm868_vm1, %v6671_v31, 0  ;;  %v8098_v23 = vsel %vm14283_vm6, %v8097_v10, %v8096_v56  ;;  %vm9921_vm6 = vcmask 1048512  }
 0x1e4   : > { %11369 = vmatmul.mubr.f32.vlgmr.msra.gmra.mxu0 %v12617_v28  ;;  %11372 = vmatpush3.xpose.msra.mxu1 %v12600_v14  ;;  %v7126_v28 = vld [vmem:[#allocation2 + $0x5d] sm:$0x1]  ;;  %v12738_v42 = vand.u32 4294901760, %v6672_v38  ;;  %v8100_v30 = vsel %vm14282_vm3, %v8099_v19, %v8098_v23  ;;  %vm9914_vm3 = vcmask 982912  }
 0x1e5   : > { %11377 = vmatpush3.xpose.msra.mxu0 %v12630_v35  ;;  %11373 = vmatprep.mubr.msk.f32.mxu1 %vm11840_vm10, %v14195_v4 }
 0x1e6   : > { %11378 = vmatprep.mubr.msk.f32.mxu0 %vm11840_vm10, %v14195_v4  ;;  %11381 = vmatprep.subr.mxu1 %v14195_v4  ;;  %v12755_v55 = vsub.f32 %v6672_v38, %v12738_v42 }
 0x1e7   : > { %11374 = vmatmul.mubr.f32.vlgmr.msra.gmra.mxu1 %v12630_v35  ;;  %11386 = vmatprep.subr.mxu0 %v14195_v4  ;;  %v7145_v35 = vrot.slane %v7126_v28, 3  ;;  %v8101_v28 = vrot.slane %v8083_v17, 4 }
 0x1e8   : > { %11379 = vmatmul.mubr.f32.vlgmr.msra.gmra.mxu0 %v12600_v14  ;;  %11382 = vmatpush3.xpose.msra.mxu1 %v12600_v14  ;;  %v12768_v63 = vand.u32 4294901760, %v12755_v55 }
 0x1e9   : > { %11387 = vmatpush3.xpose.msra.mxu0 %v12646_v43  ;;  %11383 = vmatprep.mubr.msk.f32.mxu1 %vm11840_vm10, %v14195_v4 }
 0x1ea   : > { %11388 = vmatprep.mubr.msk.f32.mxu0 %vm11840_vm10, %v14195_v4  ;;  %11391 = vmatprep.subr.mxu1 %v14195_v4  ;;  %v6743_v49 = vsub.f32 %v12755_v55, %v12768_v63 }
 0x1eb   : > { %11384 = vmatmul.mubr.f32.vlgmr.msra.gmra.mxu1 %v12600_v14  ;;  %11396 = vmatprep.subr.mxu0 %v14195_v4  ;;  %v7144_v14 = vsel %vm14281_vm4, %v7143_v29, %v7142_v32  ;;  %v8085_v32 = vld [vmem:[#allocation2 + $0x6f] sm:$0x1] }
 0x1ec   : > { %11389 = vmatmul.mubr.f32.vlgmr.msra.gmra.mxu0 %v5786_v26  ;;  %11392 = vmatpush3.xpose.msra.mxu1 %v5786_v26  ;;  %v7146_v24 = vsel %vm14280_vm7, %v7145_v35, %v7144_v14  ;;  %v6744_v25 = vand.u32 4294901760, %v6743_v49  ;;  %v8102_v35 = vsel %vm14281_vm4, %v8101_v28, %v8100_v30  ;;  %v8105_v36 = vrot.slane %v8085_v32, 2 }
 0x1ed   : > { %11397 = vmatpush3.xpose.msra.mxu0 %v12663_v57  ;;  %11393 = vmatprep.mubr.msk.f32.mxu1 %vm11840_vm10, %v14195_v4  ;;  %v7148_v52 = vsel %vm14279_vm8, %v7147_v40, %v7146_v24 }
 0x1ee   : > { %11398 = vmatprep.mubr.msk.f32.mxu0 %vm11840_vm10, %v14195_v4  ;;  %11401 = vmatprep.subr.mxu1 %v14195_v4  ;;  %v7150_v60 = vsel %vm14275_vm9, %v7149_v46, %v7148_v52 }
 0x1ef   : > { %11394 = vmatmul.mubr.f32.vlgmr.msra.gmra.mxu1 %v12646_v43  ;;  %11406 = vmatprep.subr.mxu0 %v14195_v4  ;;  %v7151_v5 = vsel %vm868_vm1, %v7150_v60, 0 }
 0x1f0   : > { %11399 = vmatmul.mubr.f32.vlgmr.msra.gmra.mxu0 %v12663_v57  ;;  %11402 = vmatpush3.xpose.msra.mxu1 %v12646_v43  ;;  %v7605_v57 = vld [vmem:[#allocation2 + $0x5e] sm:$0x1]  ;;  %v12784_v12 = vand.u32 4294901760, %v7151_v5 }
 0x1f1   : > { %11407 = vmatpush3.xpose.msra.mxu0 %v12676_v0  ;;  %11403 = vmatprep.mubr.msk.f32.mxu1 %vm11840_vm10, %v14195_v4 }
 0x1f2   : > { %11408 = vmatprep.mubr.msk.f32.mxu0 %vm11840_vm10, %v14195_v4  ;;  %11411 = vmatprep.subr.mxu1 %v14195_v4  ;;  %v7220_v26 = vsub.f32 %v7151_v5, %v12784_v12 }
 0x1f3   : > { %11404 = vmatmul.mubr.f32.vlgmr.msra.gmra.mxu1 %v12676_v0  ;;  %11416 = vmatprep.subr.mxu0 %v14195_v4  ;;  %v7624_v0 = vrot.slane %v7605_v57, 3 }
 0x1f4   : > { %11409 = vmatmul.mubr.f32.vlgmr.msra.gmra.mxu0 %v12646_v43  ;;  %11412 = vmatpush3.xpose.msra.mxu1 %v12646_v43  ;;  %v7221_v31 = vand.u32 4294901760, %v7220_v26 }
 0x1f5   : > { %11417 = vmatpush3.xpose.msra.mxu0 %v12692_v13  ;;  %11413 = vmatprep.mubr.msk.f32.mxu1 %vm11840_vm10, %v14195_v4 }
 0x1f6   : > { %11418 = vmatprep.mubr.msk.f32.mxu0 %vm11840_vm10, %v14195_v4  ;;  %11421 = vmatprep.subr.mxu1 %v14195_v4  ;;  %v7222_v37 = vsub.f32 %v7220_v26, %v7221_v31 }
 0x1f7   : > { %11414 = vmatmul.mubr.f32.vlgmr.msra.gmra.mxu1 %v12646_v43  ;;  %11426 = vmatprep.subr.mxu0 %v14195_v4  ;;  %v7623_v43 = vsel %vm14281_vm4, %v7622_v58, %v7621_v61  ;;  %vm9907_vm4 = vcmask 917312  }
 0x1f8   : > { %11419 = vmatmul.mubr.f32.vlgmr.msra.gmra.mxu0 %v6265_v54  ;;  %11422 = vmatpush3.xpose.msra.mxu1 %v6265_v54  ;;  %v7625_v51 = vsel %vm14280_vm7, %v7624_v0, %v7623_v43  ;;  %v7223_v40 = vand.u32 4294901760, %v7222_v37 }
 0x1f9   : > { %11427 = vmatpush3.xpose.msra.mxu0 %v12709_v27  ;;  %11423 = vmatprep.mubr.msk.f32.mxu1 %vm11840_vm10, %v14195_v4  ;;  %v7627_v21 = vsel %vm14279_vm8, %v7626_v8, %v7625_v51 }
 0x1fa   : > { %11428 = vmatprep.mubr.msk.f32.mxu0 %vm11840_vm10, %v14195_v4  ;;  %11431 = vmatprep.subr.mxu1 %v14195_v4  ;;  %v7629_v29 = vsel %vm14275_vm9, %v7628_v15, %v7627_v21 }
 0x1fb   : > { %11424 = vmatmul.mubr.f32.vlgmr.msra.gmra.mxu1 %v12692_v13  ;;  %11436 = vmatprep.subr.mxu0 %v14195_v4 }
 0x1fc   : > { %11429 = vmatmul.mubr.f32.vlgmr.msra.gmra.mxu0 %v12709_v27  ;;  %11432 = vmatpush3.xpose.msra.mxu1 %v12692_v13  ;;  %v8084_v27 = vld [vmem:[#allocation2 + $0x5f] sm:$0x1] }
 0x1fd   : > { %11437 = vmatpush3.xpose.msra.mxu0 %v12722_v34  ;;  %11433 = vmatprep.mubr.msk.f32.mxu1 %vm11840_vm10, %v14195_v4  ;;  %v8103_v33 = vrot.slane %v8084_v27, 3 }
 0x1fe   : > { %11438 = vmatprep.mubr.msk.f32.mxu0 %vm11840_vm10, %v14195_v4  ;;  %11441 = vmatprep.subr.mxu1 %v14195_v4 }
 0x1ff   : > { %11434 = vmatmul.mubr.f32.vlgmr.msra.gmra.mxu1 %v12722_v34  ;;  %11446 = vmatprep.subr.mxu0 %v14195_v4  ;;  %v7630_v34 = vsel %vm868_vm1, %v7629_v29, 0  ;;  %v8104_v14 = vsel %vm14280_vm7, %v8103_v33, %v8102_v35  ;;  %vm9900_vm7 = vcmask 851712  }
 0x200   : > { %11439 = vmatmul.mubr.f32.vlgmr.msra.gmra.mxu0 %v12692_v13  ;;  %11442 = vmatpush3.xpose.msra.mxu1 %v12692_v13  ;;  %v12823_v38 = vand.u32 4294901760, %v7630_v34  ;;  %v8106_v16 = vsel %vm14279_vm8, %v8105_v36, %v8104_v14  ;;  %vm9893_vm8 = vcmask 786112  }
 0x201   : > { %11447 = vmatpush3.xpose.msra.mxu0 %v12738_v42  ;;  %11443 = vmatprep.mubr.msk.f32.mxu1 %vm11840_vm10, %v14195_v4 }
 0x202   : > { %11448 = vmatprep.mubr.msk.f32.mxu0 %vm11840_vm10, %v14195_v4  ;;  %11451 = vmatprep.subr.mxu1 %v14195_v4  ;;  %v7699_v18 = vsub.f32 %v7630_v34, %v12823_v38 }
 0x203   : > { %11444 = vmatmul.mubr.f32.vlgmr.msra.gmra.mxu1 %v12692_v13  ;;  %11456 = vmatprep.subr.mxu0 %v14195_v4  ;;  %v8086_v13 = vld [vmem:[#allocation2 + $0x7f] sm:$0x1] }
 0x204   : > { %11449 = vmatmul.mubr.f32.vlgmr.msra.gmra.mxu0 %v6744_v25  ;;  %11452 = vmatpush3.xpose.msra.mxu1 %v6744_v25  ;;  %v8107_v39 = vrot.slane %v8086_v13, 1  ;;  %v7700_v20 = vand.u32 4294901760, %v7699_v18 }
 0x205   : > { %11457 = vmatpush3.xpose.msra.mxu0 %v12755_v55  ;;  %11453 = vmatprep.mubr.msk.f32.mxu1 %vm11840_vm10, %v14195_v4 }
 0x206   : > { %11458 = vmatprep.mubr.msk.f32.mxu0 %vm11840_vm10, %v14195_v4  ;;  %11461 = vmatprep.subr.mxu1 %v14195_v4  ;;  %v8108_v41 = vsel %vm14275_vm9, %v8107_v39, %v8106_v16  ;;  %vm9886_vm9 = vcmask 720512  }
 0x207   : > { %11454 = vmatmul.mubr.f32.vlgmr.msra.gmra.mxu1 %v12738_v42  ;;  %11466 = vmatprep.subr.mxu0 %v14195_v4  ;;  %v8109_v24 = vsel %vm868_vm1, %v8108_v41, 0  ;;  %vm8941_vm1 = vcmp.lt.s32.totalorder %v12037_v22, 9 }
 0x208   : > { %11459 = vmatmul.mubr.f32.vlgmr.msra.gmra.mxu0 %v12755_v55  ;;  %11462 = vmatpush3.xpose.msra.mxu1 %v12738_v42  ;;  %v12856_v44 = vand.u32 4294901760, %v8109_v24 }
 0x209   : > { %11467 = vmatpush3.xpose.msra.mxu0 %v12768_v63  ;;  %11463 = vmatprep.mubr.msk.f32.mxu1 %vm11840_vm10, %v14195_v4 }
 0x20a   : > { %11468 = vmatprep.mubr.msk.f32.mxu0 %vm11840_vm10, %v14195_v4  ;;  %11471 = vmatprep.subr.mxu1 %v14195_v4  ;;  %v8178_v48 = vsub.f32 %v8109_v24, %v12856_v44 }
 0x20b   : > { %11464 = vmatmul.mubr.f32.vlgmr.msra.gmra.mxu1 %v12768_v63  ;;  %11476 = vmatprep.subr.mxu0 %v14195_v4 }
 0x20c   : > { %11469 = vmatmul.mubr.f32.vlgmr.msra.gmra.mxu0 %v12738_v42  ;;  %11472 = vmatpush3.xpose.msra.mxu1 %v12738_v42  ;;  %v8179_v50 = vand.u32 4294901760, %v8178_v48 }
 0x20d   : > { %11477 = vmatpush3.xpose.msra.mxu0 %v12784_v12  ;;  %11473 = vmatprep.mubr.msk.f32.mxu1 %vm11840_vm10, %v14195_v4 }
 0x20e   : > { %11478 = vmatprep.mubr.msk.f32.mxu0 %vm11840_vm10, %v14195_v4  ;;  %11481 = vmatprep.subr.mxu1 %v14195_v4  ;;  %v8180_v52 = vsub.f32 %v8178_v48, %v8179_v50 }
 0x20f   : > { %11474 = vmatmul.mubr.f32.vlgmr.msra.gmra.mxu1 %v12738_v42  ;;  %11486 = vmatprep.subr.mxu0 %v14195_v4  ;;  %v7701_v42 = vsub.f32 %v7699_v18, %v7700_v20 }
 0x210   : > { %11479 = vmatmul.mubr.f32.vlgmr.msra.gmra.mxu0 %v7223_v40  ;;  %11482 = vmatpush3.xpose.msra.mxu1 %v7223_v40  ;;  %v8181_v53 = vand.u32 4294901760, %v8180_v52 }
 0x211   : > { %11487 = vmatpush3.xpose.msra.mxu0 %v7220_v26  ;;  %11483 = vmatprep.mubr.msk.f32.mxu1 %vm11840_vm10, %v14195_v4  ;;  %v7702_v46 = vand.u32 4294901760, %v7701_v42 }
 0x212   : > { %11488 = vmatprep.mubr.msk.f32.mxu0 %vm11840_vm10, %v14195_v4  ;;  %11491 = vmatprep.subr.mxu1 %v14195_v4 }
 0x213   : > { %11484 = vmatmul.mubr.f32.vlgmr.msra.gmra.mxu1 %v12784_v12  ;;  %11496 = vmatprep.subr.mxu0 %v14195_v4 }
 0x214   : > { %11489 = vmatmul.mubr.f32.vlgmr.msra.gmra.mxu0 %v7220_v26  ;;  %11492 = vmatpush3.xpose.msra.mxu1 %v12784_v12 }
 0x215   : > { %11497 = vmatpush3.xpose.msra.mxu0 %v7221_v31  ;;  %11493 = vmatprep.mubr.msk.f32.mxu1 %vm11840_vm10, %v14195_v4 }
 0x216   : > { %11498 = vmatprep.mubr.msk.f32.mxu0 %vm11840_vm10, %v14195_v4  ;;  %11501 = vmatprep.subr.mxu1 %v14195_v4 }
 0x217   : > { %11494 = vmatmul.mubr.f32.vlgmr.msra.gmra.mxu1 %v7221_v31  ;;  %11506 = vmatprep.subr.mxu0 %v14195_v4 }
 0x218   : > { %11499 = vmatmul.mubr.f32.vlgmr.msra.gmra.mxu0 %v12784_v12  ;;  %11502 = vmatpush3.xpose.msra.mxu1 %v12784_v12 }
 0x219   : > { %11507 = vmatpush3.xpose.msra.mxu0 %v12823_v38  ;;  %11503 = vmatprep.mubr.msk.f32.mxu1 %vm11840_vm10, %v14195_v4 }
 0x21a   : > { %11508 = vmatprep.mubr.msk.f32.mxu0 %vm11840_vm10, %v14195_v4  ;;  %11511 = vmatprep.subr.mxu1 %v14195_v4 }
 0x21b   : > { %11504 = vmatmul.mubr.f32.vlgmr.msra.gmra.mxu1 %v12784_v12  ;;  %11516 = vmatprep.subr.mxu0 %v14195_v4 }
 0x21c   : > { %11509 = vmatmul.mubr.f32.vlgmr.msra.gmra.mxu0 %v7702_v46  ;;  %11512 = vmatpush3.xpose.msra.mxu1 %v7702_v46 }
 0x21d   : > { %11517 = vmatpush3.xpose.msra.mxu0 %v7699_v18  ;;  %11513 = vmatprep.mubr.msk.f32.mxu1 %vm11840_vm10, %v14195_v4 }
 0x21e   : > { %11518 = vmatprep.mubr.msk.f32.mxu0 %vm11840_vm10, %v14195_v4  ;;  %11521 = vmatprep.subr.mxu1 %v14195_v4 }
 0x21f   : > { %11514 = vmatmul.mubr.f32.vlgmr.msra.gmra.mxu1 %v12823_v38  ;;  %11526 = vmatprep.subr.mxu0 %v14195_v4 }
 0x220   : > { %11519 = vmatmul.mubr.f32.vlgmr.msra.gmra.mxu0 %v7699_v18  ;;  %11522 = vmatpush3.xpose.msra.mxu1 %v12823_v38 }
 0x221   : > { %11527 = vmatpush3.xpose.msra.mxu0 %v7700_v20  ;;  %11523 = vmatprep.mubr.msk.f32.mxu1 %vm11840_vm10, %v14195_v4 }
 0x222   : > { %11528 = vmatprep.mubr.msk.f32.mxu0 %vm11840_vm10, %v14195_v4  ;;  %11531 = vmatprep.subr.mxu1 %v14195_v4 }
 0x223   : > { %11524 = vmatmul.mubr.f32.vlgmr.msra.gmra.mxu1 %v7700_v20  ;;  %11536 = vmatprep.subr.mxu0 %v14195_v4 }
 0x224   : > { %11529 = vmatmul.mubr.f32.vlgmr.msra.gmra.mxu0 %v12823_v38  ;;  %11532 = vmatpush3.xpose.msra.mxu1 %v12823_v38 }
 0x225   : > { %11537 = vmatpush3.xpose.msra.mxu0 %v12856_v44  ;;  %11533 = vmatprep.mubr.msk.f32.mxu1 %vm11840_vm10, %v14195_v4 }
 0x226   : > { %11538 = vmatprep.mubr.msk.f32.mxu0 %vm11840_vm10, %v14195_v4  ;;  %11541 = vmatprep.subr.mxu1 %v14195_v4 }
 0x227   : > { %11534 = vmatmul.mubr.f32.vlgmr.msra.gmra.mxu1 %v12823_v38  ;;  %11546 = vmatprep.subr.mxu0 %v14195_v4 }
 0x228   : > { %11539 = vmatmul.mubr.f32.vlgmr.msra.gmra.mxu0 %v8181_v53  ;;  %11542 = vmatpush3.xpose.msra.mxu1 %v8181_v53 }
 0x229   : > { %11547 = vmatpush3.xpose.msra.mxu0 %v8178_v48  ;;  %11543 = vmatprep.mubr.msk.f32.mxu1 %vm11840_vm10, %v14195_v4 }
 0x22a   : > { %11548 = vmatprep.mubr.msk.f32.mxu0 %vm11840_vm10, %v14195_v4  ;;  %11551 = vmatprep.subr.mxu1 %v14195_v4 }
 0x22b   : > { %11544 = vmatmul.mubr.f32.vlgmr.msra.gmra.mxu1 %v12856_v44  ;;  %11556 = vmatprep.subr.mxu0 %v14195_v4 }
 0x22c   : > { %11549 = vmatmul.mubr.f32.vlgmr.msra.gmra.mxu0 %v8178_v48  ;;  %11552 = vmatpush3.xpose.msra.mxu1 %v12856_v44 }
 0x22d   : > { %11557 = vmatpush3.xpose.msra.mxu0 %v8179_v50  ;;  %11553 = vmatprep.mubr.msk.f32.mxu1 %vm11840_vm10, %v14195_v4 }
 0x22e   : > { %11558 = vmatprep.mubr.msk.f32.mxu0 %vm11840_vm10, %v14195_v4  ;;  %11561 = vmatprep.subr.mxu1 %v14195_v4 }
 0x22f   : > { %11554 = vmatmul.mubr.f32.vlgmr.msra.gmra.mxu1 %v8179_v50  ;;  %9360 = vadd.xlane.f32.xlu0 %v14195_v4 }
 0x230   : > { %11559 = vmatmul.mubr.f32.vlgmr.msra.gmra.mxu0 %v12856_v44  ;;  %11562 = vmatpush3.xpose.msra.mxu1 %v12856_v44 }
 0x231   : > { %11563 = vmatprep.mubr.msk.f32.mxu1 %vm11840_vm10, %v14195_v4  ;;  %9345 = vadd.xlane.f32.xlu1 %v14195_v4 }
 0x233   : > { %11564 = vmatmul.mubr.f32.vlgmr.msra.gmra.mxu1 %v12856_v44  ;;  %9366 = vadd.xlane.f32.xlu0 %v14195_v4 }
 0x234   : > { %v1008_v54 = vpop.f32.mrf.mxu0 }
 0x235   : > { %9357 = vadd.xlane.f32.xlu1 %v14195_v4 }
 0x236   : > { %v11090_v55 = vpop.f32.mrf.mxu0 }
 0x237   : > { %v1084_v57 = vpop.f32.mrf.mxu1  ;;  %9372 = vadd.xlane.f32.xlu0 %v14195_v4 }
 0x238   : > { %v1085_v58 = vadd.f32 %v1084_v57, %v1008_v54  ;;  %v1158_v59 = vpop.f32.mrf.mxu0 }
 0x239   : > { %v11095_v60 = vpop.f32.mrf.mxu1  ;;  %9363 = vadd.xlane.f32.xlu1 %v14195_v4 }
 0x23a   : > { %v1159_v61 = vadd.f32 %v1158_v59, %v1085_v58  ;;  %v11100_v62 = vpop.f32.mrf.mxu0 }
 0x23b   : > { %v1232_v63 = vpop.f32.mrf.mxu1  ;;  %9378 = vadd.xlane.f32.xlu0 %v14195_v4 }
 0x23c   : > { %v1233_v0 = vadd.f32 %v1232_v63, %v1159_v61  ;;  %v1306_v1 = vpop.f32.mrf.mxu0 }
 0x23d   : > { %v11105_v3 = vpop.f32.mrf.mxu1  ;;  %9369 = vadd.xlane.f32.xlu1 %v14195_v4 }
 0x23e   : > { %v1307_v5 = vadd.f32 %v1306_v1, %v1233_v0  ;;  %v11110_v43 = vpop.f32.mrf.mxu0 }
 0x23f   : > { %v1378_v7 = vpop.f32.mrf.mxu1  ;;  %9384 = vadd.xlane.f32.xlu0 %v14195_v4 }
 0x240   : > { %v1379_v45 = vadd.f32 %v1378_v7, %v1307_v5  ;;  %v1478_v8 = vpop.f32.mrf.mxu0 }
 0x241   : > { %v11115_v47 = vpop.f32.mrf.mxu1  ;;  %9375 = vadd.xlane.f32.xlu1 %v14195_v4 }
 0x242   : > { %v1479_v10 = vadd.f32 %v1478_v8, %v1379_v45  ;;  %v11120_v49 = vpop.f32.mrf.mxu0 }
 0x243   : > { %v1554_v12 = vpop.f32.mrf.mxu1  ;;  %9390 = vadd.xlane.f32.xlu0 %v14195_v4 }
 0x244   : > { %v1555_v51 = vadd.f32 %v1554_v12, %v1479_v10  ;;  %v1628_v56 = vpop.f32.mrf.mxu0 }
 0x245   : > { %v11125_v15 = vpop.f32.mrf.mxu1  ;;  %9381 = vadd.xlane.f32.xlu1 %v14195_v4 }
 0x246   : > { %v1629_v17 = vadd.f32 %v1628_v56, %v1555_v51  ;;  %v11130_v19 = vpop.f32.mrf.mxu0 }
 0x247   : > { %v1702_v21 = vpop.f32.mrf.mxu1  ;;  %9396 = vadd.xlane.f32.xlu0 %v14195_v4 }
 0x248   : > { %v1703_v23 = vadd.f32 %v1702_v21, %v1629_v17  ;;  %v1776_v25 = vpop.f32.mrf.mxu0 }
 0x249   : > { %v11135_v26 = vpop.f32.mrf.mxu1  ;;  %9387 = vadd.xlane.f32.xlu1 %v14195_v4 }
 0x24a   : > { %v1777_v27 = vadd.f32 %v1776_v25, %v1703_v23  ;;  %v11140_v28 = vpop.f32.mrf.mxu0 }
 0x24b   : > { %v1848_v29 = vpop.f32.mrf.mxu1  ;;  %9408 = vadd.xlane.f32.xlu0 %v14195_v4 }
 0x24c   : > { %v1849_v30 = vadd.f32 %v1848_v29, %v1777_v27  ;;  %v1956_v31 = vpop.f32.mrf.mxu0 }
 0x24d   : > { %v11145_v32 = vpop.f32.mrf.mxu1  ;;  %9393 = vadd.xlane.f32.xlu1 %v14195_v4 }
 0x24e   : > { %v11150_v33 = vpop.f32.mrf.mxu0 }
 0x24f   : > { %v2032_v34 = vpop.f32.mrf.mxu1  ;;  %9414 = vadd.xlane.f32.xlu0 %v14195_v4 }
 0x250   : > { %v2033_v35 = vadd.f32 %v2032_v34, %v1956_v31  ;;  %v2106_v13 = vpop.f32.mrf.mxu0 }
 0x251   : > { %v11155_v36 = vpop.f32.mrf.mxu1  ;;  %9405 = vadd.xlane.f32.xlu1 %v14195_v4 }
 0x252   : > { %v2107_v37 = vadd.f32 %v2106_v13, %v2033_v35  ;;  %v11160_v38 = vpop.f32.mrf.mxu0 }
 0x253   : > { %v2180_v14 = vpop.f32.mrf.mxu1  ;;  %9420 = vadd.xlane.f32.xlu0 %v14195_v4 }
 0x254   : > { %v2181_v39 = vadd.f32 %v2180_v14, %v2107_v37  ;;  %v2254_v16 = vpop.f32.mrf.mxu0 }
 0x255   : > { %v11165_v40 = vpop.f32.mrf.mxu1  ;;  %9411 = vadd.xlane.f32.xlu1 %v14195_v4 }
 0x256   : > { %v2255_v18 = vadd.f32 %v2254_v16, %v2181_v39  ;;  %v11170_v41 = vpop.f32.mrf.mxu0 }
 0x257   : > { %v2326_v20 = vpop.f32.mrf.mxu1  ;;  %9426 = vadd.xlane.f32.xlu0 %v14195_v4 }
 0x258   : > { %v2327_v24 = vadd.f32 %v2326_v20, %v2255_v18  ;;  %v2435_v42 = vpop.f32.mrf.mxu0 }
 0x259   : > { %v11175_v44 = vpop.f32.mrf.mxu1  ;;  %9417 = vadd.xlane.f32.xlu1 %v14195_v4 }
 0x25a   : > { %v2330_v46 = vadd.f32 %v2327_v24, %v1849_v30  ;;  %v11180_v48 = vpop.f32.mrf.mxu0 }
 0x25b   : > { %v2511_v50 = vpop.f32.mrf.mxu1  ;;  %9432 = vadd.xlane.f32.xlu0 %v14195_v4 }
 0x25c   : > { %v2512_v52 = vadd.f32 %v2511_v50, %v2435_v42  ;;  %v2585_v53 = vpop.f32.mrf.mxu0 }
 0x25d   : > { %v11185_v54 = vpop.f32.mrf.mxu1  ;;  %9423 = vadd.xlane.f32.xlu1 %v14195_v4 }
 0x25e   : > { %v2586_v55 = vadd.f32 %v2585_v53, %v2512_v52  ;;  %v11190_v57 = vpop.f32.mrf.mxu0 }
 0x25f   : > { %v2659_v58 = vpop.f32.mrf.mxu1  ;;  %9438 = vadd.xlane.f32.xlu0 %v14195_v4 }
 0x260   : > { %v2660_v59 = vadd.f32 %v2659_v58, %v2586_v55  ;;  %v2733_v60 = vpop.f32.mrf.mxu0 }
 0x261   : > { %v11195_v61 = vpop.f32.mrf.mxu1  ;;  %9429 = vadd.xlane.f32.xlu1 %v14195_v4 }
 0x262   : > { %v2734_v62 = vadd.f32 %v2733_v60, %v2660_v59  ;;  %v11200_v63 = vpop.f32.mrf.mxu0 }
 0x263   : > { %v2805_v0 = vpop.f32.mrf.mxu1  ;;  %9444 = vadd.xlane.f32.xlu0 %v14195_v4 }
 0x264   : > { %v2806_v1 = vadd.f32 %v2805_v0, %v2734_v62  ;;  %v2914_v3 = vpop.f32.mrf.mxu0 }
 0x265   : > { %v11205_v5 = vpop.f32.mrf.mxu1  ;;  %9435 = vadd.xlane.f32.xlu1 %v14195_v4 }
 0x266   : > { %v2809_v43 = vadd.f32 %v2806_v1, %v2330_v46  ;;  %v11210_v7 = vpop.f32.mrf.mxu0 }
 0x267   : > { %v2990_v45 = vpop.f32.mrf.mxu1  ;;  %9456 = vadd.xlane.f32.xlu0 %v14195_v4 }
 0x268   : > { %v2991_v8 = vadd.f32 %v2990_v45, %v2914_v3  ;;  %v3064_v47 = vpop.f32.mrf.mxu0 }
 0x269   : > { %v11215_v10 = vpop.f32.mrf.mxu1  ;;  %9441 = vadd.xlane.f32.xlu1 %v14195_v4 }
 0x26a   : > { %v3065_v49 = vadd.f32 %v3064_v47, %v2991_v8  ;;  %v11220_v12 = vpop.f32.mrf.mxu0 }
 0x26b   : > { %v3138_v51 = vpop.f32.mrf.mxu1  ;;  %9462 = vadd.xlane.f32.xlu0 %v14195_v4 }
 0x26c   : > { %v3139_v56 = vadd.f32 %v3138_v51, %v3065_v49  ;;  %v3212_v15 = vpop.f32.mrf.mxu0 }
 0x26d   : > { %v11225_v17 = vpop.f32.mrf.mxu1  ;;  %9453 = vadd.xlane.f32.xlu1 %v14195_v4 }
 0x26e   : > { %v3213_v19 = vadd.f32 %v3212_v15, %v3139_v56  ;;  %v11230_v21 = vpop.f32.mrf.mxu0 }
 0x26f   : > { %v3284_v23 = vpop.f32.mrf.mxu1  ;;  %9468 = vadd.xlane.f32.xlu0 %v14195_v4 }
 0x270   : > { %v3285_v25 = vadd.f32 %v3284_v23, %v3213_v19  ;;  %v3393_v26 = vpop.f32.mrf.mxu0 }
 0x271   : > { %v11235_v27 = vpop.f32.mrf.mxu1  ;;  %9459 = vadd.xlane.f32.xlu1 %v14195_v4 }
 0x272   : > { %v3288_v28 = vadd.f32 %v3285_v25, %v2809_v43  ;;  %v11240_v29 = vpop.f32.mrf.mxu0 }
 0x273   : > { %v3469_v30 = vpop.f32.mrf.mxu1  ;;  %9474 = vadd.xlane.f32.xlu0 %v14195_v4 }
 0x274   : > { %v3470_v31 = vadd.f32 %v3469_v30, %v3393_v26  ;;  %v3543_v32 = vpop.f32.mrf.mxu0 }
 0x275   : > { %v11245_v33 = vpop.f32.mrf.mxu1  ;;  %9465 = vadd.xlane.f32.xlu1 %v14195_v4 }
 0x276   : > { %v3544_v34 = vadd.f32 %v3543_v32, %v3470_v31  ;;  %v11250_v35 = vpop.f32.mrf.mxu0 }
 0x277   : > { %v3617_v13 = vpop.f32.mrf.mxu1  ;;  %9480 = vadd.xlane.f32.xlu0 %v14195_v4 }
 0x278   : > { %v3618_v36 = vadd.f32 %v3617_v13, %v3544_v34  ;;  %v3691_v37 = vpop.f32.mrf.mxu0 }
 0x279   : > { %v11255_v38 = vpop.f32.mrf.mxu1  ;;  %9471 = vadd.xlane.f32.xlu1 %v14195_v4 }
 0x27a   : > { %v3692_v14 = vadd.f32 %v3691_v37, %v3618_v36  ;;  %v11260_v39 = vpop.f32.mrf.mxu0 }
 0x27b   : > { %v3763_v16 = vpop.f32.mrf.mxu1  ;;  %9486 = vadd.xlane.f32.xlu0 %v14195_v4 }
 0x27c   : > { %v3764_v40 = vadd.f32 %v3763_v16, %v3692_v14  ;;  %v3872_v18 = vpop.f32.mrf.mxu0 }
 0x27d   : > { %v11265_v41 = vpop.f32.mrf.mxu1  ;;  %9477 = vadd.xlane.f32.xlu1 %v14195_v4 }
 0x27e   : > { %v3767_v20 = vadd.f32 %v3764_v40, %v3288_v28  ;;  %v11270_v24 = vpop.f32.mrf.mxu0 }
 0x27f   : > { %v3948_v42 = vpop.f32.mrf.mxu1  ;;  %9492 = vadd.xlane.f32.xlu0 %v14195_v4 }
 0x280   : > { %v3949_v44 = vadd.f32 %v3948_v42, %v3872_v18  ;;  %v4022_v46 = vpop.f32.mrf.mxu0 }
 0x281   : > { %v11275_v48 = vpop.f32.mrf.mxu1  ;;  %9483 = vadd.xlane.f32.xlu1 %v14195_v4 }
 0x282   : > { %v4023_v50 = vadd.f32 %v4022_v46, %v3949_v44  ;;  %v11280_v52 = vpop.f32.mrf.mxu0 }
 0x283   : > { %v4096_v53 = vpop.f32.mrf.mxu1  ;;  %9504 = vadd.xlane.f32.xlu0 %v14195_v4 }
 0x284   : > { %v4097_v54 = vadd.f32 %v4096_v53, %v4023_v50  ;;  %v4170_v55 = vpop.f32.mrf.mxu0 }
 0x285   : > { %v11285_v57 = vpop.f32.mrf.mxu1  ;;  %9489 = vadd.xlane.f32.xlu1 %v14195_v4 }
 0x286   : > { %v4171_v58 = vadd.f32 %v4170_v55, %v4097_v54  ;;  %v11290_v59 = vpop.f32.mrf.mxu0 }
 0x287   : > { %v4242_v60 = vpop.f32.mrf.mxu1 }
 0x288   : > { %v4243_v61 = vadd.f32 %v4242_v60, %v4171_v58  ;;  %v4351_v62 = vpop.f32.mrf.mxu0 }
 0x289   : > { %v11295_v63 = vpop.f32.mrf.mxu1  ;;  %9501 = vadd.xlane.f32.xlu1 %v14195_v4 }
 0x28a   : > { %v4246_v0 = vadd.f32 %v4243_v61, %v3767_v20  ;;  %v11300_v1 = vpop.f32.mrf.mxu0 }
 0x28b   : > { %v4427_v3 = vpop.f32.mrf.mxu1 }
 0x28c   : > { %v4428_v5 = vadd.f32 %v4427_v3, %v4351_v62  ;;  %v4501_v43 = vpop.f32.mrf.mxu0 }
 0x28d   : > { %v11305_v7 = vpop.f32.mrf.mxu1  ;;  %9507 = vadd.xlane.f32.xlu1 %v14195_v4 }
 0x28e   : > { %v4502_v45 = vadd.f32 %v4501_v43, %v4428_v5  ;;  %v11310_v8 = vpop.f32.mrf.mxu0 }
 0x28f   : > { %v4575_v47 = vpop.f32.mrf.mxu1 }
 0x290   : > { %v4576_v10 = vadd.f32 %v4575_v47, %v4502_v45  ;;  %v4649_v49 = vpop.f32.mrf.mxu0 }
 0x291   : > { %v11315_v12 = vpop.f32.mrf.mxu1  ;;  %9513 = vadd.xlane.f32.xlu1 %v14195_v4 }
 0x292   : > { %v4650_v51 = vadd.f32 %v4649_v49, %v4576_v10  ;;  %v11320_v56 = vpop.f32.mrf.mxu0 }
 0x293   : > { %v4721_v15 = vpop.f32.mrf.mxu1 }
 0x294   : > { %v4722_v17 = vadd.f32 %v4721_v15, %v4650_v51  ;;  %v4830_v19 = vpop.f32.mrf.mxu0 }
 0x295   : > { %v11325_v21 = vpop.f32.mrf.mxu1  ;;  %9519 = vadd.xlane.f32.xlu1 %v14195_v4 }
 0x296   : > { %v4725_v23 = vadd.f32 %v4722_v17, %v4246_v0  ;;  %v11330_v25 = vpop.f32.mrf.mxu0 }
 0x297   : > { %v4906_v26 = vpop.f32.mrf.mxu1 }
 0x298   : > { %v4907_v27 = vadd.f32 %v4906_v26, %v4830_v19  ;;  %v4980_v28 = vpop.f32.mrf.mxu0 }
 0x299   : > { %v11335_v29 = vpop.f32.mrf.mxu1  ;;  %9525 = vadd.xlane.f32.xlu1 %v14195_v4 }
 0x29a   : > { %v4981_v30 = vadd.f32 %v4980_v28, %v4907_v27  ;;  %v11340_v31 = vpop.f32.mrf.mxu0 }
 0x29b   : > { %v5054_v32 = vpop.f32.mrf.mxu1 }
 0x29c   : > { %v5055_v33 = vadd.f32 %v5054_v32, %v4981_v30  ;;  %v5128_v34 = vpop.f32.mrf.mxu0 }
 0x29d   : > { %v11345_v35 = vpop.f32.mrf.mxu1  ;;  %9531 = vadd.xlane.f32.xlu1 %v14195_v4 }
 0x29e   : > { %v5129_v13 = vadd.f32 %v5128_v34, %v5055_v33  ;;  %v11350_v36 = vpop.f32.mrf.mxu0 }
 0x29f   : > { %v5200_v37 = vpop.f32.mrf.mxu1  ;;  %v13008_v36 = vpop.xlane.xlu0 %9312 }
 0x2a0   : > { %v5201_v38 = vadd.f32 %v5200_v37, %v5129_v13  ;;  %v12967_v14 = vpop.f32.mrf.mxu0 }
 0x2a1   : > { %v11355_v39 = vpop.f32.mrf.mxu1  ;;  %9537 = vadd.xlane.f32.xlu1 %v14195_v4 }
 0x2a2   : > { %v12970_v16 = vadd.f32 %v5201_v38, %v4725_v23  ;;  %v11360_v40 = vpop.f32.mrf.mxu0 }
 0x2a3   : > { %v12972_v18 = vpop.f32.mrf.mxu1 }
 0x2a4   : > { %v12974_v41 = vpop.f32.mrf.mxu0  ;;  %v5386_v37 = vadd.f32 %v12972_v18, %v12967_v14 }
 0x2a5   : > { %v11365_v20 = vpop.f32.mrf.mxu1  ;;  %9549 = vadd.xlane.f32.xlu1 %v14195_v4 }
 0x2a6   : > { %v11370_v24 = vpop.f32.mrf.mxu0 }
 0x2a7   : > { %v12977_v42 = vpop.f32.mrf.mxu1 }
 0x2a8   : > { %v12979_v44 = vpop.f32.mrf.mxu0 }
 0x2a9   : > { %v11375_v46 = vpop.f32.mrf.mxu1  ;;  %9597 = vadd.xlane.f32.xlu1 %v14195_v4 }
 0x2aa   : > { %v11380_v48 = vpop.f32.mrf.mxu0  ;;  %v13013_v46 = vpop.xlane.xlu1 %9309 }
 0x2ab   : > { %v12982_v50 = vpop.f32.mrf.mxu1  ;;  %v5460_v48 = vadd.f32 %v12974_v41, %v5386_v37 }
 0x2ac   : > { %v5788_v52 = vpop.f32.mrf.mxu0 }
 0x2ad   : > { %v11385_v53 = vpop.f32.mrf.mxu1  ;;  %9600 = vadd.xlane.f32.xlu1 %v14195_v4  ;;  %v5534_v18 = vadd.f32 %v12977_v42, %v5460_v48 }
 0x2ae   : > { %v11390_v54 = vpop.f32.mrf.mxu0 }
 0x2af   : > { %v5864_v55 = vpop.f32.mrf.mxu1 }
 0x2b0   : > { %v5938_v57 = vpop.f32.mrf.mxu0  ;;  %v5865_v40 = vadd.f32 %v5864_v55, %v5788_v52 }
 0x2b1   : > { %v11395_v58 = vpop.f32.mrf.mxu1  ;;  %9558 = vadd.xlane.f32.xlu1 %v14195_v4 }
 0x2b2   : > { %v11400_v59 = vpop.f32.mrf.mxu0 }
 0x2b3   : > { %v12986_v60 = vpop.f32.mrf.mxu1  ;;  %v13017_v59 = vpop.xlane.xlu0 %9318 }
 0x2b4   : > { %v12988_v61 = vpop.f32.mrf.mxu0 }
 0x2b5   : > { %v11405_v62 = vpop.f32.mrf.mxu1  ;;  %9648 = vadd.xlane.f32.xlu1 %v14195_v4 }
 0x2b6   : > { %v11410_v63 = vpop.f32.mrf.mxu0  ;;  %v5939_v62 = vadd.f32 %v5938_v57, %v5865_v40 }
 0x2b7   : > { %v12991_v0 = vpop.f32.mrf.mxu1  ;;  %v13024_v57 = vpop.xlane.xlu0 %9324 }
 0x2b8   : > { %v6267_v1 = vpop.f32.mrf.mxu0  ;;  %v6013_v41 = vadd.f32 %v12986_v60, %v5939_v62 }
 0x2b9   : > { %v11415_v3 = vpop.f32.mrf.mxu1  ;;  %9606 = vadd.xlane.f32.xlu1 %v14195_v4 }
 0x2ba   : > { %v11420_v5 = vpop.f32.mrf.mxu0 }
 0x2bb   : > { %v6343_v43 = vpop.f32.mrf.mxu1 }
 0x2bc   : > { %v6417_v7 = vpop.f32.mrf.mxu0  ;;  %v6344_v53 = vadd.f32 %v6343_v43, %v6267_v1 }
 0x2bd   : > { %v11425_v45 = vpop.f32.mrf.mxu1  ;;  %9564 = vadd.xlane.f32.xlu1 %v14195_v4 }
 0x2be   : > { %v11430_v8 = vpop.f32.mrf.mxu0  ;;  %v6418_v52 = vadd.f32 %v6417_v7, %v6344_v53 }
 0x2bf   : > { %v6491_v47 = vpop.f32.mrf.mxu1  ;;  %v13021_v8 = vpop.xlane.xlu1 %9315 }
 0x2c0   : > { %v12995_v10 = vpop.f32.mrf.mxu0 }
 0x2c1   : > { %v11435_v49 = vpop.f32.mrf.mxu1  ;;  %9654 = vadd.xlane.f32.xlu1 %v14195_v4 }
 0x2c2   : > { %v11440_v12 = vpop.f32.mrf.mxu0 }
 0x2c3   : > { %v12998_v51 = vpop.f32.mrf.mxu1 }
 0x2c4   : > { %v6746_v56 = vpop.f32.mrf.mxu0 }
 0x2c5   : > { %v11445_v15 = vpop.f32.mrf.mxu1  ;;  %9612 = vadd.xlane.f32.xlu1 %v14195_v4 }
 0x2c6   : > { %v11450_v17 = vpop.f32.mrf.mxu0  ;;  %v6492_v15 = vadd.f32 %v6491_v47, %v6418_v52 }
 0x2c7   : > { %v6822_v19 = vpop.f32.mrf.mxu1 }
 0x2c8   : > { %v6896_v21 = vpop.f32.mrf.mxu0  ;;  %v6823_v63 = vadd.f32 %v6822_v19, %v6746_v56  ;;  %v5608_v56 = vadd.f32 %v12979_v44, %v5534_v18  ;;  %v6087_v19 = vadd.f32 %v12988_v61, %v6013_v41 }
 0x2c9   : > { %v11455_v23 = vpop.f32.mrf.mxu1  ;;  %9570 = vadd.xlane.f32.xlu1 %v14195_v4 }
 0x2ca   : > { %v11460_v25 = vpop.f32.mrf.mxu0  ;;  %v6897_v1 = vadd.f32 %v6896_v21, %v6823_v63  ;;  %v13029_v21 = vpop.xlane.xlu1 %9321 }
 0x2cb   : > { %v6970_v26 = vpop.f32.mrf.mxu1 }
 0x2cc   : > { %v13002_v27 = vpop.f32.mrf.mxu0  ;;  %v6971_v23 = vadd.f32 %v6970_v26, %v6897_v1 }
 0x2cd   : > { %v11465_v28 = vpop.f32.mrf.mxu1  ;;  %9660 = vadd.xlane.f32.xlu1 %v14195_v4 }
 0x2ce   : > { %v11470_v29 = vpop.f32.mrf.mxu0  ;;  %v7045_v61 = vadd.f32 %v13002_v27, %v6971_v23 }
 0x2cf   : > { %v13005_v30 = vpop.f32.mrf.mxu1  ;;  %v5680_v29 = vadd.f32 %v12982_v50, %v5608_v56 }
 0x2d0   : > { %v7225_v31 = vpop.f32.mrf.mxu0 }
 0x2d1   : > { %v11475_v32 = vpop.f32.mrf.mxu1  ;;  %9618 = vadd.xlane.f32.xlu1 %v14195_v4  ;;  %v5683_v37 = vadd.f32 %v5680_v29, %v12970_v16 }
 0x2d2   : > { %v11480_v33 = vpop.f32.mrf.mxu0 }
 0x2d3   : > { %v7301_v34 = vpop.f32.mrf.mxu1  ;;  %v13034_v33 = vpop.xlane.xlu0 %9330 }
 0x2d4   : > { %v7375_v35 = vpop.f32.mrf.mxu0  ;;  %v7302_v55 = vadd.f32 %v7301_v34, %v7225_v31  ;;  %v6566_v31 = vadd.f32 %v12995_v10, %v6492_v15  ;;  %v6159_v34 = vadd.f32 %v12991_v0, %v6087_v19 }
 0x2d5   : > { %v11485_v13 = vpop.f32.mrf.mxu1  ;;  %9576 = vadd.xlane.f32.xlu1 %v14195_v4 }
 0x2d6   : > { %v11490_v38 = vpop.f32.mrf.mxu0  ;;  %v7376_v42 = vadd.f32 %v7375_v35, %v7302_v55  ;;  %v6162_v10 = vadd.f32 %v6159_v34, %v5683_v37 }
 0x2d7   : > { %v7449_v39 = vpop.f32.mrf.mxu1  ;;  %v6638_v38 = vadd.f32 %v12998_v51, %v6566_v31  ;;  %v13041_v0 = vpop.xlane.xlu0 %9336 }
 0x2d8   : > { %v7523_v20 = vpop.f32.mrf.mxu0  ;;  %v7450_v32 = vadd.f32 %v7449_v39, %v7376_v42  ;;  %v7117_v39 = vadd.f32 %v13005_v30, %v7045_v61 }
 0x2d9   : > { %v11495_v24 = vpop.f32.mrf.mxu1  ;;  %9666 = vadd.xlane.f32.xlu1 %v14195_v4  ;;  %v6641_v27 = vadd.f32 %v6638_v38, %v6162_v10 }
 0x2da   : > { %v11500_v54 = vpop.f32.mrf.mxu0  ;;  %v7524_v40 = vadd.f32 %v7523_v20, %v7450_v32 }
 0x2db   : > { %v7595_v58 = vpop.f32.mrf.mxu1  ;;  %v7120_v16 = vadd.f32 %v7117_v39, %v6641_v27 }
 0x2dc   : > { %v7704_v3 = vpop.f32.mrf.mxu0  ;;  %v7596_v63 = vadd.f32 %v7595_v58, %v7524_v40 }
 0x2dd   : > { %v11505_v14 = vpop.f32.mrf.mxu1  ;;  %9624 = vadd.xlane.f32.xlu1 %v14195_v4 }
 0x2de   : > { %v11510_v5 = vpop.f32.mrf.mxu0  ;;  %v7599_v30 = vadd.f32 %v7596_v63, %v7120_v16 }
 0x2df   : > { %v7780_v45 = vpop.f32.mrf.mxu1  ;;  %v13044_v5 = vand.u32 127, %v173_v2 }
 0x2e0   : > { %v7781_v43 = vadd.f32 %v7780_v45, %v7704_v3  ;;  %v7854_v49 = vpop.f32.mrf.mxu0 }
 0x2e1   : > { %v11515_v12 = vpop.f32.mrf.mxu1  ;;  %9582 = vadd.xlane.f32.xlu1 %v14195_v4  ;;  %vm8560_vm11 = vcmp.eq.s32.totalorder %v12007_v6, %v13044_v5 }
 0x2e2   : > { %v11520_v7 = vpop.f32.mrf.mxu0  ;;  %v7855_v25 = vadd.f32 %v7854_v49, %v7781_v43  ;;  %v13046_v43 = vpop.xlane.xlu0 %9342 }
 0x2e3   : > { %v7928_v17 = vpop.f32.mrf.mxu1 }
 0x2e4   : > { %v8002_v28 = vpop.f32.mrf.mxu0  ;;  %v7929_v26 = vadd.f32 %v7928_v17, %v7855_v25  ;;  %v13070_v25 = vpop.xlane.xlu1 %9327 }
 0x2e5   : > { %v11525_v60 = vpop.f32.mrf.mxu1  ;;  %9672 = vadd.xlane.f32.xlu1 %v14195_v4 }
 0x2e6   : > { %v11530_v44 = vpop.f32.mrf.mxu0  ;;  %v8003_v48 = vadd.f32 %v8002_v28, %v7929_v26  ;;  %v13054_v42 = vpop.xlane.xlu0 %9348 }
 0x2e7   : > { %v8074_v47 = vpop.f32.mrf.mxu1  ;;  %14294 = vst [vmem:[#allocation10_spill] sm:$0xff] %v13054_v42 }
 0x2e8   : > { %v8183_v35 = vpop.f32.mrf.mxu0  ;;  %v8075_v52 = vadd.f32 %v8074_v47, %v8003_v48  ;;  %v13076_v60 = vpop.xlane.xlu1 %9333 }
 0x2e9   : > { %v11535_v13 = vpop.f32.mrf.mxu1 }
 0x2ea   : > { %v11540_v50 = vpop.f32.mrf.mxu0  ;;  %v8078_v49 = vadd.f32 %v8075_v52, %v7599_v30  ;;  %v13057_v7 = vpop.xlane.xlu0 %9360 }
 0x2eb   : > { %v8259_v24 = vpop.f32.mrf.mxu1 }
 0x2ec   : > { %v8260_v53 = vadd.f32 %v8259_v24, %v8183_v35  ;;  %v8333_v54 = vpop.f32.mrf.mxu0  ;;  %v13081_v31 = vpop.xlane.xlu1 %9339 }
 0x2ed   : > { %v11545_v62 = vpop.f32.mrf.mxu1 }
 0x2ee   : > { %v8334_v3 = vadd.f32 %v8333_v54, %v8260_v53  ;;  %v11550_v14 = vpop.f32.mrf.mxu0  ;;  %v13060_v17 = vpop.xlane.xlu0 %9366 }
 0x2ef   : > { %v8407_v18 = vpop.f32.mrf.mxu1 }
 0x2f0   : > { %v8408_v51 = vadd.f32 %v8407_v18, %v8334_v3  ;;  %v8481_v20 = vpop.f32.mrf.mxu0  ;;  %v13087_v44 = vpop.xlane.xlu1 %9345 }
 0x2f1   : > { %v11555_v55 = vpop.f32.mrf.mxu1  ;;  %14298 = vst [vmem:[#allocation14_spill] sm:$0xff] %v13087_v44 }
 0x2f2   : > { %v8482_v45 = vadd.f32 %v8481_v20, %v8408_v51  ;;  %v11560_v41 = vpop.f32.mrf.mxu0  ;;  %v13064_v19 = vpop.xlane.xlu0 %9372 }
 0x2f3   : > { %v8553_v1 = vpop.f32.mrf.mxu1 }
 0x2f4   : > { %v8554_v12 = vadd.f32 %v8553_v1, %v8482_v45  ;;  %v13092_v34 = vpop.xlane.xlu1 %9357 }
 0x2f5   : > { %v11565_v58 = vpop.f32.mrf.mxu1 }
 0x2f6   : > { %v13050_v56 = vadd.f32 %v8554_v12, %v8078_v49  ;;  %v13067_v23 = vpop.xlane.xlu0 %9378 }
 0x2f8   : > { %v8561_v15 = vsel %vm8560_vm11, %v13050_v56, 0.0  ;;  %v13098_v26 = vpop.xlane.xlu1 %9363 }
 0x2f9   : > { %v8563_v2 = vsel %vm8562_vm12, %v8561_v15, 0.0 }
 0x2fa   : > { %8564 = vadd.xlane.f32.xlu0 %v8563_v2  ;;  %v13073_v28 = vpop.xlane.xlu0 %9384  ;;  %v8574_v14 = vrot.slane %v8563_v2, 4 }
 0x2fb   : > { %14295 = vst [vmem:[#allocation11_spill] sm:$0xff] %v13073_v28 }
 0x2fc   : > { %v13103_v13 = vpop.xlane.xlu1 %9369  ;;  %v8575_v16 = vadd.f32 %v8574_v14, %v8563_v2 }
 0x2fe   : > { %9510 = vadd.xlane.f32.xlu0 %v14195_v4  ;;  %v13078_v29 = vpop.xlane.xlu0 %9390  ;;  %v8576_v20 = vrot.slane %v8575_v16, 2 }
 0x2ff   : > { %14296 = vst [vmem:[#allocation12_spill] sm:$0xff] %v13078_v29 }
 0x300   : > { %v13109_v38 = vpop.xlane.xlu1 %9375  ;;  %v8577_v30 = vadd.f32 %v8576_v20, %v8575_v16 }
 0x301   : > { %14301 = vst [vmem:[#allocation17_spill] sm:$0xff] %v13109_v38 }
 0x302   : > { %9516 = vadd.xlane.f32.xlu0 %v14195_v4  ;;  %v13084_v32 = vpop.xlane.xlu0 %9396  ;;  %v8578_v41 = vrot.slane %v8577_v30, 1 }
 0x303   : > { %14297 = vst [vmem:[#allocation13_spill] sm:$0xff] %v13084_v32 }
 0x304   : > { %v13114_v50 = vpop.xlane.xlu1 %9381  ;;  %v8579_v12 = vadd.f32 %v8578_v41, %v8577_v30 }
 0x305   : > { %14303 = vst [vmem:[#allocation19_spill] sm:$0xff] %v13114_v50 }
 0x306   : > { %9522 = vadd.xlane.f32.xlu0 %v14195_v4  ;;  %v13089_v47 = vpop.xlane.xlu0 %9408  ;;  %11675 = vrsqrt.f32 %v8579_v12  ;;  %vm8582_vm13 = vcmp.eq.f32.partialorder %v8579_v12, inf  ;;  %vm8584_vm14 = vcmp.eq.f32.partialorder %v8579_v12, 0.0 }
 0x308   : > { %v13120_v10 = vpop.xlane.xlu1 %9387 }
 0x309   : > { %14305 = vst [vmem:[#allocation21_spill] sm:$0xff] %v13120_v10 }
 0x30a   : > { %9528 = vadd.xlane.f32.xlu0 %v14195_v4  ;;  %v13095_v61 = vpop.xlane.xlu0 %9414 }
 0x30c   : > { %v13125_v48 = vpop.xlane.xlu1 %9393 }
 0x30d   : > { %14307 = vst [vmem:[#allocation23_spill] sm:$0xff] %v13125_v48 }
 0x30e   : > { %9534 = vadd.xlane.f32.xlu0 %v14195_v4  ;;  %v13100_v35 = vpop.xlane.xlu0 %9420 }
 0x30f   : > { %14299 = vst [vmem:[#allocation15_spill] sm:$0xff] %v13100_v35 }
 0x310   : > { %v13131_v54 = vpop.xlane.xlu1 %9405 }
 0x311   : > { %14309 = vst [vmem:[#allocation25_spill] sm:$0xff] %v13131_v54 }
 0x312   : > { %9540 = vadd.xlane.f32.xlu0 %v14195_v4  ;;  %v13106_v37 = vpop.xlane.xlu0 %9426 }
 0x313   : > { %14300 = vst [vmem:[#allocation16_spill] sm:$0xff] %v13106_v37  ;;  %v11676_v16 = vpop.eup %11675 }
 0x314   : > { %v13135_v27 = vpop.xlane.xlu1 %9411  ;;  %v8581_v20 = vmul.f32 %v11676_v16, %v8579_v12 }
 0x315   : > { %14311 = vst [vmem:[#allocation27_spill] sm:$0xff] %v13135_v27 }
 0x316   : > { %9552 = vadd.xlane.f32.xlu0 %v14195_v4  ;;  %v13111_v40 = vpop.xlane.xlu0 %9432 }
 0x317   : > { %14302 = vst [vmem:[#allocation18_spill] sm:$0xff] %v13111_v40 }
 0x318   : > { %v13139_v3 = vpop.xlane.xlu1 %9417  ;;  %v14389_v32 = vld [vmem:[#allocation25_spill] sm:$0xff] }
 0x319   : > { %14313 = vst [vmem:[#allocation29_spill] sm:$0xff] %v13139_v3  ;;  %v8585_v3 = vand.u32 2147483648, %v8579_v12 }
 0x31a   : > { %9555 = vadd.xlane.f32.xlu0 %v14195_v4  ;;  %v13117_v24 = vpop.xlane.xlu0 %9438 }
 0x31b   : > { %14304 = vst [vmem:[#allocation20_spill] sm:$0xff] %v13117_v24 }
 0x31c   : > { %v13143_v52 = vpop.xlane.xlu1 %9423 }
 0x31d   : > { %14315 = vst [vmem:[#allocation31_spill] sm:$0xff] %v13143_v52 }
 0x31e   : > { %9645 = vadd.xlane.f32.xlu0 %v14195_v4  ;;  %v13122_v39 = vpop.xlane.xlu0 %9444 }
 0x31f   : > { %14306 = vst [vmem:[#allocation22_spill] sm:$0xff] %v13122_v39 }
 0x320   : > { %v13147_v55 = vpop.xlane.xlu1 %9429 }
 0x321   : > { %14317 = vst [vmem:[#allocation33_spill] sm:$0xff] %v13147_v55 }
 0x322   : > { %9603 = vadd.xlane.f32.xlu0 %v14195_v4  ;;  %v13128_v53 = vpop.xlane.xlu0 %9456 }
 0x323   : > { %14308 = vst [vmem:[#allocation24_spill] sm:$0xff] %v13128_v53 }
 0x324   : > { %v13151_v1 = vpop.xlane.xlu1 %9435 }
 0x325   : > { %14319 = vst [vmem:[#allocation35_spill] sm:$0xff] %v13151_v1  ;;  %v8583_v1 = vsel %vm8582_vm13, %v8579_v12, %v8581_v20  ;;  %v8605_v20 = vadd.s32 1, %v12037_v22 }
 0x326   : > { %9561 = vadd.xlane.f32.xlu0 %v14195_v4  ;;  %v13133_v62 = vpop.xlane.xlu0 %9462 }
 0x327   : > { %14310 = vst [vmem:[#allocation26_spill] sm:$0xff] %v13133_v62 }
 0x328   : > { %v13155_v58 = vpop.xlane.xlu1 %9441 }
 0x329   : > { %14321 = vst [vmem:[#allocation37_spill] sm:$0xff] %v13155_v58  ;;  %v8586_v58 = vsel %vm8584_vm14, %v8585_v3, %v8583_v1  ;;  %v10691_v1 = vadd.s32 4294967292, %v12037_v22 }
 0x32a   : > { %9651 = vadd.xlane.f32.xlu0 %v14195_v4  ;;  %v13137_v63 = vpop.xlane.xlu0 %9468 }
 0x32b   : > { %14312 = vst [vmem:[#allocation28_spill] sm:$0xff] %v13137_v63  ;;  %vm8813_vm2 = vcmp.eq.s32.totalorder %v13044_v5, %v10691_v1 }
 0x32c   : > { %v13159_v2 = vpop.xlane.xlu1 %9453  ;;  %vm8957_vm11 = vmand %vm8813_vm2, %vm8941_vm1 }
 0x32d   : > { %14323 = vst [vmem:[#allocation39_spill] sm:$0xff] %v13159_v2 }
 0x32e   : > { %9609 = vadd.xlane.f32.xlu0 %v14195_v4  ;;  %v13141_v18 = vpop.xlane.xlu0 %9474 }
 0x32f   : > { %14314 = vst [vmem:[#allocation30_spill] sm:$0xff] %v13141_v18 }
 0x332   : > { %9567 = vadd.xlane.f32.xlu0 %v14195_v4  ;;  %v13145_v51 = vpop.xlane.xlu0 %9480 }
 0x333   : > { %14316 = vst [vmem:[#allocation32_spill] sm:$0xff] %v13145_v51 }
 0x336   : > { %9657 = vadd.xlane.f32.xlu0 %v14195_v4  ;;  %v13149_v45 = vpop.xlane.xlu0 %9486 }
 0x337   : > { %14318 = vst [vmem:[#allocation34_spill] sm:$0xff] %v13149_v45  ;;  %v9818_v45 = vadd.s32 4294967288, %v13044_v5 }
 0x33a   : > { %9615 = vadd.xlane.f32.xlu0 %v14195_v4  ;;  %v13153_v49 = vpop.xlane.xlu0 %9492 }
 0x33b   : > { %14320 = vst [vmem:[#allocation36_spill] sm:$0xff] %v13153_v49  ;;  %v13574_v49 = vsub.s32 %v9818_v45, %v12007_v6  ;;  %v13620_v45 = vsub.s32 %v13044_v5, %v12007_v6 }
 0x33e   : > { %9573 = vadd.xlane.f32.xlu0 %v14195_v4  ;;  %v13157_v15 = vpop.xlane.xlu0 %9504 }
 0x33f   : > { %14322 = vst [vmem:[#allocation38_spill] sm:$0xff] %v13157_v15 }
 0x342   : > { %9663 = vadd.xlane.f32.xlu0 %v14195_v4 }
 0x346   : > { %9621 = vadd.xlane.f32.xlu0 %v14195_v4 }
 0x34a   : > { %9579 = vadd.xlane.f32.xlu0 %v14195_v4 }
 0x34e   : > { %9669 = vadd.xlane.f32.xlu0 %v14195_v4 }
 0x352   : > { %9627 = vadd.xlane.f32.xlu0 %v14195_v4 }
 0x356   : > { %9585 = vadd.xlane.f32.xlu0 %v14195_v4  ;;  %v13161_v4 = vpop.xlane.xlu1 %9459 }
 0x357   : > { %14324 = vst [vmem:[#allocation40_spill] sm:$0xff] %v13161_v4  ;;  %v8587_v4 = vmax.f32 %v8586_v58, 1e-12  ;;  %v10707_v58 = vadd.s32 4294967292, %v8605_v20 }
 0x359   : > { %vm8829_vm10 = vcmp.eq.s32.totalorder %v13044_v5, %v10707_v58 }
 0x35a   : > { %v13163_v55 = vpop.xlane.xlu1 %9465  ;;  %vm13195_vm14 = vmand %vm8829_vm10, %vm8941_vm1 }
 0x35b   : > { %14325 = vst [vmem:[#allocation41_spill] sm:$0xff] %v13163_v55 }
 0x35e   : > { %v13165_v27 = vpop.xlane.xlu1 %9471 }
 0x35f   : > { %14326 = vst [vmem:[#allocation42_spill] sm:$0xff] %v13165_v27 }
 0x362   : > { %v13167_v16 = vpop.xlane.xlu1 %9477 }
 0x363   : > { %14327 = vst [vmem:[#allocation43_spill] sm:$0xff] %v13167_v16 }
 0x366   : > { %v13169_v55 = vpop.xlane.xlu1 %9483 }
 0x367   : > { %14328 = vst [vmem:[#allocation44_spill] sm:$0xff] %v13169_v55 }
 0x383   : > { %v8565_v14 = vpop.xlane.xlu0 %8564 }
 0x384   : > { %11677 = vrsqrt.f32 %v8565_v14  ;;  %vm8568_vm15 = vcmp.eq.f32.partialorder %v8565_v14, inf  ;;  %v8571_v41 = vand.u32 2147483648, %v8565_v14  ;;  %vm8570_vm0 = vcmp.eq.f32.partialorder %v8565_v14, 0.0 }
 0x387   : > { %v13207_v27 = vpop.xlane.xlu0 %9510 }
 0x388   : > { %14334 = vst [vmem:[#allocation48_spill] sm:$0xff] %v13207_v27 }
 0x391   : > { %v11678_v52 = vpop.eup %11677 }
 0x392   : > { %v8567_v30 = vmul.f32 %v11678_v52, %v8565_v14  ;;  %v13172_v52 = vpop.xlane.xlu1 %9489 }
 0x393   : > { %14329 = vst [vmem:[#allocation45_spill] sm:$0xff] %v13172_v52 }
 0x394   : > { %v8569_v2 = vsel %vm8568_vm15, %v8565_v14, %v8567_v30 }
 0x395   : > { %v8572_v54 = vsel %vm8570_vm0, %v8571_v41, %v8569_v2  ;;  %v8604_v2 = vadd.s32 1, %v12007_v6 }
 0x396   : > { %v8573_v48 = vmax.f32 %v8572_v54, 1e-12  ;;  %v8621_v54 = vadd.s32 2, %v12037_v22  ;;  %v13183_v55 = vpop.xlane.xlu1 %9501 }
 0x397   : > { %v10706_v52 = vadd.s32 4294967292, %v8604_v2  ;;  %14330 = vst [vmem:[#allocation46_spill] sm:$0xff] %v13183_v55 }
 0x398   : > { %11679 = vrcp.f32 %v8573_v48 }
 0x399   : > { %11681 = vrcp.f32 %v8587_v4  ;;  %v10690_v4 = vadd.s32 4294967292, %v12007_v6  ;;  %vm8828_vm15 = vcmp.eq.s32.totalorder %v13044_v5, %v10706_v52 }
 0x39a   : > { %v13205_v55 = vpop.xlane.xlu1 %9507 }
 0x39b   : > { %vm8812_vm13 = vcmp.eq.s32.totalorder %v13044_v5, %v10690_v4  ;;  %14333 = vst [vmem:[#allocation47_spill] sm:$0xff] %v13205_v55 }
 0x3a5   : > { %v11680_v12 = vpop.eup %11679 }
 0x3a6   : > { %v8589_v3 = vmul.f32 %v11680_v12, %v13050_v56  ;;  %v11682_v30 = vpop.eup %11681  ;;  %v10723_v56 = vadd.s32 4294967292, %v8621_v54  ;;  %v8620_v12 = vadd.s32 2, %v12007_v6 }
 0x3a8   : > { %v8591_v48 = vmul.f32 %v11682_v30, %v8589_v3  ;;  %vm8845_vm0 = vcmp.eq.s32.totalorder %v13044_v5, %v10723_v56 }
 0x3a9   : > { %vm13219_vm2 = vmand %vm8845_vm0, %vm8941_vm1 }
 0x3aa   : > { %v9092_v14 = vrot.slane %v8591_v48, %v12016_v9  ;;  %v9085_v41 = vcombine.high %v8591_v48, %v8591_v48  ;;  %v10722_v48 = vadd.s32 4294967292, %v8620_v12 }
 0x3ac   : > { %v9108_v16 = vrot.slane %v9092_v14, %v12016_v9  ;;  %v9100_v20 = vcombine.high %v9092_v14, %v9092_v14  ;;  %v9099_v2 = vrot.slane %v9085_v41, %v12016_v9  ;;  %vm8844_vm10 = vcmp.eq.s32.totalorder %v13044_v5, %v10722_v48 }
 0x3ae   : > { %v9137_v3 = vrot.slane %v9108_v16, %v12019_v11  ;;  %v9122_v1 = vrot.slane %v9100_v20, %v12016_v9  ;;  %v9130_v30 = vcombine.high %v9108_v16, %v9108_v16  ;;  %v8637_v20 = vadd.s32 3, %v12037_v22 }
 0x3af   : > { %v13213_v10 = vrot.slane %v9099_v2, %v12016_v9 }
 0x3b0   : > { %v9175_v58 = vsel %vm8957_vm11, %v9137_v3, 0.0  ;;  %v9174_v4 = vsel %vm8812_vm13, %v9137_v3, 0.0  ;;  %v9141_v14 = vrot.slane %v9122_v1, %v12019_v11  ;;  %v9145_v3 = vrot.slane %v9130_v30, %v12019_v11 }
 0x3b1   : > { %v9305_v16 = vsel %vm8562_vm12, %v9175_v58, 0.0  ;;  %v9302_v41 = vsel %vm8562_vm12, %v9174_v4, 0.0  ;;  %v8636_v4 = vadd.s32 3, %v12007_v6  ;;  %vm8877_vm11 = vcmp.eq.s32.totalorder %v13044_v5, %v12037_v22  ;;  %v13245_v58 = vpop.xlane.xlu0 %9516 }
 0x3b2   : > { %9306 = vadd.xlane.f32.xlu1 %v9305_v16  ;;  %9303 = vadd.xlane.f32.xlu0 %v9302_v41  ;;  %v9191_v52 = vsel %vm13195_vm14, %v9141_v14, 0.0  ;;  %v9190_v12 = vsel %vm8828_vm15, %v9141_v14, 0.0  ;;  %v10739_v54 = vadd.s32 4294967292, %v8637_v20  ;;  %v8653_v30 = vadd.s32 5, %v12037_v22  ;;  %vm13236_vm13 = vmand %vm8877_vm11, %vm8941_vm1  ;;  %14340 = vst [vmem:[#allocation50_spill] sm:$0xff] %v13245_v58 }
 0x3b3   : > { %v9353_v14 = vsel %vm8562_vm12, %v9191_v52, 0.0  ;;  %v9350_v16 = vsel %vm8562_vm12, %v9190_v12, 0.0  ;;  %v9101_v41 = vcombine.high %v9099_v2, %v9099_v2  ;;  %v9207_v56 = vsel %vm13219_vm2, %v9145_v3, 0.0  ;;  %v13243_v12 = vpop.xlane.xlu1 %9513 }
 0x3b4   : > { %v9206_v27 = vsel %vm8844_vm10, %v9145_v3, 0.0  ;;  %v9153_v48 = vrot.slane %v13213_v10, %v12019_v11  ;;  %v9132_v55 = vcombine.high %v9122_v1, %v9122_v1  ;;  %vm8876_vm14 = vcmp.eq.s32.totalorder %v13044_v5, %v12007_v6  ;;  %14339 = vst [vmem:[#allocation49_spill] sm:$0xff] %v13243_v12 }
 0x3b5   : > { %v10738_v2 = vadd.s32 4294967292, %v8636_v4  ;;  %v8652_v52 = vadd.s32 5, %v12007_v6  ;;  %vm8861_vm15 = vcmp.eq.s32.totalorder %v13044_v5, %v10739_v54  ;;  %v10755_v3 = vadd.s32 4294967292, %v8653_v30  ;;  %v13269_v20 = vpop.xlane.xlu0 %9522 }
 0x3b6   : > { %9354 = vadd.xlane.f32.xlu0 %v9353_v14  ;;  %9351 = vadd.xlane.f32.xlu1 %v9350_v16  ;;  %v8669_v1 = vadd.s32 6, %v12037_v22  ;;  %v9401_v14 = vsel %vm8562_vm12, %v9207_v56, 0.0  ;;  %v9398_v16 = vsel %vm8562_vm12, %v9206_v27, 0.0  ;;  %v9239_v4 = vsel %vm13236_vm13, %v9153_v48, 0.0  ;;  %vm13257_vm0 = vmand %vm8861_vm15, %vm8941_vm1  ;;  %14344 = vst [vmem:[#allocation52_spill] sm:$0xff] %v13269_v20 }
 0x3b7   : > { %v9238_v50 = vsel %vm8876_vm14, %v9153_v48, 0.0  ;;  %v9149_v38 = vrot.slane %v9132_v55, %v12019_v11  ;;  %v9129_v12 = vrot.slane %v9101_v41, %v12016_v9  ;;  %vm8860_vm2 = vcmp.eq.s32.totalorder %v13044_v5, %v10738_v2  ;;  %v13267_v41 = vpop.xlane.xlu1 %9519 }
 0x3b8   : > { %v10754_v30 = vadd.s32 4294967292, %v8652_v52  ;;  %v8668_v27 = vadd.s32 6, %v12007_v6  ;;  %vm8893_vm10 = vcmp.eq.s32.totalorder %v13044_v5, %v10755_v3  ;;  %v10771_v56 = vadd.s32 4294967292, %v8669_v1  ;;  %14343 = vst [vmem:[#allocation51_spill] sm:$0xff] %v13267_v41 }
 0x3b9   : > { %v8685_v48 = vadd.s32 7, %v12037_v22  ;;  %v9497_v55 = vsel %vm8562_vm12, %v9239_v4, 0.0  ;;  %v9494_v9 = vsel %vm8562_vm12, %v9238_v50, 0.0  ;;  %v9223_v2 = vsel %vm13257_vm0, %v9149_v38, 0.0  ;;  %vm13278_vm11 = vmand %vm8893_vm10, %vm8941_vm1 }
 0x3ba   : > { %9402 = vadd.xlane.f32.xlu0 %v9401_v14  ;;  %9399 = vadd.xlane.f32.xlu1 %v9398_v16  ;;  %v9222_v52 = vsel %vm8860_vm2, %v9149_v38, 0.0  ;;  %v9157_v14 = vrot.slane %v9129_v12, %v12019_v11  ;;  %v9131_v3 = vcombine.high %v13213_v10, %v13213_v10  ;;  %vm8892_vm13 = vcmp.eq.s32.totalorder %v13044_v5, %v10754_v30 }
 0x3bb   : > { %v10770_v50 = vadd.s32 4294967292, %v8668_v27  ;;  %v8684_v16 = vadd.s32 7, %v12007_v6  ;;  %vm8909_vm14 = vcmp.eq.s32.totalorder %v13044_v5, %v10771_v56  ;;  %v10787_v4 = vadd.s32 4294967292, %v8685_v48  ;;  %v13297_v56 = vpop.xlane.xlu1 %9525  ;;  %v13299_v48 = vpop.xlane.xlu0 %9528 }
 0x3bc   : > { %v9449_v38 = vsel %vm8562_vm12, %v9223_v2, 0.0  ;;  %v9446_v54 = vsel %vm8562_vm12, %v9222_v52, 0.0  ;;  %v9255_v10 = vsel %vm13278_vm11, %v9157_v14, 0.0  ;;  %v9133_v20 = vcombine.high %v9129_v12, %v9129_v12  ;;  %vm13292_vm15 = vmand %vm8909_vm14, %vm8941_vm1  ;;  %14349 = vst [vmem:[#allocation53_spill] sm:$0xff] %v13297_v56 }
 0x3bd   : > { %vm8908_vm0 = vcmp.eq.s32.totalorder %v13044_v5, %v10770_v50  ;;  %v10786_v27 = vadd.s32 4294967292, %v8684_v16  ;;  %14350 = vst [vmem:[#allocation54_spill] sm:$0xff] %v13299_v48  ;;  %vm8925_vm2 = vcmp.eq.s32.totalorder %v13044_v5, %v10787_v4  ;;  %v9545_v2 = vsel %vm8562_vm12, %v9255_v10, 0.0 }
 0x3be   : > { %9498 = vadd.xlane.f32.xlu0 %v9497_v55  ;;  %9495 = vadd.xlane.f32.xlu1 %v9494_v9  ;;  %v9254_v55 = vsel %vm8892_vm13, %v9157_v14, 0.0  ;;  %v9161_v9 = vrot.slane %v9131_v3, %v12019_v11  ;;  %v9165_v3 = vrot.slane %v9133_v20, %v12019_v11  ;;  %vm9069_vm10 = vmand %vm8925_vm2, %vm8941_vm1  ;;  %v9867_v48 = vadd.s32 4294967232, %v13044_v5 }
 0x3bf   : > { %v9542_v52 = vsel %vm8562_vm12, %v9254_v55, 0.0  ;;  %vm8924_vm11 = vcmp.eq.s32.totalorder %v13044_v5, %v10786_v27  ;;  %v13312_v16 = vpop.xlane.xlu1 %9531  ;;  %v13314_v4 = vpop.xlane.xlu0 %9534  ;;  %v14355_v55 = vmov 0.0   ;;  %v9895_v58 = vadd.s32 4294967200, %v13044_v5 }
 0x3c0   : > { %v9271_v12 = vsel %vm13292_vm15, %v9161_v9, 0.0  ;;  %v9270_v14 = vsel %vm8908_vm0, %v9161_v9, 0.0  ;;  %14351 = vst [vmem:[#allocation55_spill] sm:$0xff] %v13312_v16  ;;  %14352 = vst [vmem:[#allocation56_spill] sm:$0xff] %v13314_v4  ;;  %vm9830_vm1 = vcmask 195712   ;;  %vm9837_vm13 = vcmask 261312  }
 0x3c1   : > { %v9593_v1 = vsel %vm8562_vm12, %v9271_v12, 0.0  ;;  %v9590_v50 = vsel %vm8562_vm12, %v9270_v14, 0.0  ;;  %vm9844_vm14 = vcmask 326912   ;;  %vm9851_vm15 = vcmask 392512  }
 0x3c2   : > { %9450 = vadd.xlane.f32.xlu0 %v9449_v38  ;;  %9447 = vadd.xlane.f32.xlu1 %v9446_v54  ;;  %v9287_v38 = vsel %vm9069_vm10, %v9165_v3, 0.0  ;;  %v9286_v54 = vsel %vm8924_vm11, %v9165_v3, 0.0  ;;  %vm9858_vm0 = vcmask 458112   ;;  %vm9865_vm2 = vcmask 523712  }
 0x3c3   : > { %v9641_v10 = vsel %vm8562_vm12, %v9287_v38, 0.0  ;;  %v9638_v11 = vsel %vm8562_vm12, %v9286_v54, 0.0  ;;  %v13318_v22 = vpop.xlane.xlu1 %9537  ;;  %v13320_v20 = vpop.xlane.xlu0 %9540  ;;  %vm9823_vm12 = vcmask 130112   ;;  %vm9872_vm10 = vcmask 589312  }
 0x3c4   : > { %14353 = vst [vmem:[#allocation57_spill] sm:$0xff] %v13318_v22  ;;  %14354 = vst [vmem:[#allocation58_spill] sm:$0xff] %v13320_v20  ;;  %vm9879_vm11 = vcmask 654912  }
 0x3c6   : > { %9546 = vadd.xlane.f32.xlu0 %v9545_v2  ;;  %9543 = vadd.xlane.f32.xlu1 %v9542_v52 }
 0x3c7   : > { %v13324_v9 = vpop.xlane.xlu1 %9549  ;;  %v13326_v30 = vpop.xlane.xlu0 %9552 }
 0x3c8   : > { %14356 = vst [vmem:[#allocation59_spill] sm:$0xff] %v13324_v9  ;;  %14357 = vst [vmem:[#allocation60_spill] sm:$0xff] %v13326_v30 }
 0x3ca   : > { %9594 = vadd.xlane.f32.xlu0 %v9593_v1  ;;  %9591 = vadd.xlane.f32.xlu1 %v9590_v50 }
 0x3cb   : > { %v13332_v27 = vpop.xlane.xlu1 %9597  ;;  %v13334_v2 = vpop.xlane.xlu0 %9555 }
 0x3cc   : > { %14358 = vst [vmem:[#allocation61_spill] sm:$0xff] %v13332_v27  ;;  %14359 = vst [vmem:[#allocation62_spill] sm:$0xff] %v13334_v2 }
 0x3ce   : > { %9642 = vadd.xlane.f32.xlu1 %v9641_v10  ;;  %9639 = vadd.xlane.f32.xlu0 %v9638_v11 }
 0x3cf   : > { %v13338_v52 = vpop.xlane.xlu1 %9600  ;;  %v13340_v12 = vpop.xlane.xlu0 %9645  ;;  %v14428_v29 = vld [vmem:[#allocation60_spill] sm:$0xff] }
 0x3d0   : > { %14360 = vst [vmem:[#allocation63_spill] sm:$0xff] %v13338_v52  ;;  %14361 = vst [vmem:[#allocation64_spill] sm:$0xff] %v13340_v12 }
 0x3d2   : > { %9630 = vadd.xlane.f32.xlu1 %v14355_v55  ;;  %9675 = vadd.xlane.f32.xlu0 %v14355_v55 }
 0x3d3   : > { %v13342_v14 = vpop.xlane.xlu1 %9558  ;;  %v13344_v3 = vpop.xlane.xlu0 %9603 }
 0x3d4   : > { %14362 = vst [vmem:[#allocation65_spill] sm:$0xff] %v13342_v14  ;;  %14363 = vst [vmem:[#allocation66_spill] sm:$0xff] %v13344_v3  ;;  %v9909_v14 = vadd.s32 4294967184, %v13044_v5 }
 0x3d6   : > { %9588 = vadd.xlane.f32.xlu1 %v14355_v55  ;;  %9633 = vadd.xlane.f32.xlu0 %v14355_v55 }
 0x3d7   : > { %v13346_v1 = vpop.xlane.xlu1 %9648  ;;  %v13348_v50 = vpop.xlane.xlu0 %9561  ;;  %v14432_v15 = vld [vmem:[#allocation64_spill] sm:$0xff] }
 0x3d8   : > { %14364 = vst [vmem:[#allocation67_spill] sm:$0xff] %v13346_v1  ;;  %14365 = vst [vmem:[#allocation68_spill] sm:$0xff] %v13348_v50  ;;  %v9916_v1 = vadd.s32 4294967176, %v13044_v5 }
 0x3da   : > { %9678 = vadd.xlane.f32.xlu1 %v14355_v55  ;;  %9636 = vadd.xlane.f32.xlu0 %v14355_v55 }
 0x3db   : > { %v13350_v38 = vpop.xlane.xlu1 %9606  ;;  %v13352_v54 = vpop.xlane.xlu0 %9651  ;;  %v14433_v41 = vld [vmem:[#allocation66_spill] sm:$0xff] }
 0x3dc   : > { %14366 = vst [vmem:[#allocation69_spill] sm:$0xff] %v13350_v38  ;;  %14367 = vst [vmem:[#allocation70_spill] sm:$0xff] %v13352_v54  ;;  %v9881_v38 = vadd.s32 4294967216, %v13044_v5 }
 0x3de   : > { %9681 = vadd.xlane.f32.xlu1 %v14355_v55  ;;  %9684 = vadd.xlane.f32.xlu0 %v14355_v55 }
 0x3df   : > { %v13354_v10 = vpop.xlane.xlu1 %9564  ;;  %v13356_v11 = vpop.xlane.xlu0 %9609  ;;  %v14435_v37 = vld [vmem:[#allocation68_spill] sm:$0xff] }
 0x3e0   : > { %14368 = vst [vmem:[#allocation71_spill] sm:$0xff] %v13354_v10  ;;  %14369 = vst [vmem:[#allocation72_spill] sm:$0xff] %v13356_v11  ;;  %v9832_v11 = vadd.s32 4294967272, %v13044_v5 }
 0x3e2   : > { %v13397_v52 = vsub.s32 %v9832_v11, %v12007_v6 }
 0x3e3   : > { %v13358_v55 = vpop.xlane.xlu1 %9654  ;;  %v13360_v2 = vpop.xlane.xlu0 %9567 }
 0x3e4   : > { %14370 = vst [vmem:[#allocation73_spill] sm:$0xff] %v13358_v55  ;;  %14371 = vst [vmem:[#allocation74_spill] sm:$0xff] %v13360_v2  ;;  %v9846_v2 = vadd.s32 4294967256, %v13044_v5  ;;  %v14440_v40 = vrot.slane %v13008_v36, %v13397_v52 }
 0x3e7   : > { %v13362_v12 = vpop.xlane.xlu1 %9612  ;;  %v13364_v30 = vpop.xlane.xlu0 %9657  ;;  %v14437_v24 = vld [vmem:[#allocation72_spill] sm:$0xff] }
 0x3e8   : > { %14372 = vst [vmem:[#allocation75_spill] sm:$0xff] %v13362_v12  ;;  %14373 = vst [vmem:[#allocation76_spill] sm:$0xff] %v13364_v30  ;;  %v9860_v12 = vadd.s32 4294967240, %v13044_v5  ;;  %v9874_v30 = vadd.s32 4294967224, %v13044_v5 }
 0x3ea   : > { %v13406_v27 = vsub.s32 %v9874_v30, %v12007_v6  ;;  %v13427_v30 = vsub.s32 %v9881_v38, %v12007_v6 }
 0x3eb   : > { %v13366_v3 = vpop.xlane.xlu1 %9570  ;;  %v13368_v20 = vpop.xlane.xlu0 %9615 }
 0x3ec   : > { %14374 = vst [vmem:[#allocation77_spill] sm:$0xff] %v13366_v3  ;;  %14375 = vst [vmem:[#allocation78_spill] sm:$0xff] %v13368_v20  ;;  %v9825_v3 = vadd.s32 4294967280, %v13044_v5  ;;  %v9839_v20 = vadd.s32 4294967264, %v13044_v5 }
 0x3ee   : > { %v13409_v9 = vsub.s32 %v9825_v3, %v12007_v6  ;;  %v13412_v22 = vsub.s32 %v9839_v20, %v12007_v6  ;;  %v13430_v3 = vsub.s32 %v9916_v1, %v12007_v6  ;;  %v13433_v20 = vsub.s32 %v9895_v58, %v12007_v6  ;;  %v14390_v58 = vld [vmem:[#allocation27_spill] sm:$0xff] }
 0x3ef   : > { %v13370_v50 = vpop.xlane.xlu1 %9660  ;;  %v13372_v4 = vpop.xlane.xlu0 %9573 }
 0x3f0   : > { %14376 = vst [vmem:[#allocation79_spill] sm:$0xff] %v13370_v50  ;;  %14377 = vst [vmem:[#allocation80_spill] sm:$0xff] %v13372_v4  ;;  %v9853_v50 = vadd.s32 4294967248, %v13044_v5  ;;  %v14444_v63 = vrot.slane %v13021_v8, %v13412_v22  ;;  %v14448_v8 = vrot.slane %v13092_v34, %v13409_v9 }
 0x3f2   : > { %v13415_v16 = vsub.s32 %v9853_v50, %v12007_v6  ;;  %v13436_v50 = vsub.s32 %v9909_v14, %v12007_v6  ;;  %v14391_v14 = vld [vmem:[#allocation29_spill] sm:$0xff] }
 0x3f3   : > { %v13374_v54 = vpop.xlane.xlu1 %9618  ;;  %v13376_v10 = vpop.xlane.xlu0 %9663 }
 0x3f4   : > { %14378 = vst [vmem:[#allocation81_spill] sm:$0xff] %v13374_v54  ;;  %14379 = vst [vmem:[#allocation82_spill] sm:$0xff] %v13376_v10  ;;  %v9888_v10 = vadd.s32 4294967208, %v13044_v5  ;;  %v9902_v54 = vadd.s32 4294967192, %v13044_v5 }
 0x3f6   : > { %v13418_v11 = vsub.s32 %v9888_v10, %v12007_v6 }
 0x3f7   : > { %v13385_v55 = vpop.xlane.xlu1 %9576  ;;  %v13387_v4 = vpop.xlane.xlu0 %9621 }
 0x3f8   : > { %14380 = vst [vmem:[#allocation83_spill] sm:$0xff] %v13385_v55  ;;  %14381 = vst [vmem:[#allocation84_spill] sm:$0xff] %v13387_v4  ;;  %v13400_v55 = vsub.s32 %v9846_v2, %v12007_v6  ;;  %v13403_v4 = vsub.s32 %v9860_v12, %v12007_v6  ;;  %v13421_v2 = vsub.s32 %v9902_v54, %v12007_v6  ;;  %v14385_v54 = vld [vmem:[#allocation17_spill] sm:$0xff] }
 0x3f9   : > { %v13424_v12 = vsub.s32 %v9867_v48, %v12007_v6  ;;  %v14404_v48 = vld [vmem:[#allocation46_spill] sm:$0xff] }
 0x3fb   : > { %v13438_v10 = vpop.xlane.xlu1 %9666  ;;  %v13440_v56 = vpop.xlane.xlu0 %9579 }
 0x3fc   : > { %14382 = vst [vmem:[#allocation85_spill] sm:$0xff] %v13438_v10  ;;  %14383 = vst [vmem:[#allocation86_spill] sm:$0xff] %v13440_v56  ;;  %v14386_v56 = vld [vmem:[#allocation19_spill] sm:$0xff]  ;;  %v14438_v10 = vld [vmem:[#allocation74_spill] sm:$0xff] }
 0x3ff   : > { %v13488_v42 = vpop.xlane.xlu1 %9624  ;;  %v13490_v1 = vpop.xlane.xlu0 %9669 }
 0x400   : > { %14384 = vst [vmem:[#allocation87_spill] sm:$0xff] %v13488_v42  ;;  %v14442_v42 = vld [vmem:[#allocation78_spill] sm:$0xff] }
 0x403   : > { %v13538_v62 = vpop.xlane.xlu1 %9582  ;;  %v13540_v51 = vpop.xlane.xlu0 %9627 }
 0x404   : > { %14392 = vst [vmem:[#allocation17_spill] sm:$0xff] %v13538_v62 }
 0x407   : > { %v13592_v35 = vpop.xlane.xlu1 %9672  ;;  %v13594_v53 = vpop.xlane.xlu0 %9585 }
 0x408   : > { %14415 = vst [vmem:[#allocation19_spill] sm:$0xff] %v13592_v35  ;;  %14416 = vst [vmem:[#allocation25_spill] sm:$0xff] %v13594_v53 }
 0x43b   : > { %v9307_v53 = vpop.xlane.xlu1 %9306  ;;  %v9304_v44 = vpop.xlane.xlu0 %9303 }
 0x43c   : > { %v9822_v5 = vrot.slane %v9307_v53, %v13574_v49  ;;  %v9817_v18 = vrot.slane %v9304_v44, %v13620_v45  ;;  %v14439_v44 = vrot.slane %v13013_v46, %v13409_v9  ;;  %v14447_v46 = vrot.slane %v13029_v21, %v13415_v16 }
 0x43e   : > { %v9824_v39 = vsel %vm9823_vm12, %v9822_v5, %v9817_v18  ;;  %v14441_v5 = vld [vmem:[#allocation76_spill] sm:$0xff] }
 0x43f   : > { %v9831_v53 = vsel %vm9830_vm1, %v14439_v44, %v9824_v39  ;;  %v9355_v28 = vpop.xlane.xlu0 %9354  ;;  %v9352_v6 = vpop.xlane.xlu1 %9351  ;;  %v14443_v39 = vld [vmem:[#allocation80_spill] sm:$0xff] }
 0x440   : > { %v9838_v38 = vsel %vm9837_vm13, %v14440_v40, %v9831_v53  ;;  %v9930_v35 = vrot.slane %v9355_v28, %v13574_v49  ;;  %v9926_v18 = vrot.slane %v9352_v6, %v13620_v45  ;;  %v14445_v40 = vld [vmem:[#allocation82_spill] sm:$0xff]  ;;  %v14446_v28 = vrot.slane %v13017_v59, %v13400_v55 }
 0x441   : > { %v9845_v36 = vsel %vm9844_vm14, %v14444_v63, %v9838_v38  ;;  %v14449_v59 = vrot.slane %v13024_v57, %v13403_v4  ;;  %v14453_v57 = vrot.slane %v13098_v26, %v13412_v22  ;;  %v10449_v26 = vrot.slane %v13490_v1, %v13427_v30 }
 0x442   : > { %v9852_v6 = vsel %vm9851_vm15, %v14446_v28, %v9845_v36  ;;  %v9931_v62 = vsel %vm9823_vm12, %v9930_v35, %v9926_v18  ;;  %v14450_v18 = vrot.slane %v13057_v7, %v13397_v52  ;;  %v14452_v28 = vrot.slane %v13070_v25, %v13424_v12  ;;  %v14454_v7 = vld [vmem:[#allocation86_spill] sm:$0xff] }
 0x443   : > { %v9859_v44 = vsel %vm9858_vm0, %v14447_v46, %v9852_v6  ;;  %v9936_v63 = vsel %vm9830_vm1, %v14448_v8, %v9931_v62  ;;  %v9403_v38 = vpop.xlane.xlu0 %9402  ;;  %v9400_v53 = vpop.xlane.xlu1 %9399  ;;  %v14451_v62 = vld [vmem:[#allocation84_spill] sm:$0xff]  ;;  %v10301_v8 = vrot.slane %v14454_v7, %v13433_v20 }
 0x444   : > { %v9866_v35 = vsel %vm9865_vm2, %v14449_v59, %v9859_v44  ;;  %v9941_v21 = vsel %vm9837_vm13, %v14450_v18, %v9936_v63  ;;  %v10009_v46 = vrot.slane %v9403_v38, %v13574_v49  ;;  %v10005_v34 = vrot.slane %v9400_v53, %v13620_v45 }
 0x445   : > { %v10370_v36 = vrot.slane %v14451_v62, %v13427_v30  ;;  %v9873_v6 = vsel %vm9872_vm10, %v14452_v28, %v9866_v35  ;;  %v9946_v44 = vsel %vm9844_vm14, %v14453_v57, %v9941_v21  ;;  %v14455_v53 = vrot.slane %v13034_v33, %v13406_v27 }
 0x446   : > { %v14456_v38 = vrot.slane %v13060_v17, %v13400_v55  ;;  %v10010_v59 = vsel %vm9823_vm12, %v10009_v46, %v10005_v34  ;;  %v14457_v35 = vrot.slane %v13076_v60, %v13427_v30  ;;  %v14458_v33 = vrot.slane %v13103_v13, %v13415_v16 }
 0x447   : > { %v9880_v63 = vsel %vm9879_vm11, %v14455_v53, %v9873_v6  ;;  %v14459_v17 = vrot.slane %v14389_v32, %v13409_v9  ;;  %v9499_v6 = vpop.xlane.xlu0 %9498  ;;  %v9496_v46 = vpop.xlane.xlu1 %9495  ;;  %v14460_v34 = vrot.slane %v13064_v19, %v13403_v4  ;;  %v14461_v57 = vrot.slane %v13089_v47, %v13397_v52 }
 0x448   : > { %v9951_v25 = vsel %vm9851_vm15, %v14456_v38, %v9946_v44  ;;  %v9887_v18 = vsel %vm9886_vm9, %v14457_v35, %v9880_v63  ;;  %v10167_v44 = vrot.slane %v9499_v6, %v13574_v49  ;;  %v10163_v53 = vrot.slane %v9496_v46, %v13620_v45 }
 0x449   : > { %v9956_v21 = vsel %vm9858_vm0, %v14458_v33, %v9951_v25  ;;  %v10015_v28 = vsel %vm9830_vm1, %v14459_v17, %v10010_v59  ;;  %v10380_v32 = vrot.slane %v13540_v51, %v13433_v20  ;;  %v14462_v63 = vrot.slane %v14385_v54, %v13424_v12 }
 0x44a   : > { %v9961_v60 = vsel %vm9865_vm2, %v14460_v34, %v9956_v21  ;;  %v10020_v13 = vsel %vm9837_vm13, %v14461_v57, %v10015_v28  ;;  %v14463_v19 = vrot.slane %v14390_v58, %v13412_v22  ;;  %v14464_v47 = vrot.slane %v13041_v0, %v13418_v11 }
 0x44b   : > { %v9966_v38 = vsel %vm9872_vm10, %v14462_v63, %v9961_v60  ;;  %v14465_v35 = vrot.slane %v13067_v23, %v13406_v27  ;;  %v14466_v54 = vrot.slane %v13095_v61, %v13400_v55  ;;  %v10168_v17 = vsel %vm9823_vm12, %v10167_v44, %v10163_v53  ;;  %v9451_v34 = vpop.xlane.xlu0 %9450  ;;  %v9448_v60 = vpop.xlane.xlu1 %9447 }
 0x44c   : > { %v10025_v25 = vsel %vm9844_vm14, %v14463_v19, %v10020_v13  ;;  %v9894_v59 = vsel %vm9893_vm8, %v14464_v47, %v9887_v18  ;;  %v14467_v58 = vrot.slane %v13081_v31, %v13433_v20  ;;  %v14468_v0 = vrot.slane %v14386_v56, %v13427_v30  ;;  %v14472_v56 = vld [vmem:[#allocation15_spill] sm:$0xff]  ;;  %v14476_v19 = vld [vmem:[#allocation25_spill] sm:$0xff] }
 0x44d   : > { %v9971_v33 = vsel %vm9879_vm11, %v14465_v35, %v9966_v38  ;;  %v10030_v21 = vsel %vm9851_vm15, %v14466_v54, %v10025_v25  ;;  %v14469_v23 = vrot.slane %v14391_v14, %v13415_v16  ;;  %v14470_v61 = vrot.slane %v14404_v48, %v13409_v9  ;;  %v14474_v14 = vld [vmem:[#allocation38_spill] sm:$0xff]  ;;  %v14479_v35 = vld [vmem:[#allocation47_spill] sm:$0xff] }
 0x44e   : > { %v9901_v28 = vsel %vm9900_vm7, %v14467_v58, %v9894_v59  ;;  %v9976_v18 = vsel %vm9886_vm9, %v14468_v0, %v9971_v33  ;;  %v14471_v31 = vrot.slane %v13046_v43, %v13421_v2  ;;  %v14473_v13 = vrot.slane %v14472_v56, %v13403_v4  ;;  %v14477_v43 = vld [vmem:[#allocation31_spill] sm:$0xff] }
 0x44f   : > { %v10035_v6 = vsel %vm9858_vm0, %v14469_v23, %v10030_v21  ;;  %v10173_v46 = vsel %vm9830_vm1, %v14470_v61, %v10168_v17  ;;  %v14475_v53 = vrot.slane %v14474_v14, %v13397_v52  ;;  %v10088_v48 = vrot.slane %v9451_v34, %v13574_v49  ;;  %v14481_v21 = vld [vmem:[#allocation11_spill] sm:$0xff]  ;;  %v14491_v14 = vld [vmem:[#allocation49_spill] sm:$0xff] }
 0x450   : > { %v9908_v57 = vsel %vm9907_vm4, %v14471_v31, %v9901_v28  ;;  %v10040_v44 = vsel %vm9865_vm2, %v14473_v13, %v10035_v6  ;;  %v10084_v38 = vrot.slane %v9448_v60, %v13620_v45  ;;  %v10311_v25 = vrot.slane %v14476_v19, %v13436_v50  ;;  %v14483_v28 = vld [vmem:[#allocation16_spill] sm:$0xff]  ;;  %v14487_v60 = vld [vmem:[#allocation14_spill] sm:$0xff]  ;;  %v14489_v13 = vld [vmem:[#allocation33_spill] sm:$0xff] }
 0x451   : > { %v10178_v63 = vsel %vm9837_vm13, %v14475_v53, %v10173_v46  ;;  %v14478_v47 = vrot.slane %v14477_v43, %v13424_v12  ;;  %v14480_v33 = vrot.slane %v14479_v35, %v13412_v22  ;;  %v14482_v17 = vrot.slane %v14481_v21, %v13418_v11  ;;  %v14485_v6 = vld [vmem:[#allocation48_spill] sm:$0xff]  ;;  %v14493_v43 = vld [vmem:[#allocation39_spill] sm:$0xff]  ;;  %v14495_v35 = vld [vmem:[#allocation21_spill] sm:$0xff] }
 0x452   : > { %v14484_v0 = vrot.slane %v14483_v28, %v13406_v27  ;;  %v14486_v61 = vrot.slane %v14485_v6, %v13400_v55  ;;  %v10089_v34 = vsel %vm9823_vm12, %v10088_v48, %v10084_v38  ;;  %v14488_v31 = vrot.slane %v14487_v60, %v13436_v50  ;;  %v9547_v38 = vpop.xlane.xlu0 %9546  ;;  %v14499_v28 = vld [vmem:[#allocation24_spill] sm:$0xff] }
 0x453   : > { %v10045_v59 = vsel %vm9872_vm10, %v14478_v47, %v10040_v44  ;;  %v10183_v54 = vsel %vm9844_vm14, %v14480_v33, %v10178_v63  ;;  %v9981_v58 = vsel %vm9893_vm8, %v14482_v17, %v9976_v18  ;;  %v14490_v18 = vrot.slane %v14489_v13, %v13427_v30 }
 0x454   : > { %v10050_v23 = vsel %vm9879_vm11, %v14484_v0, %v10045_v59  ;;  %v10188_v46 = vsel %vm9851_vm15, %v14486_v61, %v10183_v54  ;;  %v9915_v56 = vsel %vm9914_vm3, %v14488_v31, %v9908_v57  ;;  %v14492_v53 = vrot.slane %v14491_v14, %v13415_v16  ;;  %v9544_v59 = vpop.xlane.xlu1 %9543  ;;  %v14497_v54 = vld [vmem:[#allocation50_spill] sm:$0xff] }
 0x455   : > { %v10055_v44 = vsel %vm9886_vm9, %v14490_v18, %v10050_v23  ;;  %v14494_v47 = vrot.slane %v14493_v43, %v13409_v9  ;;  %v14496_v57 = vrot.slane %v14495_v35, %v13433_v20  ;;  %v14498_v21 = vrot.slane %v14497_v54, %v13403_v4  ;;  %v14505_v18 = vld [vmem:[#allocation12_spill] sm:$0xff]  ;;  %v14511_v35 = vld [vmem:[#allocation26_spill] sm:$0xff] }
 0x456   : > { %v10193_v63 = vsel %vm9858_vm0, %v14492_v53, %v10188_v46  ;;  %v14500_v0 = vrot.slane %v14499_v28, %v13397_v52  ;;  %v10246_v6 = vrot.slane %v9547_v38, %v13574_v49  ;;  %v10242_v61 = vrot.slane %v9544_v59, %v13620_v45  ;;  %v14501_v46 = vld [vmem:[#allocation51_spill] sm:$0xff] }
 0x457   : > { %v10094_v48 = vsel %vm9830_vm1, %v14494_v47, %v10089_v34  ;;  %v9986_v33 = vsel %vm9900_vm7, %v14496_v57, %v9981_v58  ;;  %v10198_v17 = vsel %vm9865_vm2, %v14498_v21, %v10193_v63  ;;  %v14502_v34 = vrot.slane %v14501_v46, %v13424_v12  ;;  %v14503_v58 = vld [vmem:[#allocation40_spill] sm:$0xff]  ;;  %v14507_v63 = vld [vmem:[#allocation18_spill] sm:$0xff]  ;;  %v14517_v46 = vld [vmem:[#allocation59_spill] sm:$0xff] }
 0x458   : > { %v10099_v23 = vsel %vm9837_vm13, %v14500_v0, %v10094_v48  ;;  %v14504_v31 = vrot.slane %v14503_v58, %v13412_v22  ;;  %v14506_v14 = vrot.slane %v14505_v18, %v13421_v2  ;;  %v14508_v43 = vrot.slane %v14507_v63, %v13418_v11  ;;  %v14509_v48 = vld [vmem:[#allocation52_spill] sm:$0xff]  ;;  %v14515_v0 = vld [vmem:[#allocation41_spill] sm:$0xff]  ;;  %v9595_v58 = vpop.xlane.xlu0 %9594  ;;  %v14521_v18 = vld [vmem:[#allocation35_spill] sm:$0xff] }
 0x459   : > { %v10203_v60 = vsel %vm9872_vm10, %v14502_v34, %v10198_v17  ;;  %v14510_v38 = vrot.slane %v14509_v48, %v13406_v27  ;;  %v14512_v57 = vrot.slane %v14511_v35, %v13400_v55  ;;  %v10247_v21 = vsel %vm9823_vm12, %v10246_v6, %v10242_v61  ;;  %v14513_v17 = vld [vmem:[#allocation10_spill] sm:$0xff]  ;;  %v14523_v63 = vld [vmem:[#allocation28_spill] sm:$0xff] }
 0x45a   : > { %v10104_v13 = vsel %vm9844_vm14, %v14504_v31, %v10099_v23  ;;  %v9991_v53 = vsel %vm9907_vm4, %v14506_v14, %v9986_v33  ;;  %v10060_v47 = vsel %vm9893_vm8, %v14508_v43, %v10055_v44  ;;  %v14514_v33 = vrot.slane %v14513_v17, %v13430_v3  ;;  %v9592_v31 = vpop.xlane.xlu1 %9591 }
 0x45b   : > { %v10208_v59 = vsel %vm9879_vm11, %v14510_v38, %v10203_v60  ;;  %v10109_v54 = vsel %vm9851_vm15, %v14512_v57, %v10104_v13  ;;  %v14516_v44 = vrot.slane %v14515_v0, %v13415_v16  ;;  %v14518_v34 = vrot.slane %v14517_v46, %v13409_v9  ;;  %v14519_v13 = vld [vmem:[#allocation23_spill] sm:$0xff]  ;;  %v14532_v46 = vld [vmem:[#allocation53_spill] sm:$0xff] }
 0x45c   : > { %v9922_v28 = vsel %vm9921_vm6, %v14514_v33, %v9915_v56  ;;  %v14520_v6 = vrot.slane %v14519_v13, %v13436_v50  ;;  %v14522_v56 = vrot.slane %v14521_v18, %v13433_v20  ;;  %v14524_v43 = vrot.slane %v14523_v63, %v13403_v4 }
 0x45d   : > { %v10114_v23 = vsel %vm9858_vm0, %v14516_v44, %v10109_v54  ;;  %v10252_v60 = vsel %vm9830_vm1, %v14518_v34, %v10247_v21  ;;  %v14525_v38 = vrot.slane %v14428_v29, %v13397_v52  ;;  %v10325_v57 = vrot.slane %v9595_v58, %v13574_v49  ;;  %v14530_v44 = vld [vmem:[#allocation20_spill] sm:$0xff]  ;;  %v14534_v58 = vld [vmem:[#allocation30_spill] sm:$0xff] }
 0x45e   : > { %v9996_v61 = vsel %vm9914_vm3, %v14520_v6, %v9991_v53  ;;  %v10065_v14 = vsel %vm9900_vm7, %v14522_v56, %v10060_v47  ;;  %v10119_v48 = vsel %vm9865_vm2, %v14524_v43, %v10114_v23  ;;  %v10321_v54 = vrot.slane %v9592_v31, %v13620_v45  ;;  %v14526_v53 = vld [vmem:[#allocation42_spill] sm:$0xff]  ;;  %v14536_v6 = vld [vmem:[#allocation65_spill] sm:$0xff] }
 0x45f   : > { %v10257_v35 = vsel %vm9837_vm13, %v14525_v38, %v10252_v60  ;;  %v14527_v21 = vrot.slane %v14526_v53, %v13424_v12  ;;  %v14528_v47 = vld [vmem:[#allocation62_spill] sm:$0xff]  ;;  %v14531_v23 = vrot.slane %v14530_v44, %v13421_v2  ;;  %v14533_v34 = vrot.slane %v14532_v46, %v13427_v30  ;;  %v14538_v43 = vld [vmem:[#allocation37_spill] sm:$0xff] }
 0x460   : > { %v14529_v33 = vrot.slane %v14528_v47, %v13412_v22  ;;  %v14535_v31 = vrot.slane %v14534_v58, %v13406_v27  ;;  %v14537_v18 = vrot.slane %v14536_v6, %v13400_v55  ;;  %v10326_v63 = vsel %vm9823_vm12, %v10325_v57, %v10321_v54  ;;  %v9640_v47 = vpop.xlane.xlu0 %9639 }
 0x461   : > { %v10124_v17 = vsel %vm9872_vm10, %v14527_v21, %v10119_v48  ;;  %v10070_v29 = vsel %vm9907_vm4, %v14531_v23, %v10065_v14  ;;  %v10213_v60 = vsel %vm9886_vm9, %v14533_v34, %v10208_v59  ;;  %v14539_v14 = vrot.slane %v14538_v43, %v13436_v50  ;;  %v14549_v34 = vld [vmem:[#allocation63_spill] sm:$0xff] }
 0x462   : > { %v10262_v0 = vsel %vm9844_vm14, %v14529_v33, %v10257_v35  ;;  %v10129_v13 = vsel %vm9879_vm11, %v14535_v31, %v10124_v17  ;;  %v14540_v59 = vrot.slane %v14435_v37, %v13415_v16  ;;  %v14541_v35 = vld [vmem:[#allocation61_spill] sm:$0xff]  ;;  %v9643_v17 = vpop.xlane.xlu1 %9642  ;;  %v14543_v33 = vld [vmem:[#allocation22_spill] sm:$0xff]  ;;  %v14547_v37 = vld [vmem:[#allocation71_spill] sm:$0xff]  ;;  %v14550_v58 = vrot.slane %v14549_v34, %v13397_v52 }
 0x463   : > { %v10267_v56 = vsel %vm9851_vm15, %v14537_v18, %v10262_v0  ;;  %v10075_v48 = vsel %vm9914_vm3, %v14539_v14, %v10070_v29  ;;  %v14542_v53 = vrot.slane %v14541_v35, %v13409_v9  ;;  %v14544_v57 = vrot.slane %v14543_v33, %v13430_v3  ;;  %v14545_v0 = vld [vmem:[#allocation43_spill] sm:$0xff]  ;;  %v14557_v35 = vld [vmem:[#allocation69_spill] sm:$0xff]  ;;  %v14565_v34 = vld [vmem:[#allocation34_spill] sm:$0xff] }
 0x464   : > { %v10272_v38 = vsel %vm9858_vm0, %v14540_v59, %v10267_v56  ;;  %v14546_v44 = vrot.slane %v14545_v0, %v13427_v30  ;;  %v14548_v29 = vrot.slane %v14547_v37, %v13403_v4  ;;  %v10404_v6 = vrot.slane %v9643_v17, %v13574_v49  ;;  %v14559_v17 = vld [vmem:[#allocation44_spill] sm:$0xff] }
 0x465   : > { %v10331_v21 = vsel %vm9830_vm1, %v14542_v53, %v10326_v63  ;;  %v10080_v54 = vsel %vm9921_vm6, %v14544_v57, %v10075_v48  ;;  %v10400_v18 = vrot.slane %v9640_v47, %v13620_v45  ;;  %v14551_v56 = vrot.slane %v14433_v41, %v13412_v22  ;;  %v14554_v48 = vld [vmem:[#allocation54_spill] sm:$0xff]  ;;  %v14561_v57 = vld [vmem:[#allocation55_spill] sm:$0xff] }
 0x466   : > { %v10134_v23 = vsel %vm9886_vm9, %v14546_v44, %v10129_v13  ;;  %v10277_v46 = vsel %vm9865_vm2, %v14548_v29, %v10272_v38  ;;  %v10336_v31 = vsel %vm9837_vm13, %v14550_v58, %v10331_v21  ;;  %v14552_v13 = vld [vmem:[#allocation32_spill] sm:$0xff]  ;;  %v14555_v59 = vrot.slane %v14554_v48, %v13418_v11  ;;  %v9631_v29 = vpop.xlane.xlu1 %9630  ;;  %v14573_v48 = vld [vmem:[#allocation13_spill] sm:$0xff] }
 0x467   : > { %v10341_v63 = vsel %vm9844_vm14, %v14551_v56, %v10336_v31  ;;  %v14553_v43 = vrot.slane %v14552_v13, %v13418_v11  ;;  %v14556_v49 = vrot.slane %v14438_v10, %v13424_v12  ;;  %v14558_v41 = vrot.slane %v14557_v35, %v13400_v55 }
 0x468   : > { %v10218_v38 = vsel %vm9893_vm8, %v14555_v59, %v10213_v60  ;;  %v10405_v21 = vsel %vm9823_vm12, %v10404_v6, %v10400_v18  ;;  %v14560_v47 = vrot.slane %v14559_v17, %v13433_v20  ;;  %v14562_v60 = vrot.slane %v14561_v57, %v13433_v20  ;;  %v14567_v6 = vld [vmem:[#allocation56_spill] sm:$0xff] }
 0x469   : > { %v10139_v14 = vsel %vm9893_vm8, %v14553_v43, %v10134_v23  ;;  %v10282_v45 = vsel %vm9872_vm10, %v14556_v49, %v10277_v46  ;;  %v10346_v53 = vsel %vm9851_vm15, %v14558_v41, %v10341_v63  ;;  %v14563_v10 = vrot.slane %v14437_v24, %v13415_v16  ;;  %v9676_v46 = vpop.xlane.xlu0 %9675  ;;  %v14569_v24 = vld [vmem:[#allocation67_spill] sm:$0xff]  ;;  %v14575_v49 = vld [vmem:[#allocation70_spill] sm:$0xff] }
 0x46a   : > { %v10144_v33 = vsel %vm9900_vm7, %v14560_v47, %v10139_v14  ;;  %v10223_v0 = vsel %vm9900_vm7, %v14562_v60, %v10218_v38  ;;  %v14564_v23 = vrot.slane %v14432_v15, %v13409_v9  ;;  %v14566_v58 = vrot.slane %v14565_v34, %v13421_v2  ;;  %v14571_v15 = vld [vmem:[#allocation75_spill] sm:$0xff]  ;;  %v14582_v60 = vld [vmem:[#allocation73_spill] sm:$0xff]  ;;  %v14588_v34 = vld [vmem:[#allocation58_spill] sm:$0xff] }
 0x46b   : > { %v10351_v44 = vsel %vm9858_vm0, %v14563_v10, %v10346_v53  ;;  %v14568_v18 = vrot.slane %v14567_v6, %v13421_v2  ;;  %v14570_v63 = vrot.slane %v14569_v24, %v13397_v52  ;;  %v14572_v9 = vrot.slane %v14571_v15, %v13403_v4  ;;  %v14584_v10 = vld [vmem:[#allocation81_spill] sm:$0xff]  ;;  %v9589_v15 = vpop.xlane.xlu1 %9588 }
 0x46c   : > { %v10410_v37 = vsel %vm9830_vm1, %v14564_v23, %v10405_v21  ;;  %v10149_v31 = vsel %vm9907_vm4, %v14566_v58, %v10144_v33  ;;  %v10385_v14 = vrot.slane %v9631_v29, %v13421_v2  ;;  %v14574_v59 = vrot.slane %v14573_v48, %v13430_v3  ;;  %v14578_v21 = vld [vmem:[#allocation45_spill] sm:$0xff]  ;;  %v14586_v23 = vld [vmem:[#allocation36_spill] sm:$0xff] }
 0x46d   : > { %v10228_v56 = vsel %vm9907_vm4, %v14568_v18, %v10223_v0  ;;  %v10415_v13 = vsel %vm9837_vm13, %v14570_v63, %v10410_v37  ;;  %v10356_v43 = vsel %vm9865_vm2, %v14572_v9, %v10351_v44  ;;  %v14576_v35 = vrot.slane %v14575_v49, %v13412_v22  ;;  %v14580_v33 = vld [vmem:[#allocation57_spill] sm:$0xff]  ;;  %v9634_v9 = vpop.xlane.xlu0 %9633 }
 0x46e   : > { %v10001_v38 = vsel %vm9921_vm6, %v14574_v59, %v9996_v61  ;;  %v14577_v52 = vrot.slane %v14442_v42, %v13424_v12  ;;  %v14579_v17 = vrot.slane %v14578_v21, %v13436_v50  ;;  %v14581_v57 = vrot.slane %v14580_v33, %v13436_v50 }
 0x46f   : > { %v10420_v41 = vsel %vm9844_vm14, %v14576_v35, %v10415_v13  ;;  %v14583_v22 = vrot.slane %v14582_v60, %v13400_v55  ;;  %v14585_v42 = vrot.slane %v14584_v10, %v13406_v27  ;;  %v14587_v37 = vrot.slane %v14586_v23, %v13430_v3 }
 0x470   : > { %v10361_v53 = vsel %vm9872_vm10, %v14577_v52, %v10356_v43  ;;  %v10154_v47 = vsel %vm9914_vm3, %v14579_v17, %v10149_v31  ;;  %v10233_v61 = vsel %vm9914_vm3, %v14581_v57, %v10228_v56  ;;  %v14589_v58 = vrot.slane %v14588_v34, %v13430_v3  ;;  %v14591_v56 = vld [vmem:[#allocation77_spill] sm:$0xff]  ;;  %v14593_v43 = vld [vmem:[#allocation87_spill] sm:$0xff]  ;;  %v9679_v57 = vpop.xlane.xlu1 %9678 }
 0x471   : > { %v10425_v0 = vsel %vm9851_vm15, %v14583_v22, %v10420_v41  ;;  %v10366_v44 = vsel %vm9879_vm11, %v14585_v42, %v10361_v53  ;;  %v10159_v29 = vsel %vm9921_vm6, %v14587_v37, %v10154_v47  ;;  %v14590_v55 = vrot.slane %v14441_v5, %v13415_v16  ;;  %v14595_v5 = vld [vmem:[#allocation79_spill] sm:$0xff]  ;;  %v14606_v17 = vld [vmem:[#allocation17_spill] sm:$0xff]  ;;  %v9637_v7 = vpop.xlane.xlu0 %9636 }
 0x472   : > { %v10238_v31 = vsel %vm9921_vm6, %v14589_v58, %v10233_v61  ;;  %v10371_v18 = vsel %vm9886_vm9, %v10370_v36, %v10366_v44  ;;  %v14592_v24 = vrot.slane %v14591_v56, %v13406_v27  ;;  %v10476_v13 = vsel %vm914_vm5, %v10001_v38, %v9922_v28  ;;  %v14608_v61 = vld [vmem:[#allocation19_spill] sm:$0xff] }
 0x473   : > { %v10430_v6 = vsel %vm9858_vm0, %v14590_v55, %v10425_v0  ;;  %v14594_v48 = vrot.slane %v14593_v43, %v13418_v11  ;;  %v14596_v59 = vrot.slane %v14595_v5, %v13403_v4  ;;  %v14597_v36 = vrot.slane %v14443_v39, %v13427_v30  ;;  %v14600_v4 = vld [vmem:[#allocation83_spill] sm:$0xff] }
 0x474   : > { %v10287_v63 = vsel %vm9879_vm11, %v14592_v24, %v10282_v45  ;;  %vm14598_vm12 = vcmask 1042434   ;;  %v14599_v38 = vrot.slane %v14445_v40, %v13424_v12  ;;  %v14601_v41 = vrot.slane %v14600_v4, %v13418_v11  ;;  %v9682_v19 = vpop.xlane.xlu1 %9681 }
 0x475   : > { %v10376_v16 = vsel %vm9893_vm8, %v14594_v48, %v10371_v18  ;;  %v10435_v62 = vsel %vm9865_vm2, %v14596_v59, %v10430_v6  ;;  %v10292_v49 = vsel %vm9886_vm9, %v14597_v36, %v10287_v63  ;;  %v10477_v45 = vsel %vm14598_vm12, %v10080_v54, %v10476_v13  ;;  %v14603_v54 = vld [vmem:[#allocation85_spill] sm:$0xff]  ;;  %v9685_v44 = vpop.xlane.xlu0 %9684 }
 0x476   : > { %v10381_v28 = vsel %vm9900_vm7, %v10380_v32, %v10376_v16  ;;  %v10440_v35 = vsel %vm9872_vm10, %v14599_v38, %v10435_v62  ;;  %v10297_v52 = vsel %vm9893_vm8, %v14601_v41, %v10292_v49  ;;  %vm14602_vm5 = vcmask 1043459  }
 0x477   : > { %v10478_v39 = vsel %vm14602_vm5, %v10159_v29, %v10477_v45  ;;  %v10386_v53 = vsel %vm9907_vm4, %v10385_v14, %v10381_v28  ;;  %v14604_v21 = vrot.slane %v14603_v54, %v13406_v27  ;;  %v10302_v12 = vsel %vm9900_vm7, %v10301_v8, %v10297_v52 }
 0x478   : > { %vm14605_vm1 = vcmask 1044484   ;;  %v14607_v14 = vrot.slane %v14606_v17, %v13421_v2  ;;  %v10316_v27 = vrot.slane %v9589_v15, %v13430_v3  ;;  %v10390_v33 = vrot.slane %v9634_v9, %v13436_v50 }
 0x479   : > { %v10445_v51 = vsel %vm9879_vm11, %v14604_v21, %v10440_v35  ;;  %v10479_v40 = vsel %vm14605_vm1, %v10238_v31, %v10478_v39  ;;  %v14609_v8 = vrot.slane %v14608_v61, %v13418_v11  ;;  %v10459_v30 = vrot.slane %v9676_v46, %v13433_v20 }
 0x47a   : > { %v10450_v32 = vsel %vm9886_vm9, %v10449_v26, %v10445_v51  ;;  %v10307_v47 = vsel %vm9907_vm4, %v14607_v14, %v10302_v12  ;;  %v10395_v26 = vrot.slane %v9637_v7, %v13430_v3  ;;  %v10391_v0 = vsel %vm9914_vm3, %v10390_v33, %v10386_v53 }
 0x47b   : > { %v10455_v60 = vsel %vm9893_vm8, %v14609_v8, %v10450_v32  ;;  %v10312_v1 = vsel %vm9914_vm3, %v10311_v25, %v10307_v47  ;;  %v10464_v10 = vrot.slane %v9679_v57, %v13421_v2  ;;  %vm14610_vm9 = vcmask 1045509  }
 0x47c   : > { %v10317_v22 = vsel %vm9921_vm6, %v10316_v27, %v10312_v1  ;;  %v10460_v11 = vsel %vm9900_vm7, %v10459_v30, %v10455_v60  ;;  %v10396_v20 = vsel %vm9921_vm6, %v10395_v26, %v10391_v0  ;;  %vm14611_vm8 = vcmask 1046534  }
 0x47d   : > { %v10480_v42 = vsel %vm14610_vm9, %v10317_v22, %v10479_v40  ;;  %v10469_v25 = vrot.slane %v9682_v19, %v13436_v50  ;;  %v10474_v23 = vrot.slane %v9685_v44, %v13430_v3  ;;  %v10465_v37 = vsel %vm9907_vm4, %v10464_v10, %v10460_v11 }
 0x47e   : > { %v10481_v46 = vsel %vm14611_vm8, %v10396_v20, %v10480_v42  ;;  %vm14612_vm13 = vcmask 1047559  }
 0x47f   : > { %v10470_v29 = vsel %vm9914_vm3, %v10469_v25, %v10465_v37 }
 0x480   : > { %v10475_v2 = vsel %vm9921_vm6, %v10474_v23, %v10470_v29 }
 0x481   : > { %v10482_v34 = vsel %vm14612_vm13, %v10475_v2, %v10481_v46 }
 0x482   : > { %10484 = vst [vmem:[%s147_s27] sm:$0xff] %v10482_v34 }
 0x483 PF: > { %s10803_s12 = sshll.u32 %s11819_s13, 7  ;;  %s10499_s5 = sshll.u32 %s147_s27, 4  ;;  %s10500_s5 = int_to_ptr.vmem [resolvable:$true] %s10499_s5 }
 0x484   : > { %s10497_s18 = scalar_lea.hbm %s14193_s1, %s10803_s12  ;;  %s10486_s4 = scalar_lea.sflag [#allocation5], %s145_s20 }
 0x485   : > { %s11711_s9 = scalar_lea.vmem %s10500_s5, 128  ;;  %s11841_s17 = smov [#allocation6]  }
 0x486   : > { %p11712_p4 = scmp.ne.s32.totalorder %s10500_s5, %s11711_s9  ;;  %s11715_s23 = sshll.u32 %s11841_s17, 4  ;;  %s11716_s23 = int_to_ptr.vmem [resolvable:$false] %s11715_s23 }
 0x487   : > { %s11717_s3 = scalar_lea.vmem %s11716_s23, 256  ;;  %p11718_p8 = scmp.lt.s32.totalorder %s10500_s5, %s11716_s23 }
 0x488   : > { %p11713_p5 = pnand %p11712_p4, %p11934_p12  ;;  %p11719_p9 = scmp.lt.s32.totalorder %s11717_s3, %s11711_s9 }
 0x48a   : > { %p11714_p6 = pneg %p11713_p5  ;;  %p11720_p10 = por %p11719_p9, %p11718_p8 }
 0x48c   : > { %p11721_p11 = pnand %p11720_p10, %p11714_p6 }
 0x48e   : > { %11724 = shalt.err (!%p11721_p11)
}
 0x48f   : > { %s11725_s13 = scalar_lea.hbm %s10497_s18, 128  ;;  %s11729_s20 = scalar_lea.hbm %s14193_s1, 256 }
 0x490   : > { %p11726_p13 = scmp.ne.s32.totalorder %s10497_s18, %s11725_s13  ;;  %p11730_p1 = scmp.lt.s32.totalorder %s10497_s18, %s14193_s1 }
 0x491   : > { %p11731_p2 = scmp.lt.s32.totalorder %s11729_s20, %s11725_s13 }
 0x492   : > { %p11727_p0 = pnand %p11726_p13, %p11934_p12 }
 0x493   : > { %p11732_p7 = por %p11731_p2, %p11730_p1 }
 0x494   : > { %p11728_p3 = pneg %p11727_p0 }
 0x496   : > { %p11733_p4 = pnand %p11732_p7, %p11728_p3 }
 0x498   : > { %11736 = shalt.err (!%p11733_p4)
}
 0x499   : > { %11568 = dma.vmem_to_hbm [thread:$0]  (%p11934_p12), %s10500_s5, 128, %s10497_s18, %s10486_s4  }
 0x49a PF: > { %p11579_p5 = scmp.ge.s32.totalorder %s11831_s16, 2  ;;  %s10511_s12 = sand.u32 1, %s11791_s6  }
 0x49b   : > { %p14613_p6 = scmp.ne.s32.totalorder %s14288_s2, 0  ;;  %s10512_s25 = scalar_lea.sflag [#allocation5], %s10511_s12 }
 0x49d   : > { %p11575_p8 = pnand %p11579_p5, %p14613_p6 }
 0x49f   : > { %p11576_p9 = pneg %p11575_p8 }
 0x4a1   : > { %11786 = dma.done.wait (%p11576_p9), %s10512_s25, 128  }
 0x4a2   : > { %11788 = vsyncadd (%p11576_p9), %s10512_s25, 4294967168  ;;  %s17_s16 = sadd.s32 1, %s11831_s16   ;;  %s14614_s28 = sld [smem:[#allocation9_spill]] }
 0x4a3   : > { %p14_p10 = scmp.ge.s32.totalorder %s17_s16, 6   ;;  %s14615_s6 = smov %s11795_s7 }
 0x4a4   : > { %s14616_s7 = smov %s11799_s8  ;;  %s14617_s8 = smov %s11939_s29 }
 0x4a5   : > { %s14618_s9 = smov %s11807_s10  ;;  %s14619_s10 = smov %s11811_s11 }
 0x4a6   : > { %s14620_s11 = smov %s11942_s30  ;;  %s14621_s12 = smov %s11823_s14 }
 0x4a7   : > { %s14622_s13 = smov %s11827_s15  ;;  %s14623_s14 = smov %s14626_s19 }
 0x4a8   : > { %s14624_s15 = smov %s14614_s28  ;;  %16 = sbr.rel (!%p14_p10) target bundleno = 9 (0x9), region = 77 }
 0x4ad   :  { %10517 = vsyncpa [#allocation4], 1 }
 0x4ae   :  { %10519 = vsyncpa [#allocation4 + $0x1], 1 }
 0x4af   :  { %10520 = vsyncpa [#allocation5], 1 }
 0x4b0   :  { %10522 = vsyncpa [#allocation5 + $0x1], 1 }

</bundles_post_ra>
